<compile_context>
chip_gen: v5e
topology: v5e:2x2
jax: 0.10.0
libtpu: 0.0.40
codegen_flags: <defaults>
</compile_context>

<pallas_src>
import math

import jax
import jax.numpy as jnp
from jax import lax
from jax.experimental import pallas as pl
from jax.experimental.pallas import tpu as pltpu

N_EMBD = 384
NUM_HEADS = 6
HEAD_SIZE = N_EMBD // NUM_HEADS  # 64


def _make_mha_kernel(batch_per_tile, T, H, hs):
    C = H * hs
    # Stage head outputs in 128-lane slabs so stores into the bf16 staging scratch
    # are unmasked full-lane writes (hs = 64 -> 2 heads per slab at lanes 0/128/256).
    heads_per_slab = 2 if (2 * hs) % 128 == 0 and H % 2 == 0 else 1

    def kernel(x_ref, wqkv_ref, wp_ref, bp_ref, o_ref, qkv_ref, head_ref):
        # x_ref:    (rows, C)   bf16, rows = batch_per_tile * T
        # wqkv_ref: (C, 3C)     bf16  [Q | K | V], Q columns pre-scaled by 1/sqrt(C)
        # wp_ref:   (C, C)      bf16  output projection (cat @ Wp^T)
        # bp_ref:   (1, C)      f32   projection bias
        # o_ref:    (rows, C)   f32
        # qkv_ref:  (rows, 3C)  bf16  VMEM scratch
        # head_ref: (rows, C)   bf16  VMEM scratch (concatenated head outputs)

        # Fused QKV projection: one lane-dense (rows,C)@(C,3C) MXU matmul with f32
        # accumulation, written straight into the bf16 VMEM scratch so the value is
        # not held live across the statically unrolled loops below.
        qkv_ref[...] = jnp.dot(
            x_ref[...], wqkv_ref[...], preferred_element_type=jnp.float32
        ).astype(jnp.bfloat16)

        # TODO(synk): for large T (>~1-2K) this whole-sequence path materializes a
        # (T, T) score tile per head; switch to a flash-style kv-tiled grid axis
        # (online softmax, accumulator init/finalize via pl.when) and shrink
        # rows_per_tile before scaling T, especially on v7x (64 MiB VMEM).
        for b in range(batch_per_tile):              # static unroll (small)
            r0 = b * T
            for p0 in range(0, H, heads_per_slab):   # heads in 128-lane slabs
                slab = []
                for h in range(p0, p0 + heads_per_slab):
                    c0 = h * hs
                    q = qkv_ref[pl.ds(r0, T), pl.ds(c0, hs)]            # (T, hs)
                    k = qkv_ref[pl.ds(r0, T), pl.ds(C + c0, hs)]        # (T, hs)
                    v = qkv_ref[pl.ds(r0, T), pl.ds(2 * C + c0, hs)]    # (T, hs)

                    # scores = (q / sqrt(n_embd)) @ k^T  (scale folded into Wq)
                    s = lax.dot_general(q, k, (((1,), (1,)), ((), ())),
                                        preferred_element_type=jnp.float32)  # (T,T)
                    s = s - jnp.max(s, axis=-1, keepdims=True)
                    p = jnp.exp(s)
                    l = jnp.sum(p, axis=-1, keepdims=True)               # (T, 1)

                    ho = jnp.dot(p.astype(jnp.bfloat16), v,
                                 preferred_element_type=jnp.float32)     # (T, hs)
                    # Normalize AFTER the PV matmul: T*hs elements instead of the
                    # (T,T) probability tile; reciprocal runs on the EUP slot.
                    ho = ho * pl.reciprocal(l, approx=True)
                    slab.append(ho.astype(jnp.bfloat16))

                pair = slab[0] if len(slab) == 1 else jnp.concatenate(slab, axis=-1)
                head_ref[pl.ds(r0, T), pl.ds(p0 * hs, heads_per_slab * hs)] = pair

            # Single lane-dense output projection (K = C = 384 on the MXU) with the
            # bias added once -- replaces 6 K=64 matmuls plus an f32 add chain.
            o_ref[pl.ds(r0, T), :] = (
                jnp.dot(head_ref[pl.ds(r0, T), :], wp_ref[...],
                        preferred_element_type=jnp.float32)
                + bp_ref[...]
            )

    return kernel


def _pick_batch_per_tile(B, T, C):
    """Batch elements per grid step, chosen from a VMEM budget (not hard-coded = B)."""
    # Resident bytes per batch element: bf16 x + bf16 qkv scratch + bf16 head stage
    # + f32 out, with x/out double-buffered by the pipeline.
    per_b = T * C * (2 * 2 + 3 * 2 + 2 + 2 * 4)
    budget = 8 << 20  # stay well inside the default scoped VMEM on all generations
    bpt = max(1, min(B, budget // max(per_b, 1)))
    if B >= 2:
        bpt = min(bpt, B // 2)  # >= 2 grid steps so both v7x TensorCores get work
    while B % bpt:
        bpt -= 1
    return bpt


def multi_head_attention(x, wq, wk, wv, wp_t, bp):
    """x: (B, T, C) f32.  wq/wk/wv: (H, C, hs) f32.  wp_t: (C, C) f32.  bp: (1, C) f32."""
    B, T, C = x.shape
    H, _, hs = wq.shape
    assert H * hs == C and C % 128 == 0

    # ---- host-side weight fusion (lane-dense, bf16) ----
    scale = 1.0 / math.sqrt(float(C))  # reference divides by sqrt(n_embd), not sqrt(hs)
    wq_f = jnp.transpose(wq, (1, 0, 2)).reshape(C, C) * scale   # fold scale in f32
    wk_f = jnp.transpose(wk, (1, 0, 2)).reshape(C, C)
    wv_f = jnp.transpose(wv, (1, 0, 2)).reshape(C, C)
    wqkv = jnp.concatenate([wq_f, wk_f, wv_f], axis=-1).astype(jnp.bfloat16)  # (C, 3C)
    wp_bf = wp_t.astype(jnp.bfloat16)
    bp_f32 = bp.astype(jnp.float32)

    batch_per_tile = _pick_batch_per_tile(B, T, C)
    rows_per_tile = batch_per_tile * T
    num_tiles = B // batch_per_tile
    total_rows = B * T
    # (16,128)/(8,128) tiling: row blocks must be sublane-aligned unless the block
    # spans the whole array.
    assert rows_per_tile == total_rows or rows_per_tile % 16 == 0

    x2d = x.reshape(total_rows, C).astype(jnp.bfloat16)

    kernel = _make_mha_kernel(batch_per_tile, T, H, hs)

    flops = int(2 * total_rows * C * 3 * C          # fused QKV projection
                + 4 * B * H * T * T * hs            # scores + PV matmuls
                + 2 * total_rows * C * C)           # output projection
    cost = pl.CostEstimate(
        flops=flops,
        transcendentals=int(B * H * T * T),         # exp on the score tiles
        bytes_accessed=int(x2d.size * 2 + wqkv.size * 2 + wp_bf.size * 2
                           + bp_f32.size * 4 + total_rows * C * 4),
    )

    # NOTE: wqkv / wp / bias have constant index_maps; pinning them single-buffered
    # (pipeline_mode=pl.Buffered(1)) would reclaim ~1.2 MB VMEM -- negligible at
    # these sizes, left as a follow-up for large-T configs.
    out2d = pl.pallas_call(
        kernel,
        out_shape=jax.ShapeDtypeStruct((total_rows, C), jnp.float32),
        grid_spec=pltpu.PrefetchScalarGridSpec(
            num_scalar_prefetch=0,
            grid=(num_tiles,),
            in_specs=[
                pl.BlockSpec((rows_per_tile, C), lambda i: (i, 0)),   # x rows
                pl.BlockSpec((C, 3 * C), lambda i: (0, 0)),           # fused Wqkv
                pl.BlockSpec((C, C), lambda i: (0, 0)),               # Wp^T
                pl.BlockSpec((1, C), lambda i: (0, 0)),               # bias
            ],
            out_specs=pl.BlockSpec((rows_per_tile, C), lambda i: (i, 0)),
            scratch_shapes=[
                pltpu.VMEM((rows_per_tile, 3 * C), jnp.bfloat16),     # qkv scratch
                pltpu.VMEM((rows_per_tile, C), jnp.bfloat16),         # head-out stage
            ],
        ),
        compiler_params=pltpu.CompilerParams(
            dimension_semantics=("parallel",),
            vmem_limit_bytes=64 * 1024 * 1024,
        ),
        cost_estimate=cost,
    )(x2d, wqkv, wp_bf, bp_f32)

    return out2d.reshape(B, T, C)


def _reference(x, wq, wk, wv, wp_t, bp):
    """Pure-JAX f32 reference mirroring the PyTorch forward."""
    B, T, C = x.shape
    outs = []
    for h in range(wq.shape[0]):
        q = x @ wq[h]
        k = x @ wk[h]
        v = x @ wv[h]
        s = (q @ jnp.swapaxes(k, -2, -1)) / math.sqrt(C)
        p = jax.nn.softmax(s, axis=-1)
        outs.append(p @ v)
    cat = jnp.concatenate(outs, axis=-1)
    return cat @ wp_t + bp


if __name__ == "__main__":
    B, T = 2, 16
    C, H, hs = N_EMBD, NUM_HEADS, HEAD_SIZE

    key = jax.random.PRNGKey(0)
    kx, kq, kk, kv, kp, kb = jax.random.split(key, 6)

    # Deterministic param init (PyTorch Linear default: U(-1/sqrt(fan_in), +1/sqrt(fan_in))).
    lim = 1.0 / math.sqrt(C)
    wq = jax.random.uniform(kq, (H, C, hs), jnp.float32, -lim, lim)
    wk = jax.random.uniform(kk, (H, C, hs), jnp.float32, -lim, lim)
    wv = jax.random.uniform(kv, (H, C, hs), jnp.float32, -lim, lim)
    wp_t = jax.random.uniform(kp, (C, C), jnp.float32, -lim, lim)
    bp = jax.random.uniform(kb, (1, C), jnp.float32, -lim, lim)

    x = jax.random.normal(kx, (B, T, C), jnp.float32)

    out = multi_head_attention(x, wq, wk, wv, wp_t, bp)
    out = jax.block_until_ready(out)

    ref = _reference(x, wq, wk, wv, wp_t, bp)
    assert out.shape == (B, T, C)
    # bf16 MXU matmuls with f32 accumulation + approx reciprocal: relaxed tolerance.
    assert jnp.allclose(out, ref, atol=2e-2, rtol=2e-2)

    print("KERNEL_OK")
</pallas_src>

<mosaic_0001>
module attributes {stable_mosaic.version = 11 : i64} {
  func.func @kernel(%arg0: i32, %arg1: memref<16x384xbf16, #tpu.memory_space<vmem>>, %arg2: memref<384x1152xbf16, #tpu.memory_space<vmem>>, %arg3: memref<384x384xbf16, #tpu.memory_space<vmem>>, %arg4: memref<1x384xf32, #tpu.memory_space<vmem>>, %arg5: memref<16x384xf32, #tpu.memory_space<vmem>>, %arg6: memref<16x1152xbf16, #tpu.memory_space<vmem>>, %arg7: memref<16x384xbf16, #tpu.memory_space<vmem>>) attributes {dimension_semantics = [#tpu.dimension_semantics<parallel>], iteration_bounds = array<i64: 2>, scalar_prefetch = 0 : i64, scratch_operands = 2 : i64, tpu.core_type = #tpu.core_type<tc>, window_params = [{transform_indices = @transform_0, window_bounds = array<i64: 16, 384>}, {pipeline_mode = #tpu.pipeline_mode<synchronous>, transform_indices = @transform_1, window_bounds = array<i64: 384, 1152>}, {pipeline_mode = #tpu.pipeline_mode<synchronous>, transform_indices = @transform_2, window_bounds = array<i64: 384, 384>}, {pipeline_mode = #tpu.pipeline_mode<synchronous>, transform_indices = @transform_3, window_bounds = array<i64: 1, 384>}, {transform_indices = @transform_4, window_bounds = array<i64: 16, 384>}]} {
    %c0 = arith.constant 0 : index
    %c0_0 = arith.constant 0 : index
    %0 = vector.load %arg1[%c0, %c0_0] : memref<16x384xbf16, #tpu.memory_space<vmem>>, vector<16x384xbf16>
    %c0_1 = arith.constant 0 : index
    %c0_2 = arith.constant 0 : index
    %1 = vector.load %arg2[%c0_1, %c0_2] : memref<384x1152xbf16, #tpu.memory_space<vmem>>, vector<384x1152xbf16>
    %cst = arith.constant dense<0.000000e+00> : vector<16x1152xf32>
    %2 = tpu.matmul %0, %1, %cst {dimension_numbers = #tpu.dot_dimension_numbers<[1], [0], [0], [1], [0, 0, 1, 1], [], []>} : vector<16x384xbf16>, vector<384x1152xbf16>, vector<16x1152xf32> -> vector<16x1152xf32>
    %3 = arith.truncf %2 : vector<16x1152xf32> to vector<16x1152xbf16>
    %c0_3 = arith.constant 0 : index
    %c0_4 = arith.constant 0 : index
    %4 = vector.load %arg6[%c0_3, %c0_4] : memref<16x1152xbf16, #tpu.memory_space<vmem>>, vector<16x1152xbf16>
    tpu.vector_store %arg6[%c0_3, %c0_4], %3 {strides = array<i32>} : memref<16x1152xbf16, #tpu.memory_space<vmem>>, vector<16x1152xbf16>,
    %c0_5 = arith.constant 0 : index
    %c0_6 = arith.constant 0 : index
    %5 = vector.load %arg6[%c0_5, %c0_6] : memref<16x1152xbf16, #tpu.memory_space<vmem>>, vector<16x64xbf16>
    %c0_7 = arith.constant 0 : index
    %c384 = arith.constant 384 : index
    %6 = vector.load %arg6[%c0_7, %c384] : memref<16x1152xbf16, #tpu.memory_space<vmem>>, vector<16x64xbf16>
    %c0_8 = arith.constant 0 : index
    %c768 = arith.constant 768 : index
    %7 = vector.load %arg6[%c0_8, %c768] : memref<16x1152xbf16, #tpu.memory_space<vmem>>, vector<16x64xbf16>
    %cst_9 = arith.constant dense<0.000000e+00> : vector<16x16xf32>
    %8 = tpu.matmul %5, %6, %cst_9 {dimension_numbers = #tpu.dot_dimension_numbers<[1], [1], [0], [0], [0, 0, 1, 0], [], []>} : vector<16x64xbf16>, vector<16x64xbf16>, vector<16x16xf32> -> vector<16x16xf32>
    %cst_10 = arith.constant dense<0xFF800000> : vector<16xf32>
    %9 = vector.multi_reduction <maximumf>, %8, %cst_10 [1] : vector<16x16xf32> to vector<16xf32>
    %10 = vector.shape_cast %9 : vector<16xf32> to vector<16x1xf32>
    %11 = vector.broadcast %10 : vector<16x1xf32> to vector<16x16xf32>
    %12 = arith.subf %8, %11 : vector<16x16xf32>
    %13 = math.exp %12 : vector<16x16xf32>
    %cst_11 = arith.constant dense<0.000000e+00> : vector<16xf32>
    %14 = vector.multi_reduction <add>, %13, %cst_11 [1] : vector<16x16xf32> to vector<16xf32>
    %15 = vector.shape_cast %14 : vector<16xf32> to vector<16x1xf32>
    %16 = arith.truncf %13 : vector<16x16xf32> to vector<16x16xbf16>
    %cst_12 = arith.constant dense<0.000000e+00> : vector<16x64xf32>
    %17 = tpu.matmul %16, %7, %cst_12 {dimension_numbers = #tpu.dot_dimension_numbers<[1], [0], [0], [1], [0, 0, 1, 1], [], []>} : vector<16x16xbf16>, vector<16x64xbf16>, vector<16x64xf32> -> vector<16x64xf32>
    %18 = tpu.reciprocal %15 {approx = true} : vector<16x1xf32> -> vector<16x1xf32>
    %19 = vector.broadcast %18 : vector<16x1xf32> to vector<16x64xf32>
    %20 = arith.mulf %17, %19 : vector<16x64xf32>
    %21 = arith.truncf %20 : vector<16x64xf32> to vector<16x64xbf16>
    %c0_13 = arith.constant 0 : index
    %c64 = arith.constant 64 : index
    %22 = vector.load %arg6[%c0_13, %c64] : memref<16x1152xbf16, #tpu.memory_space<vmem>>, vector<16x64xbf16>
    %c0_14 = arith.constant 0 : index
    %c448 = arith.constant 448 : index
    %23 = vector.load %arg6[%c0_14, %c448] : memref<16x1152xbf16, #tpu.memory_space<vmem>>, vector<16x64xbf16>
    %c0_15 = arith.constant 0 : index
    %c832 = arith.constant 832 : index
    %24 = vector.load %arg6[%c0_15, %c832] : memref<16x1152xbf16, #tpu.memory_space<vmem>>, vector<16x64xbf16>
    %cst_16 = arith.constant dense<0.000000e+00> : vector<16x16xf32>
    %25 = tpu.matmul %22, %23, %cst_16 {dimension_numbers = #tpu.dot_dimension_numbers<[1], [1], [0], [0], [0, 0, 1, 0], [], []>} : vector<16x64xbf16>, vector<16x64xbf16>, vector<16x16xf32> -> vector<16x16xf32>
    %cst_17 = arith.constant dense<0xFF800000> : vector<16xf32>
    %26 = vector.multi_reduction <maximumf>, %25, %cst_17 [1] : vector<16x16xf32> to vector<16xf32>
    %27 = vector.shape_cast %26 : vector<16xf32> to vector<16x1xf32>
    %28 = vector.broadcast %27 : vector<16x1xf32> to vector<16x16xf32>
    %29 = arith.subf %25, %28 : vector<16x16xf32>
    %30 = math.exp %29 : vector<16x16xf32>
    %cst_18 = arith.constant dense<0.000000e+00> : vector<16xf32>
    %31 = vector.multi_reduction <add>, %30, %cst_18 [1] : vector<16x16xf32> to vector<16xf32>
    %32 = vector.shape_cast %31 : vector<16xf32> to vector<16x1xf32>
    %33 = arith.truncf %30 : vector<16x16xf32> to vector<16x16xbf16>
    %cst_19 = arith.constant dense<0.000000e+00> : vector<16x64xf32>
    %34 = tpu.matmul %33, %24, %cst_19 {dimension_numbers = #tpu.dot_dimension_numbers<[1], [0], [0], [1], [0, 0, 1, 1], [], []>} : vector<16x16xbf16>, vector<16x64xbf16>, vector<16x64xf32> -> vector<16x64xf32>
    %35 = tpu.reciprocal %32 {approx = true} : vector<16x1xf32> -> vector<16x1xf32>
    %36 = vector.broadcast %35 : vector<16x1xf32> to vector<16x64xf32>
    %37 = arith.mulf %34, %36 : vector<16x64xf32>
    %38 = arith.truncf %37 : vector<16x64xf32> to vector<16x64xbf16>
    %39 = tpu.concatenate %21, %38 in 1 : vector<16x64xbf16>, vector<16x64xbf16> -> vector<16x128xbf16>
    %c0_20 = arith.constant 0 : index
    %c0_21 = arith.constant 0 : index
    %40 = vector.load %arg7[%c0_20, %c0_21] : memref<16x384xbf16, #tpu.memory_space<vmem>>, vector<16x128xbf16>
    tpu.vector_store %arg7[%c0_20, %c0_21], %39 {strides = array<i32>} : memref<16x384xbf16, #tpu.memory_space<vmem>>, vector<16x128xbf16>,
    %c0_22 = arith.constant 0 : index
    %c128 = arith.constant 128 : index
    %41 = vector.load %arg6[%c0_22, %c128] : memref<16x1152xbf16, #tpu.memory_space<vmem>>, vector<16x64xbf16>
    %c0_23 = arith.constant 0 : index
    %c512 = arith.constant 512 : index
    %42 = vector.load %arg6[%c0_23, %c512] : memref<16x1152xbf16, #tpu.memory_space<vmem>>, vector<16x64xbf16>
    %c0_24 = arith.constant 0 : index
    %c896 = arith.constant 896 : index
    %43 = vector.load %arg6[%c0_24, %c896] : memref<16x1152xbf16, #tpu.memory_space<vmem>>, vector<16x64xbf16>
    %cst_25 = arith.constant dense<0.000000e+00> : vector<16x16xf32>
    %44 = tpu.matmul %41, %42, %cst_25 {dimension_numbers = #tpu.dot_dimension_numbers<[1], [1], [0], [0], [0, 0, 1, 0], [], []>} : vector<16x64xbf16>, vector<16x64xbf16>, vector<16x16xf32> -> vector<16x16xf32>
    %cst_26 = arith.constant dense<0xFF800000> : vector<16xf32>
    %45 = vector.multi_reduction <maximumf>, %44, %cst_26 [1] : vector<16x16xf32> to vector<16xf32>
    %46 = vector.shape_cast %45 : vector<16xf32> to vector<16x1xf32>
    %47 = vector.broadcast %46 : vector<16x1xf32> to vector<16x16xf32>
    %48 = arith.subf %44, %47 : vector<16x16xf32>
    %49 = math.exp %48 : vector<16x16xf32>
    %cst_27 = arith.constant dense<0.000000e+00> : vector<16xf32>
    %50 = vector.multi_reduction <add>, %49, %cst_27 [1] : vector<16x16xf32> to vector<16xf32>
    %51 = vector.shape_cast %50 : vector<16xf32> to vector<16x1xf32>
    %52 = arith.truncf %49 : vector<16x16xf32> to vector<16x16xbf16>
    %cst_28 = arith.constant dense<0.000000e+00> : vector<16x64xf32>
    %53 = tpu.matmul %52, %43, %cst_28 {dimension_numbers = #tpu.dot_dimension_numbers<[1], [0], [0], [1], [0, 0, 1, 1], [], []>} : vector<16x16xbf16>, vector<16x64xbf16>, vector<16x64xf32> -> vector<16x64xf32>
    %54 = tpu.reciprocal %51 {approx = true} : vector<16x1xf32> -> vector<16x1xf32>
    %55 = vector.broadcast %54 : vector<16x1xf32> to vector<16x64xf32>
    %56 = arith.mulf %53, %55 : vector<16x64xf32>
    %57 = arith.truncf %56 : vector<16x64xf32> to vector<16x64xbf16>
    %c0_29 = arith.constant 0 : index
    %c192 = arith.constant 192 : index
    %58 = vector.load %arg6[%c0_29, %c192] : memref<16x1152xbf16, #tpu.memory_space<vmem>>, vector<16x64xbf16>
    %c0_30 = arith.constant 0 : index
    %c576 = arith.constant 576 : index
    %59 = vector.load %arg6[%c0_30, %c576] : memref<16x1152xbf16, #tpu.memory_space<vmem>>, vector<16x64xbf16>
    %c0_31 = arith.constant 0 : index
    %c960 = arith.constant 960 : index
    %60 = vector.load %arg6[%c0_31, %c960] : memref<16x1152xbf16, #tpu.memory_space<vmem>>, vector<16x64xbf16>
    %cst_32 = arith.constant dense<0.000000e+00> : vector<16x16xf32>
    %61 = tpu.matmul %58, %59, %cst_32 {dimension_numbers = #tpu.dot_dimension_numbers<[1], [1], [0], [0], [0, 0, 1, 0], [], []>} : vector<16x64xbf16>, vector<16x64xbf16>, vector<16x16xf32> -> vector<16x16xf32>
    %cst_33 = arith.constant dense<0xFF800000> : vector<16xf32>
    %62 = vector.multi_reduction <maximumf>, %61, %cst_33 [1] : vector<16x16xf32> to vector<16xf32>
    %63 = vector.shape_cast %62 : vector<16xf32> to vector<16x1xf32>
    %64 = vector.broadcast %63 : vector<16x1xf32> to vector<16x16xf32>
    %65 = arith.subf %61, %64 : vector<16x16xf32>
    %66 = math.exp %65 : vector<16x16xf32>
    %cst_34 = arith.constant dense<0.000000e+00> : vector<16xf32>
    %67 = vector.multi_reduction <add>, %66, %cst_34 [1] : vector<16x16xf32> to vector<16xf32>
    %68 = vector.shape_cast %67 : vector<16xf32> to vector<16x1xf32>
    %69 = arith.truncf %66 : vector<16x16xf32> to vector<16x16xbf16>
    %cst_35 = arith.constant dense<0.000000e+00> : vector<16x64xf32>
    %70 = tpu.matmul %69, %60, %cst_35 {dimension_numbers = #tpu.dot_dimension_numbers<[1], [0], [0], [1], [0, 0, 1, 1], [], []>} : vector<16x16xbf16>, vector<16x64xbf16>, vector<16x64xf32> -> vector<16x64xf32>
    %71 = tpu.reciprocal %68 {approx = true} : vector<16x1xf32> -> vector<16x1xf32>
    %72 = vector.broadcast %71 : vector<16x1xf32> to vector<16x64xf32>
    %73 = arith.mulf %70, %72 : vector<16x64xf32>
    %74 = arith.truncf %73 : vector<16x64xf32> to vector<16x64xbf16>
    %75 = tpu.concatenate %57, %74 in 1 : vector<16x64xbf16>, vector<16x64xbf16> -> vector<16x128xbf16>
    %c0_36 = arith.constant 0 : index
    %c128_37 = arith.constant 128 : index
    %76 = vector.load %arg7[%c0_36, %c128_37] : memref<16x384xbf16, #tpu.memory_space<vmem>>, vector<16x128xbf16>
    tpu.vector_store %arg7[%c0_36, %c128_37], %75 {strides = array<i32>} : memref<16x384xbf16, #tpu.memory_space<vmem>>, vector<16x128xbf16>,
    %c0_38 = arith.constant 0 : index
    %c256 = arith.constant 256 : index
    %77 = vector.load %arg6[%c0_38, %c256] : memref<16x1152xbf16, #tpu.memory_space<vmem>>, vector<16x64xbf16>
    %c0_39 = arith.constant 0 : index
    %c640 = arith.constant 640 : index
    %78 = vector.load %arg6[%c0_39, %c640] : memref<16x1152xbf16, #tpu.memory_space<vmem>>, vector<16x64xbf16>
    %c0_40 = arith.constant 0 : index
    %c1024 = arith.constant 1024 : index
    %79 = vector.load %arg6[%c0_40, %c1024] : memref<16x1152xbf16, #tpu.memory_space<vmem>>, vector<16x64xbf16>
    %cst_41 = arith.constant dense<0.000000e+00> : vector<16x16xf32>
    %80 = tpu.matmul %77, %78, %cst_41 {dimension_numbers = #tpu.dot_dimension_numbers<[1], [1], [0], [0], [0, 0, 1, 0], [], []>} : vector<16x64xbf16>, vector<16x64xbf16>, vector<16x16xf32> -> vector<16x16xf32>
    %cst_42 = arith.constant dense<0xFF800000> : vector<16xf32>
    %81 = vector.multi_reduction <maximumf>, %80, %cst_42 [1] : vector<16x16xf32> to vector<16xf32>
    %82 = vector.shape_cast %81 : vector<16xf32> to vector<16x1xf32>
    %83 = vector.broadcast %82 : vector<16x1xf32> to vector<16x16xf32>
    %84 = arith.subf %80, %83 : vector<16x16xf32>
    %85 = math.exp %84 : vector<16x16xf32>
    %cst_43 = arith.constant dense<0.000000e+00> : vector<16xf32>
    %86 = vector.multi_reduction <add>, %85, %cst_43 [1] : vector<16x16xf32> to vector<16xf32>
    %87 = vector.shape_cast %86 : vector<16xf32> to vector<16x1xf32>
    %88 = arith.truncf %85 : vector<16x16xf32> to vector<16x16xbf16>
    %cst_44 = arith.constant dense<0.000000e+00> : vector<16x64xf32>
    %89 = tpu.matmul %88, %79, %cst_44 {dimension_numbers = #tpu.dot_dimension_numbers<[1], [0], [0], [1], [0, 0, 1, 1], [], []>} : vector<16x16xbf16>, vector<16x64xbf16>, vector<16x64xf32> -> vector<16x64xf32>
    %90 = tpu.reciprocal %87 {approx = true} : vector<16x1xf32> -> vector<16x1xf32>
    %91 = vector.broadcast %90 : vector<16x1xf32> to vector<16x64xf32>
    %92 = arith.mulf %89, %91 : vector<16x64xf32>
    %93 = arith.truncf %92 : vector<16x64xf32> to vector<16x64xbf16>
    %c0_45 = arith.constant 0 : index
    %c320 = arith.constant 320 : index
    %94 = vector.load %arg6[%c0_45, %c320] : memref<16x1152xbf16, #tpu.memory_space<vmem>>, vector<16x64xbf16>
    %c0_46 = arith.constant 0 : index
    %c704 = arith.constant 704 : index
    %95 = vector.load %arg6[%c0_46, %c704] : memref<16x1152xbf16, #tpu.memory_space<vmem>>, vector<16x64xbf16>
    %c0_47 = arith.constant 0 : index
    %c1088 = arith.constant 1088 : index
    %96 = vector.load %arg6[%c0_47, %c1088] : memref<16x1152xbf16, #tpu.memory_space<vmem>>, vector<16x64xbf16>
    %cst_48 = arith.constant dense<0.000000e+00> : vector<16x16xf32>
    %97 = tpu.matmul %94, %95, %cst_48 {dimension_numbers = #tpu.dot_dimension_numbers<[1], [1], [0], [0], [0, 0, 1, 0], [], []>} : vector<16x64xbf16>, vector<16x64xbf16>, vector<16x16xf32> -> vector<16x16xf32>
    %cst_49 = arith.constant dense<0xFF800000> : vector<16xf32>
    %98 = vector.multi_reduction <maximumf>, %97, %cst_49 [1] : vector<16x16xf32> to vector<16xf32>
    %99 = vector.shape_cast %98 : vector<16xf32> to vector<16x1xf32>
    %100 = vector.broadcast %99 : vector<16x1xf32> to vector<16x16xf32>
    %101 = arith.subf %97, %100 : vector<16x16xf32>
    %102 = math.exp %101 : vector<16x16xf32>
    %cst_50 = arith.constant dense<0.000000e+00> : vector<16xf32>
    %103 = vector.multi_reduction <add>, %102, %cst_50 [1] : vector<16x16xf32> to vector<16xf32>
    %104 = vector.shape_cast %103 : vector<16xf32> to vector<16x1xf32>
    %105 = arith.truncf %102 : vector<16x16xf32> to vector<16x16xbf16>
    %cst_51 = arith.constant dense<0.000000e+00> : vector<16x64xf32>
    %106 = tpu.matmul %105, %96, %cst_51 {dimension_numbers = #tpu.dot_dimension_numbers<[1], [0], [0], [1], [0, 0, 1, 1], [], []>} : vector<16x16xbf16>, vector<16x64xbf16>, vector<16x64xf32> -> vector<16x64xf32>
    %107 = tpu.reciprocal %104 {approx = true} : vector<16x1xf32> -> vector<16x1xf32>
    %108 = vector.broadcast %107 : vector<16x1xf32> to vector<16x64xf32>
    %109 = arith.mulf %106, %108 : vector<16x64xf32>
    %110 = arith.truncf %109 : vector<16x64xf32> to vector<16x64xbf16>
    %111 = tpu.concatenate %93, %110 in 1 : vector<16x64xbf16>, vector<16x64xbf16> -> vector<16x128xbf16>
    %c0_52 = arith.constant 0 : index
    %c256_53 = arith.constant 256 : index
    %112 = vector.load %arg7[%c0_52, %c256_53] : memref<16x384xbf16, #tpu.memory_space<vmem>>, vector<16x128xbf16>
    tpu.vector_store %arg7[%c0_52, %c256_53], %111 {strides = array<i32>} : memref<16x384xbf16, #tpu.memory_space<vmem>>, vector<16x128xbf16>,
    %c0_54 = arith.constant 0 : index
    %c0_55 = arith.constant 0 : index
    %113 = vector.load %arg7[%c0_54, %c0_55] : memref<16x384xbf16, #tpu.memory_space<vmem>>, vector<16x384xbf16>
    %c0_56 = arith.constant 0 : index
    %c0_57 = arith.constant 0 : index
    %114 = vector.load %arg3[%c0_56, %c0_57] : memref<384x384xbf16, #tpu.memory_space<vmem>>, vector<384x384xbf16>
    %cst_58 = arith.constant dense<0.000000e+00> : vector<16x384xf32>
    %115 = tpu.matmul %113, %114, %cst_58 {dimension_numbers = #tpu.dot_dimension_numbers<[1], [0], [0], [1], [0, 0, 1, 1], [], []>} : vector<16x384xbf16>, vector<384x384xbf16>, vector<16x384xf32> -> vector<16x384xf32>
    %c0_59 = arith.constant 0 : index
    %c0_60 = arith.constant 0 : index
    %116 = vector.load %arg4[%c0_59, %c0_60] : memref<1x384xf32, #tpu.memory_space<vmem>>, vector<1x384xf32>
    %117 = vector.broadcast %116 : vector<1x384xf32> to vector<16x384xf32>
    %118 = arith.addf %115, %117 : vector<16x384xf32>
    %c0_61 = arith.constant 0 : index
    %c0_62 = arith.constant 0 : index
    %119 = vector.load %arg5[%c0_61, %c0_62] : memref<16x384xf32, #tpu.memory_space<vmem>>, vector<16x384xf32>
    tpu.vector_store %arg5[%c0_61, %c0_62], %118 {strides = array<i32>} : memref<16x384xf32, #tpu.memory_space<vmem>>, vector<16x384xf32>,
    return
  }
  func.func @transform_0(%arg0: i32) -> (i32, i32) {
    %c0_i32 = arith.constant 0 : i32
    %c0_i32_0 = arith.constant 0 : i32
    return %arg0, %c0_i32 : i32, i32
  }
  func.func @transform_1(%arg0: i32) -> (i32, i32) {
    %c0_i32 = arith.constant 0 : i32
    %c0_i32_0 = arith.constant 0 : i32
    %c0_i32_1 = arith.constant 0 : i32
    return %c0_i32, %c0_i32_0 : i32, i32
  }
  func.func @transform_2(%arg0: i32) -> (i32, i32) {
    %c0_i32 = arith.constant 0 : i32
    %c0_i32_0 = arith.constant 0 : i32
    %c0_i32_1 = arith.constant 0 : i32
    return %c0_i32, %c0_i32_0 : i32, i32
  }
  func.func @transform_3(%arg0: i32) -> (i32, i32) {
    %c0_i32 = arith.constant 0 : i32
    %c0_i32_0 = arith.constant 0 : i32
    %c0_i32_1 = arith.constant 0 : i32
    return %c0_i32, %c0_i32_0 : i32, i32
  }
  func.func @transform_4(%arg0: i32) -> (i32, i32) {
    %c0_i32 = arith.constant 0 : i32
    %c0_i32_0 = arith.constant 0 : i32
    return %arg0, %c0_i32 : i32, i32
  }
}

</mosaic_0001>

<bundles_post_ra>
// kernel: tpu_custom_call.1
= control target key start
LH: loop header
LB: loop body
LE: loop exit
PB: predicated region body
PF: predicated region fallthrough
CT: control target
= control target key end

     0   :  { %9 = vsyncpa [#allocation5], 0  ;;  %s5548_s0 = inlined_call_operand.hbm [shape: bf16[32,384], index: 0, kind: input, shape index: {}]   ;;  %s5549_s1 = inlined_call_operand.hbm [shape: bf16[384,1152], index: 1, kind: input, shape index: {}]   ;;  %s5550_s2 = inlined_call_operand.hbm [shape: bf16[384,384], index: 2, kind: input, shape index: {}]   ;;  %s5551_s3 = inlined_call_operand.hbm [shape: f32[1,384], index: 3, kind: input, shape index: {}]   ;;  %s5552_s4 = inlined_call_operand.hbm [shape: f32[32,384], index: 4, kind: output, shape index: {}]  }
   0x1   :  { %11 = vsyncpa [#allocation5 + $0x1], 0 }
   0x2   :  { %12 = vsyncpa [#allocation8], 0 }
   0x3   :  { %13 = vsyncpa [#allocation11], 0 }
   0x4   :  { %14 = vsyncpa [#allocation6], 0 }
   0x5   :  { %16 = vsyncpa [#allocation6 + $0x1], 0  ;;  %s5237_s15 = smov 0   ;;  %s5239_s16 = smov 0  }
   0x6   :  { %s5241_s17 = smov 0   ;;  %s5243_s18 = smov 0  }
   0x7 LB: > { %s5258_s19 = sadd.s32 4294967295, %s5200_s18   ;;  %s3324_s20 = sadd.s32 4294967294, %s5200_s18   ;;  %s5200_s18 = sphi %s5243_s18, %s5567_s18   ;;  %s5196_s17 = sphi %s5241_s17, %s5566_s17   ;;  %s5192_s16 = sphi %s5239_s16, %s5565_s16   ;;  %s5188_s15 = sphi %s5237_s15, %s5564_s15  }
   0x8   : > { %p42_p0 = scmp.ne.s32.totalorder %s5192_s16, %s5188_s15  ;;  %p43_p1 = scmp.eq.s32.totalorder %s5258_s19, 0 }
   0x9   : > { %p129_p2 = scmp.eq.s32.totalorder %s5258_s19, 1  ;;  %p135_p3 = scmp.eq.s32.totalorder %s3324_s20, 1 }
   0xa   : > { %p5267_p4 = por %p43_p1, %p42_p0  ;;  %p3325_p5 = scmp.ge.s32.totalorder %s5200_s18, 1 }
   0xb   : > { %p5272_p6 = por %p135_p3, %p42_p0  ;;  %p142_p7 = scmp.lt.s32.totalorder %s5200_s18, 3 }
   0xc   : > { %s153_s25 = sshll.u32 %s5549_s1, 4  ;;  %s5202_s27 = smov [#allocation7]   ;;  %s154_s25 = int_to_ptr.hbm [resolvable:$true] %s153_s25 }
   0xd   : > { %p5280_p8 = pnand %p3325_p5, %p142_p7  ;;  %s155_s28 = sshll.u32 %s5202_s27, 4  ;;  %s156_s28 = int_to_ptr.vmem [resolvable:$true] %s155_s28 }
   0xe   : > { %s167_s6 = sshll.u32 %s5550_s2, 4  ;;  %s5203_s7 = smov 576   ;;  %s168_s6 = int_to_ptr.hbm [resolvable:$true] %s167_s6 }
   0xf   : > { %p4890_p9 = pneg %p5280_p8  ;;  %s5204_s8 = smov 36  }
  0x10   : > { %s5205_s9 = smov [#allocation9]   ;;  %s5553_s11 = smov 192  }
  0x11   : > { %p5288_p10 = pnand %p4890_p9, %p43_p1  ;;  %s169_s10 = sshll.u32 %s5205_s9, 4  ;;  %s170_s10 = int_to_ptr.vmem [resolvable:$true] %s169_s10 }
  0x12   : > { %s5554_s12 = smov 12   ;;  %s182_s20 = sshll.u32 %s5551_s3, 4  ;;  %s183_s20 = int_to_ptr.hbm [resolvable:$true] %s182_s20 }
  0x13   : > { %4893 = dma.hbm_to_vmem [thread:$0]  (!%p5288_p10), %s154_s25, 27648, %s156_s28, [#allocation8], %s5203_s7, %s5203_s7, %s5204_s8  }
  0x14   : > { %4896 = dma.hbm_to_vmem [thread:$0]  (!%p5288_p10), %s168_s6, 9216, %s170_s10, [#allocation8], %s5553_s11, %s5553_s11, %s5554_s12  }
  0x15   : > { %s5208_s23 = smov [#allocation10]   ;;  %s5309_s25 = sadd.s32 1, %s5200_s18  }
  0x16   : > { %s184_s24 = sshll.u32 %s5208_s23, 4  ;;  %s26_s27 = ssub.s32 %s5200_s18, %s5309_s25  ;;  %s185_s24 = int_to_ptr.vmem [resolvable:$true] %s184_s24 }
  0x17   : > { %4899 = dma.hbm_to_vmem [thread:$0]  (!%p5288_p10), %s183_s20, 48, %s185_s24, [#allocation11]  }
  0x18   : > { %s29_s28 = sadd.s32 1, %s5196_s17  ;;  %p27_p12 = scmp.eq.s32.totalorder %s26_s27, 0 }
  0x19   : > { %p36_p13 = scmp.ne.s32.totalorder %s5196_s17, %s5192_s16  ;;  %p37_p0 = scmp.eq.s32.totalorder %s5200_s18, 0 }
  0x1a   : > { %p4911_p3 = scmp.lt.s32.totalorder %s5200_s18, 2  ;;  %s195_s6 = sand.u32 1, %s5196_s17  }
  0x1b   : > { %s5319_s30 = scalar_select %p27_p12, %s5196_s17, %s29_s28  }
  0x1c   : > { %p38_p5 = por %p37_p0, %p36_p13  ;;  %p5323_p7 = por %p129_p2, %p36_p13 }
  0x1d   : > { %s4870_s29 = smul.u32 24, %s5200_s18  ;;  %s196_s24 = scalar_lea.sflag [#allocation5], %s195_s6 }
  0x1e   : > { %s4869_s7 = smul.u32 24, %s195_s6  ;;  %p5332_p9 = pnand %p4911_p3, %p38_p5 }
  0x1f   : > { %s205_s10 = scalar_lea.hbm %s5548_s0, %s4870_s29  ;;  %s5103_s9 = scalar_lea.hbm %s5548_s0, 48 }
  0x20   : > { %s206_s14 = sshll.u32 %s205_s10, 4  ;;  %s199_s20 = scalar_lea.vmem [#allocation4], %s4869_s7  ;;  %s207_s14 = int_to_ptr.hbm [resolvable:$true] %s206_s14 }
  0x21   : > { %s208_s23 = sshll.u32 %s199_s20, 4  ;;  %s5096_s27 = sshra.s32 %s207_s14, 4  ;;  %s209_s23 = int_to_ptr.vmem [resolvable:$true] %s208_s23  ;;  %s5097_s27 = int_to_ptr.hbm [resolvable:$true] %s5096_s27 }
  0x22   : > { %s5098_s28 = scalar_lea.hbm %s5097_s27, 24  ;;  %p5100_p10 = pneg %p5332_p9 }
  0x23   : > { %p5099_p2 = scmp.ne.s32.totalorder %s5097_s27, %s5098_s28  ;;  %p5104_p0 = scmp.lt.s32.totalorder %s5097_s27, %s5548_s0 }
  0x24   : > { %p5105_p3 = scmp.lt.s32.totalorder %s5103_s9, %s5098_s28 }
  0x25   : > { %p5101_p12 = pnand %p5100_p10, %p5099_p2 }
  0x26   : > { %p5106_p5 = por %p5105_p3, %p5104_p0 }
  0x27   : > { %p5102_p13 = pneg %p5101_p12 }
  0x29   : > { %p5107_p11 = pnand %p5106_p5, %p5102_p13 }
  0x2b   : > { %5110 = shalt.err (!%p5107_p11)
}
  0x2c   : > { %s5561_s6 = smov 12   ;;  %s5562_s7 = smov 192  }
  0x2d   : > { %4903 = dma.hbm_to_vmem [thread:$0]  (!%p5332_p9), %s207_s14, 384, %s209_s23, %s196_s24, %s5562_s7, %s5562_s7, %s5561_s6  }
  0x2e   : > { %220 = sbr.rel (%p5280_p8) target bundleno = 1298 (0x512), region = 36  ;;  %s5352_s10 = sand.u32 (!%p5280_p8), 1, %s5192_s16  }
  0x2f   : > { %s4871_s11 = smul.u32 (!%p5280_p8), 24, %s5352_s10  ;;  %s223_s12 = scalar_lea.sflag (!%p5280_p8), [#allocation5], %s5352_s10 }
  0x31   : > { %s5356_s20 = scalar_lea.vmem (!%p5280_p8), [#allocation4], %s4871_s11 }
  0x33   : > { %5171 = dma.done.wait (%p5267_p4), %s223_s12, 384  }
  0x34   : > { %5173 = vsyncadd (%p5267_p4), %s223_s12, 4294966912 }
  0x35   : > { %5175 = dma.done.wait (%p43_p1), [#allocation8], 36864  }
  0x36   : > { %5177 = vsyncadd (%p43_p1), [#allocation8], 4294930432 }
  0x37   : > { %5179 = dma.done.wait (%p43_p1), [#allocation11], 48  }
  0x38   : > { %5181 = vsyncadd (%p43_p1), [#allocation11], 4294967248  ;;  %v3603_v0 = vld [vmem:[#allocation7 + $0x1f8] sm:$0xf]  ;;  %v4636_v1 = vld [vmem:[#allocation7 + $0x218] sm:$0xf0] }
  0x39   : > { %v3891_v2 = vld [vmem:[#allocation7 + $0x438] sm:$0xf]  ;;  %v3604_v3 = vor.u32 %v4636_v1, %v3603_v0  ;;  %v4708_v4 = vld [vmem:[#allocation7 + $0x458] sm:$0xf0]  ;;  %v3605_v10 = vld [vmem:[#allocation7 + $0x21c] sm:$0xf0] }
  0x3a   : > { %v4179_v5 = vld [vmem:[#allocation7 + $0x678] sm:$0xf]  ;;  %v4780_v6 = vld [vmem:[#allocation7 + $0x698] sm:$0xf0]  ;;  %v3892_v7 = vor.u32 %v4708_v4, %v3891_v2  ;;  %v3567_v11 = vld [vmem:[#allocation7 + $0x1b0] sm:$0xf] }
  0x3b   : > { %v4180_v8 = vor.u32 %v4780_v6, %v4179_v5  ;;  %v4632_v9 = vld [vmem:[#allocation7 + $0x1fc] sm:$0xf]  ;;  %1634 = vmatpush.bf16.msra.mxu0 %v3604_v3  ;;  %v4627_v13 = vld [vmem:[#allocation7 + $0x1d0] sm:$0xf0]  ;;  %v3855_v14 = vld [vmem:[#allocation7 + $0x3f0] sm:$0xf] }
  0x3c   : > { %v3608_v12 = vor.u32 %v4632_v9, %v3605_v10  ;;  %v4699_v15 = vld [vmem:[#allocation7 + $0x410] sm:$0xf0]  ;;  %1648 = vmatpush.bf16.msra.mxu1 %v3892_v7  ;;  %v3568_v16 = vor.u32 %v4627_v13, %v3567_v11  ;;  %v4143_v18 = vld [vmem:[#allocation7 + $0x630] sm:$0xf]  ;;  %v3569_v22 = vld [vmem:[#allocation7 + $0x1d4] sm:$0xf0] }
  0x3d   : > { %1662 = vmatpush.bf16.msra.mxu2 %v4180_v8  ;;  %v3856_v17 = vor.u32 %v4699_v15, %v3855_v14  ;;  %v4771_v19 = vld [vmem:[#allocation7 + $0x650] sm:$0xf0]  ;;  %v3531_v23 = vld [vmem:[#allocation7 + $0x168] sm:$0xf]  ;;  %v4618_v24 = vld [vmem:[#allocation7 + $0x188] sm:$0xf0] }
  0x3e   : > { %v4623_v20 = vld [vmem:[#allocation7 + $0x1b4] sm:$0xf]  ;;  %1676 = vmatpush.bf16.msra.mxu3 %v3608_v12  ;;  %v4144_v21 = vor.u32 %v4771_v19, %v4143_v18  ;;  %v3819_v26 = vld [vmem:[#allocation7 + $0x3a8] sm:$0xf]  ;;  %v4690_v27 = vld [vmem:[#allocation7 + $0x3c8] sm:$0xf0]  ;;  %v3532_v29 = vor.u32 %v4618_v24, %v3531_v23 }
  0x3f   : > { %v3572_v25 = vor.u32 %v4623_v20, %v3569_v22  ;;  %v4107_v28 = vld [vmem:[#allocation7 + $0x5e8] sm:$0xf]  ;;  %1635 = vmatpush.bf16.msra.mxu0 %v3568_v16  ;;  %v4762_v30 = vld [vmem:[#allocation7 + $0x608] sm:$0xf0]  ;;  %v3533_v32 = vld [vmem:[#allocation7 + $0x18c] sm:$0xf0]  ;;  %v3820_v33 = vor.u32 %v4690_v27, %v3819_v26 }
  0x40   : > { %v4614_v31 = vld [vmem:[#allocation7 + $0x16c] sm:$0xf]  ;;  %1649 = vmatpush.bf16.msra.mxu1 %v3856_v17  ;;  %v4108_v34 = vor.u32 %v4762_v30, %v4107_v28  ;;  %v3495_v35 = vld [vmem:[#allocation7 + $0x120] sm:$0xf]  ;;  %v4609_v36 = vld [vmem:[#allocation7 + $0x140] sm:$0xf0] }
  0x41   : > { %1663 = vmatpush.bf16.msra.mxu2 %v4144_v21  ;;  %v3783_v37 = vld [vmem:[#allocation7 + $0x360] sm:$0xf]  ;;  %v3536_v38 = vor.u32 %v4614_v31, %v3533_v32  ;;  %v4681_v39 = vld [vmem:[#allocation7 + $0x380] sm:$0xf0]  ;;  %v3497_v43 = vld [vmem:[#allocation7 + $0x144] sm:$0xf0]  ;;  %v3496_v44 = vor.u32 %v4609_v36, %v3495_v35 }
  0x42   : > { %1677 = vmatpush.bf16.msra.mxu3 %v3572_v25  ;;  %v4071_v40 = vld [vmem:[#allocation7 + $0x5a0] sm:$0xf]  ;;  %v4753_v41 = vld [vmem:[#allocation7 + $0x5c0] sm:$0xf0]  ;;  %v3784_v45 = vor.u32 %v4681_v39, %v3783_v37  ;;  %v3459_v47 = vld [vmem:[#allocation7 + $0xd8] sm:$0xf] }
  0x43   : > { %v4605_v42 = vld [vmem:[#allocation7 + $0x124] sm:$0xf]  ;;  %1636 = vmatpush.bf16.msra.mxu0 %v3532_v29  ;;  %v4072_v46 = vor.u32 %v4753_v41, %v4071_v40  ;;  %v4600_v48 = vld [vmem:[#allocation7 + $0xf8] sm:$0xf0]  ;;  %v3747_v49 = vld [vmem:[#allocation7 + $0x318] sm:$0xf] }
  0x44   : > { %1650 = vmatpush.bf16.msra.mxu1 %v3820_v33  ;;  %v3500_v50 = vor.u32 %v4605_v42, %v3497_v43  ;;  %v4672_v51 = vld [vmem:[#allocation7 + $0x338] sm:$0xf0]  ;;  %v4035_v52 = vld [vmem:[#allocation7 + $0x558] sm:$0xf]  ;;  %v3461_v55 = vld [vmem:[#allocation7 + $0xfc] sm:$0xf0]  ;;  %v3460_v56 = vor.u32 %v4600_v48, %v3459_v47 }
  0x45   : > { %1664 = vmatpush.bf16.msra.mxu2 %v4108_v34  ;;  %v4744_v53 = vld [vmem:[#allocation7 + $0x578] sm:$0xf0]  ;;  %v3748_v57 = vor.u32 %v4672_v51, %v3747_v49  ;;  %v3423_v59 = vld [vmem:[#allocation7 + $0x90] sm:$0xf]  ;;  %v4591_v60 = vld [vmem:[#allocation7 + $0xb0] sm:$0xf0] }
  0x46   : > { %1678 = vmatpush.bf16.msra.mxu3 %v3536_v38  ;;  %v4596_v54 = vld [vmem:[#allocation7 + $0xdc] sm:$0xf]  ;;  %v4036_v58 = vor.u32 %v4744_v53, %v4035_v52  ;;  %v3711_v61 = vld [vmem:[#allocation7 + $0x2d0] sm:$0xf]  ;;  %v4663_v63 = vld [vmem:[#allocation7 + $0x2f0] sm:$0xf0]  ;;  %v3424_v4 = vor.u32 %v4591_v60, %v3423_v59 }
  0x47   : > { %1637 = vmatpush.bf16.msra.mxu0 %v3496_v44  ;;  %v3464_v62 = vor.u32 %v4596_v54, %v3461_v55  ;;  %v3999_v0 = vld [vmem:[#allocation7 + $0x510] sm:$0xf]  ;;  %v4735_v1 = vld [vmem:[#allocation7 + $0x530] sm:$0xf0]  ;;  %v3425_v3 = vld [vmem:[#allocation7 + $0xb4] sm:$0xf0]  ;;  %v3712_v5 = vor.u32 %v4663_v63, %v3711_v61 }
  0x48   : > { %1651 = vmatpush.bf16.msra.mxu1 %v3784_v45  ;;  %v4587_v2 = vld [vmem:[#allocation7 + $0x94] sm:$0xf]  ;;  %v4000_v6 = vor.u32 %v4735_v1, %v3999_v0  ;;  %v3387_v7 = vld [vmem:[#allocation7 + $0x48] sm:$0xf]  ;;  %v4582_v8 = vld [vmem:[#allocation7 + $0x68] sm:$0xf0] }
  0x49   : > { %1665 = vmatpush.bf16.msra.mxu2 %v4072_v46  ;;  %v3675_v9 = vld [vmem:[#allocation7 + $0x288] sm:$0xf]  ;;  %v3428_v10 = vor.u32 %v4587_v2, %v3425_v3  ;;  %v4654_v11 = vld [vmem:[#allocation7 + $0x2a8] sm:$0xf0]  ;;  %v3389_v15 = vld [vmem:[#allocation7 + $0x6c] sm:$0xf0]  ;;  %v3388_v16 = vor.u32 %v4582_v8, %v3387_v7 }
  0x4a   : > { %1679 = vmatpush.bf16.msra.mxu3 %v3500_v50  ;;  %v3963_v12 = vld [vmem:[#allocation7 + $0x4c8] sm:$0xf]  ;;  %v4726_v13 = vld [vmem:[#allocation7 + $0x4e8] sm:$0xf0]  ;;  %v3351_v17 = vld [vmem:[#allocation7] sm:$0xf]  ;;  %v3676_v19 = vor.u32 %v4654_v11, %v3675_v9 }
  0x4b   : > { %1638 = vmatpush.bf16.msra.mxu0 %v3460_v56  ;;  %v4578_v14 = vld [vmem:[#allocation7 + $0x4c] sm:$0xf]  ;;  %v4573_v18 = vld [vmem:[#allocation7 + $0x20] sm:$0xf0]  ;;  %v3964_v20 = vor.u32 %v4726_v13, %v3963_v12  ;;  %v3639_v21 = vld [vmem:[#allocation7 + $0x240] sm:$0xf] }
  0x4c   : > { %1652 = vmatpush.bf16.msra.mxu1 %v3748_v57  ;;  %v4645_v22 = vld [vmem:[#allocation7 + $0x260] sm:$0xf0]  ;;  %v3927_v23 = vld [vmem:[#allocation7 + $0x480] sm:$0xf]  ;;  %v3392_v24 = vor.u32 %v4578_v14, %v3389_v15  ;;  %v3353_v27 = vld [vmem:[#allocation7 + $0x24] sm:$0xf0]  ;;  %v3352_v31 = vor.u32 %v4573_v18, %v3351_v17 }
  0x4d   : > { %1666 = vmatpush.bf16.msra.mxu2 %v4036_v58  ;;  %v4717_v25 = vld [vmem:[#allocation7 + $0x4a0] sm:$0xf0]  ;;  %v4704_v28 = vld [vmem:[#allocation7 + $0x43c] sm:$0xf]  ;;  %v3893_v29 = vld [vmem:[#allocation7 + $0x45c] sm:$0xf0]  ;;  %v3640_v35 = vor.u32 %v4645_v22, %v3639_v21 }
  0x4e   : > { %1680 = vmatpush.bf16.msra.mxu3 %v3464_v62  ;;  %v4569_v26 = vld [vmem:[#allocation7 + $0x4] sm:$0xf]  ;;  %v4776_v30 = vld [vmem:[#allocation7 + $0x67c] sm:$0xf]  ;;  %v4181_v32 = vld [vmem:[#allocation7 + $0x69c] sm:$0xf0]  ;;  %v3928_v36 = vor.u32 %v4717_v25, %v3927_v23  ;;  %v3896_v40 = vor.u32 %v4704_v28, %v3893_v29 }
  0x4f   : > { %1639 = vmatpush.bf16.msra.mxu0 %v3424_v4  ;;  %v3611_v33 = vld [vmem:[#allocation7 + $0x200] sm:$0xf]  ;;  %v4637_v34 = vld [vmem:[#allocation7 + $0x220] sm:$0xf0]  ;;  %v3356_v39 = vor.u32 %v4569_v26, %v3353_v27  ;;  %v4695_v41 = vld [vmem:[#allocation7 + $0x3f4] sm:$0xf]  ;;  %v4184_v42 = vor.u32 %v4776_v30, %v4181_v32 }
  0x50   : > { %1653 = vmatpush.bf16.msra.mxu1 %v3712_v5  ;;  %v3899_v37 = vld [vmem:[#allocation7 + $0x440] sm:$0xf]  ;;  %v4709_v38 = vld [vmem:[#allocation7 + $0x460] sm:$0xf0]  ;;  %v3612_v43 = vor.u32 %v4637_v34, %v3611_v33  ;;  %v3857_v44 = vld [vmem:[#allocation7 + $0x414] sm:$0xf0] }
  0x51   : > { %1667 = vmatpush.bf16.msra.mxu2 %v4000_v6  ;;  %v4767_v45 = vld [vmem:[#allocation7 + $0x634] sm:$0xf]  ;;  %v4145_v46 = vld [vmem:[#allocation7 + $0x654] sm:$0xf0]  ;;  %v3900_v47 = vor.u32 %v4709_v38, %v3899_v37  ;;  %v4628_v49 = vld [vmem:[#allocation7 + $0x1d8] sm:$0xf0]  ;;  %v3860_v54 = vor.u32 %v4695_v41, %v3857_v44 }
  0x52   : > { %1681 = vmatpush.bf16.msra.mxu3 %v3428_v10  ;;  %v3575_v48 = vld [vmem:[#allocation7 + $0x1b8] sm:$0xf]  ;;  %v4700_v51 = vld [vmem:[#allocation7 + $0x418] sm:$0xf0]  ;;  %v3339_v52 = vld [vmem:[%s5356_s20] sm:$0xf]  ;;  %v4148_v59 = vor.u32 %v4767_v45, %v4145_v46 }
  0x53   : > { %1640 = vmatpush.bf16.msra.mxu0 %v3388_v16  ;;  %v3863_v50 = vld [vmem:[#allocation7 + $0x3f8] sm:$0xf]  ;;  %v4567_v53 = vld [vmem:[%s5356_s20 + $0x8] sm:$0xf0]  ;;  %v4686_v55 = vld [vmem:[#allocation7 + $0x3ac] sm:$0xf]  ;;  %v3576_v60 = vor.u32 %v4628_v49, %v3575_v48 }
  0x54   : > { %1654 = vmatpush.bf16.msra.mxu1 %v3676_v19  ;;  %v3821_v56 = vld [vmem:[#allocation7 + $0x3cc] sm:$0xf0]  ;;  %v4758_v57 = vld [vmem:[#allocation7 + $0x5ec] sm:$0xf]  ;;  %v5372_v58 = vor.u32 %v4567_v53, %v3339_v52  ;;  %v4619_v63 = vld [vmem:[#allocation7 + $0x190] sm:$0xf0]  ;;  %v3864_v0 = vor.u32 %v4700_v51, %v3863_v50 }
  0x55   : > { %1668 = vmatpush.bf16.msra.mxu2 %v3964_v20  ;;  %v4109_v61 = vld [vmem:[#allocation7 + $0x60c] sm:$0xf0]  ;;  %v4566_v2 = vld [vmem:[%s5356_s20 + $0x4] sm:$0xf]  ;;  %v3341_v3 = vld [vmem:[%s5356_s20 + $0xc] sm:$0xf0]  ;;  %v3824_v8 = vor.u32 %v4686_v55, %v3821_v56 }
  0x56   : > { %1682 = vmatpush.bf16.msra.mxu3 %v3392_v24  ;;  %v3539_v62 = vld [vmem:[#allocation7 + $0x170] sm:$0xf]  ;;  %v4691_v4 = vld [vmem:[#allocation7 + $0x3d0] sm:$0xf0]  ;;  %v5377_v5 = vor.u32 %v4566_v2, %v3341_v3  ;;  %v4568_v7 = vld [vmem:[%s5356_s20 + $0x10] sm:$0xf0]  ;;  %v4112_v10 = vor.u32 %v4758_v57, %v4109_v61 }
  0x57   : > { %1641 = vmatpush.bf16.msra.mxu0 %v3352_v31  ;;  %v3827_v1 = vld [vmem:[#allocation7 + $0x3b0] sm:$0xf]  ;;  %v3540_v11 = vor.u32 %v4619_v63, %v3539_v62  ;;  %v4677_v12 = vld [vmem:[#allocation7 + $0x364] sm:$0xf]  ;;  %v3785_v13 = vld [vmem:[#allocation7 + $0x384] sm:$0xf0] }
  0x58   : > { %1655 = vmatpush.bf16.msra.mxu1 %v3640_v35  ;;  %v3347_v6 = vld [vmem:[%s5356_s20 + $0x8] sm:$0xf]  ;;  %v4749_v14 = vld [vmem:[#allocation7 + $0x5a4] sm:$0xf]  ;;  %v3828_v15 = vor.u32 %v4691_v4, %v3827_v1  ;;  %v4073_v16 = vld [vmem:[#allocation7 + $0x5c4] sm:$0xf0]  ;;  %v3788_v21 = vor.u32 %v4677_v12, %v3785_v13 }
  0x59   : > { %1669 = vmatpush.bf16.msra.mxu2 %v3928_v36  ;;  %v5382_v9 = vor.u32 %v4568_v7, %v3347_v6  ;;  %v3503_v17 = vld [vmem:[#allocation7 + $0x128] sm:$0xf]  ;;  %v4610_v18 = vld [vmem:[#allocation7 + $0x148] sm:$0xf0]  ;;  %v4076_v22 = vor.u32 %v4749_v14, %v4073_v16  ;;  %v4668_v24 = vld [vmem:[#allocation7 + $0x31c] sm:$0xf] }
  0x5a   : > { %1683 = vmatpush.bf16.msra.mxu3 %v3356_v39  ;;  %1642 = vmatmul.bf16.vlgmr.msra.gmra.mxu0 %v5372_v58  ;;  %v3791_v19 = vld [vmem:[#allocation7 + $0x368] sm:$0xf]  ;;  %v4682_v20 = vld [vmem:[#allocation7 + $0x388] sm:$0xf0]  ;;  %v3504_v23 = vor.u32 %v4610_v18, %v3503_v17  ;;  %v3749_v25 = vld [vmem:[#allocation7 + $0x33c] sm:$0xf0] }
  0x5b   : > { %1690 = vmatpush.bf16.msrb.mxu0 %v3896_v40  ;;  %1656 = vmatmul.bf16.vlgmr.msra.gmra.mxu1 %v5377_v5  ;;  %v4740_v26 = vld [vmem:[#allocation7 + $0x55c] sm:$0xf]  ;;  %v3792_v27 = vor.u32 %v4682_v20, %v3791_v19  ;;  %v4037_v28 = vld [vmem:[#allocation7 + $0x57c] sm:$0xf0]  ;;  %v4601_v30 = vld [vmem:[#allocation7 + $0x100] sm:$0xf0]  ;;  %v3752_v33 = vor.u32 %v4668_v24, %v3749_v25 }
  0x5c   : > { %1704 = vmatpush.bf16.msrb.mxu1 %v4184_v42  ;;  %1670 = vmatmul.bf16.vlgmr.msra.gmra.mxu2 %v5382_v9  ;;  %v3467_v29 = vld [vmem:[#allocation7 + $0xe0] sm:$0xf]  ;;  %v4673_v32 = vld [vmem:[#allocation7 + $0x340] sm:$0xf0]  ;;  %v4040_v34 = vor.u32 %v4740_v26, %v4037_v28  ;;  %v4659_v36 = vld [vmem:[#allocation7 + $0x2d4] sm:$0xf] }
  0x5d   : > { %1718 = vmatpush.bf16.msrb.mxu2 %v3612_v43  ;;  %1684 = vmatmul.bf16.vlgmr.msra.gmra.mxu3 %v5372_v58  ;;  %v3755_v31 = vld [vmem:[#allocation7 + $0x320] sm:$0xf]  ;;  %v3468_v35 = vor.u32 %v4601_v30, %v3467_v29  ;;  %v3713_v37 = vld [vmem:[#allocation7 + $0x2f4] sm:$0xf0]  ;;  %v4731_v38 = vld [vmem:[#allocation7 + $0x514] sm:$0xf] }
  0x5e   : > { %1732 = vmatpush.bf16.msrb.mxu3 %v3900_v47  ;;  %v3756_v39 = vor.u32 %v4673_v32, %v3755_v31  ;;  %v4001_v40 = vld [vmem:[#allocation7 + $0x534] sm:$0xf0]  ;;  %v4592_v42 = vld [vmem:[#allocation7 + $0xb8] sm:$0xf0]  ;;  %v3716_v45 = vor.u32 %v4659_v36, %v3713_v37  ;;  %v4650_v48 = vld [vmem:[#allocation7 + $0x28c] sm:$0xf] }
  0x5f   : > { %1691 = vmatpush.bf16.msrb.mxu0 %v3860_v54  ;;  %v3431_v41 = vld [vmem:[#allocation7 + $0x98] sm:$0xf]  ;;  %v4664_v44 = vld [vmem:[#allocation7 + $0x2f8] sm:$0xf0]  ;;  %v4004_v46 = vor.u32 %v4731_v38, %v4001_v40  ;;  %v3677_v49 = vld [vmem:[#allocation7 + $0x2ac] sm:$0xf0] }
  0x60   : > { %1705 = vmatpush.bf16.msrb.mxu1 %v4148_v59  ;;  %v3719_v43 = vld [vmem:[#allocation7 + $0x2d8] sm:$0xf]  ;;  %v3432_v47 = vor.u32 %v4592_v42, %v3431_v41  ;;  %v4722_v50 = vld [vmem:[#allocation7 + $0x4cc] sm:$0xf]  ;;  %v3965_v52 = vld [vmem:[#allocation7 + $0x4ec] sm:$0xf0]  ;;  %v3680_v57 = vor.u32 %v4650_v48, %v3677_v49 }
  0x61   : > { %1719 = vmatpush.bf16.msrb.mxu2 %v3576_v60  ;;  %v3720_v51 = vor.u32 %v4664_v44, %v3719_v43  ;;  %v3395_v53 = vld [vmem:[#allocation7 + $0x50] sm:$0xf]  ;;  %v4583_v54 = vld [vmem:[#allocation7 + $0x70] sm:$0xf0]  ;;  %v4641_v59 = vld [vmem:[#allocation7 + $0x244] sm:$0xf]  ;;  %v3968_v61 = vor.u32 %v4722_v50, %v3965_v52 }
  0x62   : > { %1733 = vmatpush.bf16.msrb.mxu3 %v3864_v0  ;;  %v3683_v55 = vld [vmem:[#allocation7 + $0x290] sm:$0xf]  ;;  %v4655_v56 = vld [vmem:[#allocation7 + $0x2b0] sm:$0xf0]  ;;  %v3641_v60 = vld [vmem:[#allocation7 + $0x264] sm:$0xf0]  ;;  %v3396_v62 = vor.u32 %v4583_v54, %v3395_v53 }
  0x63   : > { %1692 = vmatpush.bf16.msrb.mxu0 %v3824_v8  ;;  %v4713_v63 = vld [vmem:[#allocation7 + $0x484] sm:$0xf]  ;;  %v3929_v0 = vld [vmem:[#allocation7 + $0x4a4] sm:$0xf0]  ;;  %v3684_v2 = vor.u32 %v4655_v56, %v3683_v55  ;;  %v4574_v3 = vld [vmem:[#allocation7 + $0x28] sm:$0xf0] }
  0x64   : > { %1706 = vmatpush.bf16.msrb.mxu1 %v4112_v10  ;;  %v3359_v1 = vld [vmem:[#allocation7 + $0x8] sm:$0xf]  ;;  %v4646_v6 = vld [vmem:[#allocation7 + $0x268] sm:$0xf0]  ;;  %v4187_v7 = vld [vmem:[#allocation7 + $0x680] sm:$0xf] }
  0x65   : > { %1720 = vmatpush.bf16.msrb.mxu2 %v3540_v11  ;;  %v3647_v4 = vld [vmem:[#allocation7 + $0x248] sm:$0xf]  ;;  %v4781_v8 = vld [vmem:[#allocation7 + $0x6a0] sm:$0xf0]  ;;  %v3644_v11 = vor.u32 %v4641_v59, %v3641_v60  ;;  %v3360_v16 = vor.u32 %v4574_v3, %v3359_v1  ;;  %v4772_v24 = vld [vmem:[#allocation7 + $0x658] sm:$0xf0] }
  0x66   : > { %1734 = vmatpush.bf16.msrb.mxu3 %v3828_v15  ;;  %v4633_v10 = vld [vmem:[#allocation7 + $0x204] sm:$0xf]  ;;  %v3613_v12 = vld [vmem:[#allocation7 + $0x224] sm:$0xf0]  ;;  %v3932_v15 = vor.u32 %v4713_v63, %v3929_v0  ;;  %v3648_v19 = vor.u32 %v4646_v6, %v3647_v4  ;;  %v4188_v20 = vor.u32 %v4781_v8, %v4187_v7  ;;  %v4624_v25 = vld [vmem:[#allocation7 + $0x1bc] sm:$0xf] }
  0x67   : > { %1693 = vmatpush.bf16.msrb.mxu0 %v3788_v21  ;;  %v4705_v13 = vld [vmem:[#allocation7 + $0x444] sm:$0xf]  ;;  %v3901_v14 = vld [vmem:[#allocation7 + $0x464] sm:$0xf0]  ;;  %v3616_v21 = vor.u32 %v4633_v10, %v3613_v12  ;;  %v4696_v28 = vld [vmem:[#allocation7 + $0x3fc] sm:$0xf] }
  0x68   : > { %1707 = vmatpush.bf16.msrb.mxu1 %v4076_v22  ;;  %v4777_v17 = vld [vmem:[#allocation7 + $0x684] sm:$0xf]  ;;  %v4189_v18 = vld [vmem:[#allocation7 + $0x6a4] sm:$0xf0]  ;;  %v3904_v22 = vor.u32 %v4705_v13, %v3901_v14  ;;  %v3865_v29 = vld [vmem:[#allocation7 + $0x41c] sm:$0xf0] }
  0x69   : > { %1721 = vmatpush.bf16.msrb.mxu2 %v3504_v23  ;;  %v4151_v23 = vld [vmem:[#allocation7 + $0x638] sm:$0xf]  ;;  %v4192_v26 = vor.u32 %v4777_v17, %v4189_v18  ;;  %v4768_v30 = vld [vmem:[#allocation7 + $0x63c] sm:$0xf]  ;;  %v4153_v31 = vld [vmem:[#allocation7 + $0x65c] sm:$0xf0] }
  0x6a   : > { %1735 = vmatpush.bf16.msrb.mxu3 %v3792_v27  ;;  %v3577_v27 = vld [vmem:[#allocation7 + $0x1dc] sm:$0xf0]  ;;  %v4152_v32 = vor.u32 %v4772_v24, %v4151_v23  ;;  %v4763_v36 = vld [vmem:[#allocation7 + $0x610] sm:$0xf0]  ;;  %v4156_v38 = vor.u32 %v4768_v30, %v4153_v31  ;;  %v3829_v41 = vld [vmem:[#allocation7 + $0x3d4] sm:$0xf0] }
  0x6b   : > { %1694 = vmatpush.bf16.msrb.mxu0 %v3752_v33  ;;  %v3580_v33 = vor.u32 %v4624_v25, %v3577_v27  ;;  %v4615_v37 = vld [vmem:[#allocation7 + $0x174] sm:$0xf]  ;;  %v4117_v43 = vld [vmem:[#allocation7 + $0x614] sm:$0xf0]  ;;  %v4754_v48 = vld [vmem:[#allocation7 + $0x5c8] sm:$0xf0] }
  0x6c   : > { %1708 = vmatpush.bf16.msrb.mxu1 %v4040_v34  ;;  %v3868_v34 = vor.u32 %v4696_v28, %v3865_v29  ;;  %v4687_v40 = vld [vmem:[#allocation7 + $0x3b4] sm:$0xf]  ;;  %v4606_v49 = vld [vmem:[#allocation7 + $0x12c] sm:$0xf]  ;;  %v3793_v53 = vld [vmem:[#allocation7 + $0x38c] sm:$0xf0] }
  0x6d   : > { %1722 = vmatpush.bf16.msrb.mxu2 %v3468_v35  ;;  %v4115_v35 = vld [vmem:[#allocation7 + $0x5f0] sm:$0xf]  ;;  %v4759_v42 = vld [vmem:[#allocation7 + $0x5f4] sm:$0xf]  ;;  %v4678_v52 = vld [vmem:[#allocation7 + $0x36c] sm:$0xf] }
  0x6e   : > { %1736 = vmatpush.bf16.msrb.mxu3 %v3756_v39  ;;  %v3541_v39 = vld [vmem:[#allocation7 + $0x194] sm:$0xf0]  ;;  %v4116_v44 = vor.u32 %v4763_v36, %v4115_v35  ;;  %v4120_v50 = vor.u32 %v4759_v42, %v4117_v43  ;;  %v4750_v54 = vld [vmem:[#allocation7 + $0x5ac] sm:$0xf]  ;;  %v4081_v55 = vld [vmem:[#allocation7 + $0x5cc] sm:$0xf0]  ;;  %v3796_v59 = vor.u32 %v4678_v52, %v3793_v53 }
  0x6f   : > { %1695 = vmatpush.bf16.msrb.mxu0 %v3716_v45  ;;  %v3544_v45 = vor.u32 %v4615_v37, %v3541_v39  ;;  %v4043_v60 = vld [vmem:[#allocation7 + $0x560] sm:$0xf]  ;;  %v4084_v63 = vor.u32 %v4750_v54, %v4081_v55  ;;  %v3469_v0 = vld [vmem:[#allocation7 + $0x104] sm:$0xf0]  ;;  %v4669_v1 = vld [vmem:[#allocation7 + $0x324] sm:$0xf] }
  0x70   : > { %1709 = vmatpush.bf16.msrb.mxu1 %v4004_v46  ;;  %v3832_v46 = vor.u32 %v4687_v40, %v3829_v41  ;;  %v4741_v3 = vld [vmem:[#allocation7 + $0x564] sm:$0xf]  ;;  %v4045_v4 = vld [vmem:[#allocation7 + $0x584] sm:$0xf0]  ;;  %v4007_v10 = vld [vmem:[#allocation7 + $0x518] sm:$0xf] }
  0x71   : > { %1723 = vmatpush.bf16.msrb.mxu2 %v3432_v47  ;;  %v4079_v47 = vld [vmem:[#allocation7 + $0x5a8] sm:$0xf]  ;;  %v4588_v12 = vld [vmem:[#allocation7 + $0x9c] sm:$0xf]  ;;  %v4048_v13 = vor.u32 %v4741_v3, %v4045_v4  ;;  %v3433_v14 = vld [vmem:[#allocation7 + $0xbc] sm:$0xf0] }
  0x72   : > { %1737 = vmatpush.bf16.msrb.mxu3 %v3720_v51  ;;  %v3505_v51 = vld [vmem:[#allocation7 + $0x14c] sm:$0xf0]  ;;  %v4080_v56 = vor.u32 %v4754_v48, %v4079_v47  ;;  %v4732_v17 = vld [vmem:[#allocation7 + $0x51c] sm:$0xf]  ;;  %v4009_v18 = vld [vmem:[#allocation7 + $0x53c] sm:$0xf0] }
  0x73   : > { %1696 = vmatpush.bf16.msrb.mxu0 %v3680_v57  ;;  %v3508_v57 = vor.u32 %v4606_v49, %v3505_v51  ;;  %v4727_v23 = vld [vmem:[#allocation7 + $0x4f0] sm:$0xf0]  ;;  %v4012_v25 = vor.u32 %v4732_v17, %v4009_v18  ;;  %v3685_v28 = vld [vmem:[#allocation7 + $0x2b4] sm:$0xf0]  ;;  %v4718_v35 = vld [vmem:[#allocation7 + $0x4a8] sm:$0xf0] }
  0x74   : > { %1710 = vmatpush.bf16.msrb.mxu1 %v3968_v61  ;;  %v4745_v61 = vld [vmem:[#allocation7 + $0x580] sm:$0xf0]  ;;  %v4579_v24 = vld [vmem:[#allocation7 + $0x54] sm:$0xf]  ;;  %v3973_v30 = vld [vmem:[#allocation7 + $0x4f4] sm:$0xf0] }
  0x75   : > { %1724 = vmatpush.bf16.msrb.mxu2 %v3396_v62  ;;  %v4597_v62 = vld [vmem:[#allocation7 + $0xe4] sm:$0xf]  ;;  %v4044_v6 = vor.u32 %v4745_v61, %v4043_v60  ;;  %v4651_v27 = vld [vmem:[#allocation7 + $0x294] sm:$0xf]  ;;  %v4570_v36 = vld [vmem:[#allocation7 + $0xc] sm:$0xf] }
  0x76   : > { %1738 = vmatpush.bf16.msrb.mxu3 %v3684_v2  ;;  %v3757_v2 = vld [vmem:[#allocation7 + $0x344] sm:$0xf0]  ;;  %v3472_v7 = vor.u32 %v4597_v62, %v3469_v0  ;;  %v4723_v29 = vld [vmem:[#allocation7 + $0x4d4] sm:$0xf]  ;;  %v3361_v37 = vld [vmem:[#allocation7 + $0x2c] sm:$0xf0] }
  0x77   : > { %1697 = vmatpush.bf16.msrb.mxu0 %v3644_v11  ;;  %v3760_v8 = vor.u32 %v4669_v1, %v3757_v2  ;;  %v4736_v11 = vld [vmem:[#allocation7 + $0x538] sm:$0xf0]  ;;  %v4642_v39 = vld [vmem:[#allocation7 + $0x24c] sm:$0xf]  ;;  %v3649_v40 = vld [vmem:[#allocation7 + $0x26c] sm:$0xf0]  ;;  %v3364_v48 = vor.u32 %v4570_v36, %v3361_v37 }
  0x78   : > { %1711 = vmatpush.bf16.msrb.mxu1 %v3932_v15  ;;  %v4660_v15 = vld [vmem:[#allocation7 + $0x2dc] sm:$0xf]  ;;  %v4714_v41 = vld [vmem:[#allocation7 + $0x48c] sm:$0xf]  ;;  %v3937_v42 = vld [vmem:[#allocation7 + $0x4ac] sm:$0xf0]  ;;  %v3652_v49 = vor.u32 %v4642_v39, %v3649_v40 }
  0x79   : > { %1725 = vmatpush.bf16.msrb.mxu2 %v3360_v16  ;;  %v3721_v16 = vld [vmem:[#allocation7 + $0x2fc] sm:$0xf0]  ;;  %v3619_v43 = vld [vmem:[#allocation7 + $0x208] sm:$0xf]  ;;  %v4710_v47 = vld [vmem:[#allocation7 + $0x468] sm:$0xf0] }
  0x7a   : > { %1739 = vmatpush.bf16.msrb.mxu3 %v3648_v19  ;;  %1698 = vmatmul.bf16.vlgmr.msrb.gmra.mxu0 %v5377_v5  ;;  %v4008_v19 = vor.u32 %v4736_v11, %v4007_v10  ;;  %v3583_v52 = vld [vmem:[#allocation7 + $0x1c0] sm:$0xf]  ;;  %v4195_v53 = vld [vmem:[#allocation7 + $0x688] sm:$0xf]  ;;  %v4782_v54 = vld [vmem:[#allocation7 + $0x6a8] sm:$0xf0] }
  0x7b   : > { %1746 = vmatpush.bf16.msra.mxu0 %v4188_v20  ;;  %1712 = vmatmul.bf16.vlgmr.msrb.gmra.mxu1 %v5382_v9  ;;  %v3436_v20 = vor.u32 %v4588_v12, %v3433_v14  ;;  %v3871_v60 = vld [vmem:[#allocation7 + $0x400] sm:$0xf]  ;;  %v4701_v61 = vld [vmem:[#allocation7 + $0x420] sm:$0xf0]  ;;  %v4196_v62 = vor.u32 %v4782_v54, %v4195_v53  ;;  %v3547_v0 = vld [vmem:[#allocation7 + $0x178] sm:$0xf] }
  0x7c   : > { %1760 = vmatpush.bf16.msra.mxu1 %v3616_v21  ;;  %1726 = vmatmul.bf16.vlgmr.msrb.gmra.mxu2 %v5372_v58  ;;  %v3724_v21 = vor.u32 %v4660_v15, %v3721_v16  ;;  %v4159_v2 = vld [vmem:[#allocation7 + $0x640] sm:$0xf]  ;;  %v4773_v3 = vld [vmem:[#allocation7 + $0x660] sm:$0xf0]  ;;  %v3872_v4 = vor.u32 %v4701_v61, %v3871_v60  ;;  %v3835_v10 = vld [vmem:[#allocation7 + $0x3b8] sm:$0xf] }
  0x7d   : > { %1774 = vmatpush.bf16.msra.mxu2 %v3904_v22  ;;  %1740 = vmatmul.bf16.vlgmr.msrb.gmra.mxu3 %v5377_v5  ;;  %v3971_v22 = vld [vmem:[#allocation7 + $0x4d0] sm:$0xf]  ;;  %v4692_v11 = vld [vmem:[#allocation7 + $0x3d8] sm:$0xf0]  ;;  %v4160_v12 = vor.u32 %v4773_v3, %v4159_v2  ;;  %v4123_v16 = vld [vmem:[#allocation7 + $0x5f8] sm:$0xf] }
  0x7e   : > { %1788 = vmatpush.bf16.msra.mxu3 %v4192_v26  ;;  %v3397_v26 = vld [vmem:[#allocation7 + $0x74] sm:$0xf0]  ;;  %v3972_v31 = vor.u32 %v4727_v23, %v3971_v22  ;;  %v3511_v14 = vld [vmem:[#allocation7 + $0x130] sm:$0xf]  ;;  %v4764_v17 = vld [vmem:[#allocation7 + $0x618] sm:$0xf0]  ;;  %v3836_v18 = vor.u32 %v4692_v11, %v3835_v10 }
  0x7f   : > { %1747 = vmatpush.bf16.msra.mxu0 %v4152_v32  ;;  %v3935_v32 = vld [vmem:[#allocation7 + $0x488] sm:$0xf]  ;;  %v3799_v22 = vld [vmem:[#allocation7 + $0x370] sm:$0xf]  ;;  %v4683_v23 = vld [vmem:[#allocation7 + $0x390] sm:$0xf0] }
  0x80   : > { %1761 = vmatpush.bf16.msra.mxu1 %v3580_v33  ;;  %v3400_v33 = vor.u32 %v4579_v24, %v3397_v26  ;;  %v4124_v24 = vor.u32 %v4764_v17, %v4123_v16  ;;  %v3475_v26 = vld [vmem:[#allocation7 + $0xe8] sm:$0xf]  ;;  %v4737_v53 = vld [vmem:[#allocation7 + $0x540] sm:$0xf0]  ;;  %v4656_v60 = vld [vmem:[#allocation7 + $0x2b8] sm:$0xf0] }
  0x81   : > { %1775 = vmatpush.bf16.msra.mxu2 %v3868_v34  ;;  %v3688_v34 = vor.u32 %v4651_v27, %v3685_v28  ;;  %v4087_v28 = vld [vmem:[#allocation7 + $0x5b0] sm:$0xf]  ;;  %v4051_v40 = vld [vmem:[#allocation7 + $0x568] sm:$0xf]  ;;  %v3979_v2 = vld [vmem:[#allocation7 + $0x4d8] sm:$0xf] }
  0x82   : > { %1789 = vmatpush.bf16.msra.mxu3 %v4156_v38  ;;  %v3976_v38 = vor.u32 %v4723_v29, %v3973_v30  ;;  %v4755_v29 = vld [vmem:[#allocation7 + $0x5d0] sm:$0xf0]  ;;  %v3800_v30 = vor.u32 %v4683_v23, %v3799_v22  ;;  %v3367_v61 = vld [vmem:[#allocation7 + $0x10] sm:$0xf]  ;;  %v4728_v3 = vld [vmem:[#allocation7 + $0x4f8] sm:$0xf0] }
  0x83   : > { %1748 = vmatpush.bf16.msra.mxu0 %v4116_v44  ;;  %v4638_v44 = vld [vmem:[#allocation7 + $0x228] sm:$0xf0]  ;;  %v4088_v36 = vor.u32 %v4755_v29, %v4087_v28  ;;  %v3909_v10 = vld [vmem:[#allocation7 + $0x46c] sm:$0xf0]  ;;  %v4697_v22 = vld [vmem:[#allocation7 + $0x404] sm:$0xf] }
  0x84   : > { %1762 = vmatpush.bf16.msra.mxu1 %v3544_v45  ;;  %v3936_v45 = vor.u32 %v4718_v35, %v3935_v32  ;;  %v3620_v51 = vor.u32 %v4638_v44, %v3619_v43  ;;  %v4607_v32 = vld [vmem:[#allocation7 + $0x134] sm:$0xf]  ;;  %v4674_v35 = vld [vmem:[#allocation7 + $0x348] sm:$0xf0]  ;;  %v4593_v43 = vld [vmem:[#allocation7 + $0xc0] sm:$0xf0] }
  0x85   : > { %1776 = vmatpush.bf16.msra.mxu2 %v3832_v46  ;;  %v3907_v46 = vld [vmem:[#allocation7 + $0x448] sm:$0xf]  ;;  %v4598_v44 = vld [vmem:[#allocation7 + $0xec] sm:$0xf]  ;;  %v3655_v11 = vld [vmem:[#allocation7 + $0x250] sm:$0xf] }
  0x86   : > { %1790 = vmatpush.bf16.msra.mxu3 %v4120_v50  ;;  %v3940_v50 = vor.u32 %v4714_v41, %v3937_v42  ;;  %v3908_v55 = vor.u32 %v4710_v47, %v3907_v46  ;;  %v4746_v41 = vld [vmem:[#allocation7 + $0x588] sm:$0xf0]  ;;  %v3727_v46 = vld [vmem:[#allocation7 + $0x2e0] sm:$0xf]  ;;  %v4665_v47 = vld [vmem:[#allocation7 + $0x300] sm:$0xf0] }
  0x87   : > { %1749 = vmatpush.bf16.msra.mxu0 %v4080_v56  ;;  %v4629_v56 = vld [vmem:[#allocation7 + $0x1e0] sm:$0xf0]  ;;  %v3728_v54 = vor.u32 %v4665_v47, %v3727_v46  ;;  %v4571_v23 = vld [vmem:[#allocation7 + $0x14] sm:$0xf]  ;;  %vm2048_vm0 = vcmask 523264   ;;  %s5209_s21 = smov 64  }
  0x88   : > { %1763 = vmatpush.bf16.msra.mxu1 %v3508_v57  ;;  %v4634_v57 = vld [vmem:[#allocation7 + $0x20c] sm:$0xf]  ;;  %v4639_v28 = vld [vmem:[#allocation7 + $0x230] sm:$0xf0]  ;;  %v4769_v29 = vld [vmem:[#allocation7 + $0x644] sm:$0xf] }
  0x89   : > { %1777 = vmatpush.bf16.msra.mxu2 %v3796_v59  ;;  %v3621_v59 = vld [vmem:[#allocation7 + $0x22c] sm:$0xf0]  ;;  %v4679_v46 = vld [vmem:[#allocation7 + $0x374] sm:$0xf]  ;;  %vm2069_vm1 = vcmask 130048   ;;  %s4872_s26 = smul.u32 48, %s5352_s10 }
  0x8a   : > { %1791 = vmatpush.bf16.msra.mxu3 %v4084_v63  ;;  %v3584_v63 = vor.u32 %v4629_v56, %v3583_v52  ;;  %v3624_v1 = vor.u32 %v4634_v57, %v3621_v59  ;;  %v4015_v52 = vld [vmem:[#allocation7 + $0x520] sm:$0xf]  ;;  %v4589_v56 = vld [vmem:[#allocation7 + $0xa4] sm:$0xf]  ;;  %v3441_v57 = vld [vmem:[#allocation7 + $0xc4] sm:$0xf0] }
  0x8b   : > { %1750 = vmatpush.bf16.msra.mxu0 %v4044_v6  ;;  %v4620_v6 = vld [vmem:[#allocation7 + $0x198] sm:$0xf0]  ;;  %v3691_v59 = vld [vmem:[#allocation7 + $0x298] sm:$0xf]  ;;  %s5506_s13 = scalar_lea.vmem [#allocation12], %s4872_s26  ;;  %s4873_s14 = smul.u32 48, %s5258_s19 }
  0x8c   : > { %1764 = vmatpush.bf16.msra.mxu1 %v3472_v7  ;;  %v4625_v7 = vld [vmem:[#allocation7 + $0x1c4] sm:$0xf]  ;;  %s3219_s28 = sshll.u32 %s5506_s13, 4  ;;  %s3206_s19 = scalar_lea.sflag [#allocation6], %s5352_s10  ;;  %s3220_s28 = int_to_ptr.vmem [resolvable:$true] %s3219_s28 }
  0x8d   : > { %1778 = vmatpush.bf16.msra.mxu2 %v3760_v8  ;;  %v3585_v8 = vld [vmem:[#allocation7 + $0x1e4] sm:$0xf0]  ;;  %s3218_s27 = scalar_lea.hbm %s5552_s4, %s4873_s14  ;;  %s5146_s11 = scalar_lea.hbm %s5552_s4, 96 }
  0x8e   : > { %1792 = vmatpush.bf16.msra.mxu3 %v4048_v13  ;;  %v3548_v13 = vor.u32 %v4620_v6, %v3547_v0  ;;  %v3588_v15 = vor.u32 %v4625_v7, %v3585_v8  ;;  %v4575_v0 = vld [vmem:[#allocation7 + $0x30] sm:$0xf0]  ;;  %v4706_v6 = vld [vmem:[#allocation7 + $0x44c] sm:$0xf]  ;;  %v4580_v7 = vld [vmem:[#allocation7 + $0x5c] sm:$0xf] }
  0x8f   : > { %1751 = vmatpush.bf16.msra.mxu0 %v4008_v19  ;;  %v4611_v19 = vld [vmem:[#allocation7 + $0x150] sm:$0xf0]  ;;  %v3405_v8 = vld [vmem:[#allocation7 + $0x7c] sm:$0xf0]  ;;  %v3368_v16 = vor.u32 %v4575_v0, %v3367_v61  ;;  %v3765_v0 = vld [vmem:[#allocation7 + $0x34c] sm:$0xf0] }
  0x90   : > { %1765 = vmatpush.bf16.msra.mxu1 %v3436_v20  ;;  %v4616_v20 = vld [vmem:[#allocation7 + $0x17c] sm:$0xf]  ;;  %v3408_v17 = vor.u32 %v4580_v7, %v3405_v8  ;;  %v3843_v61 = vld [vmem:[#allocation7 + $0x3c0] sm:$0xf]  ;;  %v4661_v8 = vld [vmem:[#allocation7 + $0x2e4] sm:$0xf] }
  0x91   : > { %1779 = vmatpush.bf16.msra.mxu2 %v3724_v21  ;;  %v3549_v21 = vld [vmem:[#allocation7 + $0x19c] sm:$0xf0]  ;;  %s3221_s29 = sshll.u32 %s3218_s27, 4  ;;  %s3222_s29 = int_to_ptr.hbm [resolvable:$true] %s3221_s29 }
  0x92   : > { %1793 = vmatpush.bf16.msra.mxu3 %v4012_v25  ;;  %v3512_v25 = vor.u32 %v4611_v19, %v3511_v14  ;;  %v3552_v27 = vor.u32 %v4616_v20, %v3549_v21  ;;  %v4197_v14 = vld [vmem:[#allocation7 + $0x6ac] sm:$0xf0]  ;;  %v4719_v19 = vld [vmem:[#allocation7 + $0x4b0] sm:$0xf0]  ;;  %v3912_v20 = vor.u32 %v4706_v6, %v3909_v10  ;;  %s5140_s8 = sshra.s32 %s3222_s29, 4  ;;  %s5141_s8 = int_to_ptr.hbm [resolvable:$true] %s5140_s8 }
  0x93   : > { %1752 = vmatpush.bf16.msra.mxu0 %v3972_v31  ;;  %v4602_v31 = vld [vmem:[#allocation7 + $0x108] sm:$0xf0]  ;;  %s5142_s9 = scalar_lea.hbm %s5141_s8, 48  ;;  %p5147_p11 = scmp.lt.s32.totalorder %s5141_s8, %s5552_s4 }
  0x94   : > { %1766 = vmatpush.bf16.msra.mxu1 %v3400_v33  ;;  %v3513_v33 = vld [vmem:[#allocation7 + $0x154] sm:$0xf0]  ;;  %v3476_v37 = vor.u32 %v4602_v31, %v3475_v26  ;;  %v3873_v26 = vld [vmem:[#allocation7 + $0x424] sm:$0xf0]  ;;  %p5143_p1 = scmp.ne.s32.totalorder %s5141_s8, %s5142_s9  ;;  %p5148_p9 = scmp.lt.s32.totalorder %s5146_s11, %s5142_s9 }
  0x95   : > { %1780 = vmatpush.bf16.msra.mxu2 %v3688_v34  ;;  %v3763_v34 = vld [vmem:[#allocation7 + $0x328] sm:$0xf]  ;;  %v3516_v39 = vor.u32 %v4607_v32, %v3513_v33  ;;  %v3876_v33 = vor.u32 %v4697_v22, %v3873_v26  ;;  %v3693_v26 = vld [vmem:[#allocation7 + $0x2bc] sm:$0xf0] }
  0x96   : > { %1794 = vmatpush.bf16.msra.mxu3 %v3976_v38  ;;  %v3439_v38 = vld [vmem:[#allocation7 + $0xa0] sm:$0xf]  ;;  %v3764_v42 = vor.u32 %v4674_v35, %v3763_v34  ;;  %v4688_v34 = vld [vmem:[#allocation7 + $0x3bc] sm:$0xf]  ;;  %p5144_p4 = pnand %p5143_p1, %p5323_p7  ;;  %p5149_p2 = por %p5148_p9, %p5147_p11 }
  0x97   : > { %1753 = vmatpush.bf16.msra.mxu0 %v3936_v45  ;;  %v3477_v45 = vld [vmem:[#allocation7 + $0x10c] sm:$0xf0] }
  0x98   : > { %1767 = vmatpush.bf16.msra.mxu1 %v3364_v48  ;;  %v4052_v48 = vor.u32 %v4746_v41, %v4051_v40  ;;  %v3591_v40 = vld [vmem:[#allocation7 + $0x1c8] sm:$0xf]  ;;  %v4630_v41 = vld [vmem:[#allocation7 + $0x1e8] sm:$0xf0]  ;;  %p5145_p8 = pneg %p5144_p4 }
  0x99   : > { %1781 = vmatpush.bf16.msra.mxu2 %v3652_v49  ;;  %v3440_v49 = vor.u32 %v4593_v43, %v3439_v38  ;;  %v4125_v43 = vld [vmem:[#allocation7 + $0x61c] sm:$0xf0]  ;;  %v3592_v47 = vor.u32 %v4630_v41, %v3591_v40  ;;  %v4585_v41 = vld [vmem:[#allocation7 + $0x80] sm:$0xf0] }
  0x9a   : > { %1795 = vmatpush.bf16.msra.mxu3 %v3940_v50  ;;  %1754 = vmatmul.bf16.vlgmr.msra.gmra.mxu0 %v5382_v9  ;;  %v3403_v50 = vld [vmem:[#allocation7 + $0x58] sm:$0xf]  ;;  %v3411_v40 = vld [vmem:[#allocation7 + $0x60] sm:$0xf]  ;;  %p5150_p10 = pnand %p5149_p2, %p5145_p8 }
  0x9b   : > { %1802 = vmatpush.bf16.msrb.mxu0 %v3620_v51  ;;  %1768 = vmatmul.bf16.vlgmr.msra.gmra.mxu1 %v5372_v58  ;;  %v3480_v51 = vor.u32 %v4598_v44, %v3477_v45 }
  0x9c   : > { %1816 = vmatpush.bf16.msrb.mxu1 %v3908_v55  ;;  %1782 = vmatmul.bf16.vlgmr.msra.gmra.mxu2 %v5377_v5  ;;  %v4584_v55 = vld [vmem:[#allocation7 + $0x78] sm:$0xf0] }
  0x9d   : > { %1796 = vmatmul.bf16.vlgmr.msra.gmra.mxu3 %v5382_v9  ;;  %1830 = vmatpush.bf16.msrb.mxu2 %v4196_v62  ;;  %v4016_v62 = vor.u32 %v4737_v53, %v4015_v52  ;;  %v3555_v52 = vld [vmem:[#allocation7 + $0x180] sm:$0xf]  ;;  %v4621_v53 = vld [vmem:[#allocation7 + $0x1a0] sm:$0xf0] }
  0x9e   : > { %1844 = vmatpush.bf16.msrb.mxu3 %v3624_v1  ;;  %v3444_v1 = vor.u32 %v4589_v56, %v3441_v57 }
  0x9f   : > { %1803 = vmatpush.bf16.msrb.mxu0 %v3584_v63  ;;  %v3404_v63 = vor.u32 %v4584_v55, %v3403_v50  ;;  %v4089_v55 = vld [vmem:[#allocation7 + $0x5d4] sm:$0xf0] }
  0xa0   : > { %1817 = vmatpush.bf16.msrb.mxu1 %v3872_v4  ;;  %v3692_v4 = vor.u32 %v4656_v60, %v3691_v59  ;;  %v4670_v59 = vld [vmem:[#allocation7 + $0x32c] sm:$0xf]  ;;  %v3556_v60 = vor.u32 %v4621_v53, %v3555_v52  ;;  %v3375_v53 = vld [vmem:[#allocation7 + $0x18] sm:$0xf] }
  0xa1   : > { %1831 = vmatpush.bf16.msrb.mxu2 %v4160_v12  ;;  %v4647_v12 = vld [vmem:[#allocation7 + $0x270] sm:$0xf0]  ;;  %v3768_v7 = vor.u32 %v4670_v59, %v3765_v0 }
  0xa2   : > { %1845 = vmatpush.bf16.msrb.mxu3 %v3588_v15  ;;  %v3980_v15 = vor.u32 %v4728_v3, %v3979_v2  ;;  %v3656_v21 = vor.u32 %v4647_v12, %v3655_v11  ;;  %v4612_v2 = vld [vmem:[#allocation7 + $0x158] sm:$0xf0]  ;;  %v4742_v3 = vld [vmem:[#allocation7 + $0x56c] sm:$0xf]  ;;  %v3807_v11 = vld [vmem:[#allocation7 + $0x378] sm:$0xf] }
  0xa3   : > { %1804 = vmatpush.bf16.msrb.mxu0 %v3548_v13  ;;  %v4778_v13 = vld [vmem:[#allocation7 + $0x68c] sm:$0xf]  ;;  %v4684_v12 = vld [vmem:[#allocation7 + $0x398] sm:$0xf0] }
  0xa4   : > { %1818 = vmatpush.bf16.msrb.mxu1 %v3836_v18  ;;  %v3943_v18 = vld [vmem:[#allocation7 + $0x490] sm:$0xf] }
  0xa5   : > { %1832 = vmatpush.bf16.msrb.mxu2 %v4124_v24  ;;  %v3369_v24 = vld [vmem:[#allocation7 + $0x34] sm:$0xf0]  ;;  %v3944_v31 = vor.u32 %v4719_v19, %v3943_v18  ;;  %v4017_v18 = vld [vmem:[#allocation7 + $0x544] sm:$0xf0]  ;;  %v3808_v19 = vor.u32 %v4684_v12, %v3807_v11  ;;  %v3881_v11 = vld [vmem:[#allocation7 + $0x42c] sm:$0xf0] }
  0xa6   : > { %1846 = vmatpush.bf16.msrb.mxu3 %v3552_v27  ;;  %v3627_v27 = vld [vmem:[#allocation7 + $0x210] sm:$0xf]  ;;  %v3372_v32 = vor.u32 %v4571_v23, %v3369_v24  ;;  %v4675_v24 = vld [vmem:[#allocation7 + $0x350] sm:$0xf0] }
  0xa7   : > { %1805 = vmatpush.bf16.msrb.mxu0 %v3512_v25  ;;  %v4200_v25 = vor.u32 %v4778_v13, %v4197_v14  ;;  %v3628_v35 = vor.u32 %v4639_v28, %v3627_v27  ;;  %v3729_v14 = vld [vmem:[#allocation7 + $0x304] sm:$0xf0]  ;;  %v3771_v23 = vld [vmem:[#allocation7 + $0x330] sm:$0xf]  ;;  %v4594_v28 = vld [vmem:[#allocation7 + $0xc8] sm:$0xf0] }
  0xa8   : > { %1819 = vmatpush.bf16.msrb.mxu1 %v3800_v30  ;;  %v4161_v30 = vld [vmem:[#allocation7 + $0x664] sm:$0xf0] }
  0xa9   : > { %1833 = vmatpush.bf16.msrb.mxu2 %v4088_v36  ;;  %v3915_v36 = vld [vmem:[#allocation7 + $0x450] sm:$0xf]  ;;  %v4164_v38 = vor.u32 %v4769_v29, %v4161_v30  ;;  %v3447_v27 = vld [vmem:[#allocation7 + $0xa8] sm:$0xf]  ;;  %v4724_v29 = vld [vmem:[#allocation7 + $0x4dc] sm:$0xf] }
  0xaa   : > { %1847 = vmatpush.bf16.msrb.mxu3 %v3516_v39  ;;  %v3837_v39 = vld [vmem:[#allocation7 + $0x3dc] sm:$0xf0] }
  0xab   : > { %1806 = vmatpush.bf16.msrb.mxu0 %v3476_v37  ;;  %v4711_v37 = vld [vmem:[#allocation7 + $0x470] sm:$0xf0]  ;;  %v3840_v45 = vor.u32 %v4688_v34, %v3837_v39  ;;  %v3981_v30 = vld [vmem:[#allocation7 + $0x4fc] sm:$0xf0]  ;;  %v3657_v34 = vld [vmem:[#allocation7 + $0x274] sm:$0xf0] }
  0xac   : > { %1820 = vmatpush.bf16.msrb.mxu1 %v3764_v42  ;;  %v4760_v42 = vld [vmem:[#allocation7 + $0x5fc] sm:$0xf]  ;;  %v3916_v44 = vor.u32 %v4711_v37, %v3915_v36  ;;  %v3735_v36 = vld [vmem:[#allocation7 + $0x2e8] sm:$0xf]  ;;  %v4666_v37 = vld [vmem:[#allocation7 + $0x308] sm:$0xf0] }
  0xad   : > { %1834 = vmatpush.bf16.msrb.mxu2 %v4052_v48  ;;  %v3879_v48 = vld [vmem:[#allocation7 + $0x408] sm:$0xf]  ;;  %v4128_v50 = vor.u32 %v4760_v42, %v4125_v43  ;;  %v4715_v39 = vld [vmem:[#allocation7 + $0x494] sm:$0xf]  ;;  %v3945_v42 = vld [vmem:[#allocation7 + $0x4b4] sm:$0xf0] }
  0xae   : > { %1848 = vmatpush.bf16.msrb.mxu3 %v3480_v51  ;;  %v3801_v51 = vld [vmem:[#allocation7 + $0x394] sm:$0xf0]  ;;  %v4203_v43 = vld [vmem:[#allocation7 + $0x690] sm:$0xf]  ;;  %v3948_v52 = vor.u32 %v4715_v39, %v3945_v42  ;;  %v4747_v42 = vld [vmem:[#allocation7 + $0x590] sm:$0xf0] }
  0xaf   : > { %1807 = vmatpush.bf16.msrb.mxu0 %v3440_v49  ;;  %v4702_v49 = vld [vmem:[#allocation7 + $0x428] sm:$0xf0]  ;;  %v3804_v57 = vor.u32 %v4679_v46, %v3801_v51  ;;  %v4635_v46 = vld [vmem:[#allocation7 + $0x214] sm:$0xf]  ;;  %v4657_v51 = vld [vmem:[#allocation7 + $0x2c0] sm:$0xf0] }
  0xb0   : > { %1821 = vmatpush.bf16.msrb.mxu1 %v3728_v54  ;;  %v4751_v54 = vld [vmem:[#allocation7 + $0x5b4] sm:$0xf]  ;;  %v3880_v56 = vor.u32 %v4702_v49, %v3879_v48  ;;  %v3412_v49 = vor.u32 %v4585_v41, %v3411_v40  ;;  %v3485_v39 = vld [vmem:[#allocation7 + $0x114] sm:$0xf0]  ;;  %v4059_v41 = vld [vmem:[#allocation7 + $0x570] sm:$0xf] }
  0xb1   : > { %1835 = vmatpush.bf16.msrb.mxu2 %v4016_v62  ;;  %v4693_v62 = vld [vmem:[#allocation7 + $0x3e0] sm:$0xf0] }
  0xb2   : > { %1849 = vmatpush.bf16.msrb.mxu3 %v3444_v1  ;;  %v3519_v1 = vld [vmem:[#allocation7 + $0x138] sm:$0xf]  ;;  %v3844_v6 = vor.u32 %v4693_v62, %v3843_v61  ;;  %v4626_v62 = vld [vmem:[#allocation7 + $0x1cc] sm:$0xf] }
  0xb3   : > { %1808 = vmatpush.bf16.msrb.mxu0 %v3404_v63  ;;  %v4092_v63 = vor.u32 %v4751_v54, %v4089_v55  ;;  %v3520_v10 = vor.u32 %v4612_v2, %v3519_v1  ;;  %v4576_v54 = vld [vmem:[#allocation7 + $0x38] sm:$0xf0]  ;;  %v3663_v61 = vld [vmem:[#allocation7 + $0x258] sm:$0xf]  ;;  %v4167_v2 = vld [vmem:[#allocation7 + $0x648] sm:$0xf] }
  0xb4   : > { %1822 = vmatpush.bf16.msrb.mxu1 %v3692_v4  ;;  %v4053_v4 = vld [vmem:[#allocation7 + $0x58c] sm:$0xf0]  ;;  %v3376_v0 = vor.u32 %v4576_v54, %v3375_v53  ;;  %v4648_v1 = vld [vmem:[#allocation7 + $0x278] sm:$0xf0]  ;;  %v4023_v53 = vld [vmem:[#allocation7 + $0x528] sm:$0xf] }
  0xb5   : > { %1836 = vmatpush.bf16.msrb.mxu2 %v3980_v15  ;;  %v4056_v13 = vor.u32 %v4742_v3, %v4053_v4  ;;  %v3483_v15 = vld [vmem:[#allocation7 + $0xf0] sm:$0xf]  ;;  %v4774_v3 = vld [vmem:[#allocation7 + $0x668] sm:$0xf0] }
  0xb6   : > { %1850 = vmatpush.bf16.msrb.mxu3 %v3408_v17  ;;  %v4733_v17 = vld [vmem:[#allocation7 + $0x524] sm:$0xf]  ;;  %v4738_v54 = vld [vmem:[#allocation7 + $0x548] sm:$0xf0] }
  0xb7   : > { %1809 = vmatpush.bf16.msrb.mxu0 %v3368_v16  ;;  %v4603_v16 = vld [vmem:[#allocation7 + $0x110] sm:$0xf0] }
  0xb8   : > { %1823 = vmatpush.bf16.msrb.mxu1 %v3656_v21  ;;  %v4652_v21 = vld [vmem:[#allocation7 + $0x29c] sm:$0xf]  ;;  %v3484_v22 = vor.u32 %v4603_v16, %v3483_v15  ;;  %v3557_v15 = vld [vmem:[#allocation7 + $0x1a4] sm:$0xf0] }
  0xb9   : > { %1837 = vmatpush.bf16.msrb.mxu2 %v3944_v31  ;;  %v4643_v31 = vld [vmem:[#allocation7 + $0x254] sm:$0xf] }
  0xba   : > { %1810 = vmatmul.bf16.vlgmr.msrb.gmra.mxu0 %v5372_v58  ;;  %1851 = vmatpush.bf16.msrb.mxu3 %v3372_v32  ;;  %v3772_v32 = vor.u32 %v4675_v24, %v3771_v23  ;;  %v3660_v48 = vor.u32 %v4643_v31, %v3657_v34  ;;  %v4689_v23 = vld [vmem:[#allocation7 + $0x3c4] sm:$0xf]  ;;  %v3845_v24 = vld [vmem:[#allocation7 + $0x3e4] sm:$0xf0] }
  0xbb   : > { %1858 = vmatpush.bf16.msra.mxu0 %v3912_v20  ;;  %1824 = vmatmul.bf16.vlgmr.msrb.gmra.mxu1 %v5377_v5  ;;  %v3732_v20 = vor.u32 %v4661_v8, %v3729_v14  ;;  %v4168_v8 = vor.u32 %v4774_v3, %v4167_v2  ;;  %v4617_v14 = vld [vmem:[#allocation7 + $0x184] sm:$0xf]  ;;  %v3848_v31 = vor.u32 %v4689_v23, %v3845_v24  ;;  %v3987_v3 = vld [vmem:[#allocation7 + $0x4e0] sm:$0xf]  ;;  %v4644_v24 = vld [vmem:[#allocation7 + $0x25c] sm:$0xf] }
  0xbc   : > { %1872 = vmatpush.bf16.msra.mxu1 %v4200_v25  ;;  %1838 = vmatmul.bf16.vlgmr.msrb.gmra.mxu2 %v5382_v9  ;;  %v4020_v25 = vor.u32 %v4733_v17, %v4017_v18  ;;  %v4131_v17 = vld [vmem:[#allocation7 + $0x600] sm:$0xf]  ;;  %v4765_v18 = vld [vmem:[#allocation7 + $0x620] sm:$0xf0] }
  0xbd   : > { %1886 = vmatpush.bf16.msra.mxu2 %v3628_v35  ;;  %1852 = vmatmul.bf16.vlgmr.msrb.gmra.mxu3 %v5372_v58  ;;  %v3448_v35 = vor.u32 %v4594_v28, %v3447_v27  ;;  %v3521_v27 = vld [vmem:[#allocation7 + $0x15c] sm:$0xf0] }
  0xbe   : > { %1900 = vmatpush.bf16.msra.mxu3 %v3916_v44  ;;  %v4783_v44 = vld [vmem:[#allocation7 + $0x6b0] sm:$0xf0] }
  0xbf   : > { %1859 = vmatpush.bf16.msra.mxu0 %v3876_v33  ;;  %v3696_v33 = vor.u32 %v4652_v21, %v3693_v26  ;;  %v4204_v55 = vor.u32 %v4783_v44, %v4203_v43  ;;  %v4169_v21 = vld [vmem:[#allocation7 + $0x66c] sm:$0xf0]  ;;  %v4608_v26 = vld [vmem:[#allocation7 + $0x13c] sm:$0xf] }
  0xc0   : > { %1873 = vmatpush.bf16.msra.mxu1 %v4164_v38  ;;  %v3984_v38 = vor.u32 %v4724_v29, %v3981_v30  ;;  %v4095_v29 = vld [vmem:[#allocation7 + $0x5b8] sm:$0xf]  ;;  %v4756_v30 = vld [vmem:[#allocation7 + $0x5d8] sm:$0xf0] }
  0xc1   : > { %1887 = vmatpush.bf16.msra.mxu2 %v3592_v47  ;;  %v3629_v47 = vld [vmem:[#allocation7 + $0x234] sm:$0xf0]  ;;  %v4096_v34 = vor.u32 %v4756_v30, %v4095_v29  ;;  %v4752_v44 = vld [vmem:[#allocation7 + $0x5bc] sm:$0xf]  ;;  %v3953_v30 = vld [vmem:[#allocation7 + $0x4bc] sm:$0xf0] }
  0xc2   : > { %1901 = vmatpush.bf16.msra.mxu3 %v3880_v56  ;;  %v4707_v56 = vld [vmem:[#allocation7 + $0x454] sm:$0xf]  ;;  %v3632_v59 = vor.u32 %v4635_v46, %v3629_v47  ;;  %v4060_v46 = vor.u32 %v4747_v42, %v4059_v41  ;;  %v4716_v29 = vld [vmem:[#allocation7 + $0x49c] sm:$0xf] }
  0xc3   : > { %1860 = vmatpush.bf16.msra.mxu0 %v3840_v45  ;;  %v3736_v45 = vor.u32 %v4666_v37, %v3735_v36  ;;  %v3809_v36 = vld [vmem:[#allocation7 + $0x39c] sm:$0xf0]  ;;  %v3524_v37 = vor.u32 %v4608_v26, %v3521_v27  ;;  %v4671_v47 = vld [vmem:[#allocation7 + $0x334] sm:$0xf] }
  0xc4   : > { %1874 = vmatpush.bf16.msra.mxu1 %v4128_v50  ;;  %v3699_v50 = vld [vmem:[#allocation7 + $0x2a0] sm:$0xf] }
  0xc5   : > { %1888 = vmatpush.bf16.msra.mxu2 %v3556_v60  ;;  %v3700_v60 = vor.u32 %v4657_v51, %v3699_v50  ;;  %v4590_v50 = vld [vmem:[#allocation7 + $0xac] sm:$0xf]  ;;  %v3449_v51 = vld [vmem:[#allocation7 + $0xcc] sm:$0xf0] }
  0xc6   : > { %1902 = vmatpush.bf16.msra.mxu3 %v3844_v6  ;;  %v4779_v6 = vld [vmem:[#allocation7 + $0x694] sm:$0xf] }
  0xc7   : > { %1861 = vmatpush.bf16.msra.mxu0 %v3804_v57  ;;  %v3917_v57 = vld [vmem:[#allocation7 + $0x474] sm:$0xf0] }
  0xc8   : > { %1875 = vmatpush.bf16.msra.mxu1 %v4092_v63  ;;  %v3593_v63 = vld [vmem:[#allocation7 + $0x1ec] sm:$0xf0]  ;;  %v3920_v4 = vor.u32 %v4707_v56, %v3917_v57  ;;  %v4743_v56 = vld [vmem:[#allocation7 + $0x574] sm:$0xf]  ;;  %v4061_v57 = vld [vmem:[#allocation7 + $0x594] sm:$0xf0] }
  0xc9   : > { %1889 = vmatpush.bf16.msra.mxu2 %v3520_v10  ;;  %v4698_v10 = vld [vmem:[#allocation7 + $0x40c] sm:$0xf]  ;;  %v3596_v12 = vor.u32 %v4626_v62, %v3593_v63  ;;  %v3452_v62 = vor.u32 %v4590_v50, %v3449_v51  ;;  %v4581_v63 = vld [vmem:[#allocation7 + $0x64] sm:$0xf]  ;;  %v4064_v2 = vor.u32 %v4743_v56, %v4061_v57 }
  0xca   : > { %1903 = vmatpush.bf16.msra.mxu3 %v3808_v19  ;;  %v3884_v19 = vor.u32 %v4698_v10, %v3881_v11  ;;  %v4025_v10 = vld [vmem:[#allocation7 + $0x54c] sm:$0xf0] }
  0xcb   : > { %1862 = vmatpush.bf16.msra.mxu0 %v3768_v7  ;;  %v4205_v7 = vld [vmem:[#allocation7 + $0x6b4] sm:$0xf0] }
  0xcc   : > { %1876 = vmatpush.bf16.msra.mxu1 %v4056_v13  ;;  %v3664_v13 = vor.u32 %v4648_v1, %v3663_v61  ;;  %v4208_v16 = vor.u32 %v4779_v6, %v4205_v7  ;;  %v3737_v61 = vld [vmem:[#allocation7 + $0x30c] sm:$0xf0] }
  0xcd   : > { %1890 = vmatpush.bf16.msra.mxu2 %v3484_v22  ;;  %v4132_v22 = vor.u32 %v4765_v18, %v4131_v17  ;;  %v3951_v18 = vld [vmem:[#allocation7 + $0x498] sm:$0xf] }
  0xce   : > { %1904 = vmatpush.bf16.msra.mxu3 %v3772_v32  ;;  %v4761_v32 = vld [vmem:[#allocation7 + $0x604] sm:$0xf] }
  0xcf   : > { %1863 = vmatpush.bf16.msra.mxu0 %v3732_v20  ;;  %v4770_v20 = vld [vmem:[#allocation7 + $0x64c] sm:$0xf] }
  0xd0   : > { %1877 = vmatpush.bf16.msra.mxu1 %v4020_v25  ;;  %v3560_v25 = vor.u32 %v4617_v14, %v3557_v15  ;;  %v4172_v28 = vor.u32 %v4770_v20, %v4169_v21  ;;  %v4572_v15 = vld [vmem:[#allocation7 + $0x1c] sm:$0xf]  ;;  %v4725_v21 = vld [vmem:[#allocation7 + $0x4e4] sm:$0xf] }
  0xd1   : > { %1891 = vmatpush.bf16.msra.mxu2 %v3448_v35  ;;  %v4680_v35 = vld [vmem:[#allocation7 + $0x37c] sm:$0xf] }
  0xd2   : > { %1905 = vmatpush.bf16.msra.mxu3 %v3736_v45  ;;  %v3812_v43 = vor.u32 %v4680_v35, %v3809_v36  ;;  %v4097_v45 = vld [vmem:[#allocation7 + $0x5dc] sm:$0xf0] }
  0xd3   : > { %1864 = vmatpush.bf16.msra.mxu0 %v3696_v33  ;;  %v4133_v33 = vld [vmem:[#allocation7 + $0x624] sm:$0xf0] }
  0xd4   : > { %1878 = vmatpush.bf16.msra.mxu1 %v3984_v38  ;;  %v4599_v38 = vld [vmem:[#allocation7 + $0xf4] sm:$0xf]  ;;  %v4136_v40 = vor.u32 %v4761_v32, %v4133_v33  ;;  %v3956_v33 = vor.u32 %v4716_v29, %v3953_v30 }
  0xd5   : > { %1892 = vmatpush.bf16.msra.mxu2 %v3412_v49  ;;  %v3488_v49 = vor.u32 %v4599_v38, %v3485_v39 }
  0xd6   : > { %1906 = vmatpush.bf16.msra.mxu3 %v3700_v60  ;;  %v4662_v60 = vld [vmem:[#allocation7 + $0x2ec] sm:$0xf] }
  0xd7   : > { %1865 = vmatpush.bf16.msra.mxu0 %v3660_v48  ;;  %v3773_v48 = vld [vmem:[#allocation7 + $0x354] sm:$0xf0]  ;;  %v1643_v1 = vpop.f32.mrf.mxu0  ;;  %v3740_v7 = vor.u32 %v4662_v60, %v3737_v61  ;;  %v4640_v60 = vld [vmem:[#allocation7 + $0x238] sm:$0xf0] }
  0xd8   : > { %1879 = vmatpush.bf16.msra.mxu1 %v3948_v52  ;;  %v4100_v52 = vor.u32 %v4752_v44, %v4097_v45  ;;  %v1657_v6 = vpop.f32.mrf.mxu1  ;;  %v3923_v61 = vld [vmem:[#allocation7 + $0x458] sm:$0xf] }
  0xd9   : > { %1893 = vmatpush.bf16.msra.mxu2 %v3376_v0  ;;  %v3413_v0 = vld [vmem:[#allocation7 + $0x84] sm:$0xf0] }
  0xda   : > { %1866 = vmatmul.bf16.vlgmr.msra.gmra.mxu0 %v5377_v5  ;;  %1907 = vmatpush.bf16.msra.mxu3 %v3664_v13  ;;  %v3701_v13 = vld [vmem:[#allocation7 + $0x2c4] sm:$0xf0]  ;;  %v3416_v14 = vor.u32 %v4581_v63, %v3413_v0  ;;  %v4712_v0 = vld [vmem:[#allocation7 + $0x478] sm:$0xf0] }
  0xdb   : > { %1914 = vmatpush.bf16.msrb.mxu0 %v4204_v55  ;;  %1880 = vmatmul.bf16.vlgmr.msra.gmra.mxu1 %v5382_v9  ;;  %v3776_v55 = vor.u32 %v4671_v47, %v3773_v48 }
  0xdc   : > { %1928 = vmatpush.bf16.msrb.mxu1 %v3632_v59  ;;  %1894 = vmatmul.bf16.vlgmr.msra.gmra.mxu2 %v5372_v58  ;;  %v4024_v59 = vor.u32 %v4738_v54, %v4023_v53  ;;  %v4211_v54 = vld [vmem:[#allocation7 + $0x698] sm:$0xf] }
  0xdd   : > { %1942 = vmatpush.bf16.msrb.mxu2 %v3920_v4  ;;  %1908 = vmatmul.bf16.vlgmr.msra.gmra.mxu3 %v5377_v5  ;;  %v4729_v4 = vld [vmem:[#allocation7 + $0x500] sm:$0xf0] }
  0xde   : > { %1956 = vmatpush.bf16.msrb.mxu3 %v4208_v16  ;;  %v3988_v11 = vor.u32 %v4729_v4, %v3987_v3  ;;  %v3377_v16 = vld [vmem:[#allocation7 + $0x3c] sm:$0xf0]  ;;  %v3924_v3 = vor.u32 %v4712_v0, %v3923_v61  ;;  %v3995_v0 = vld [vmem:[#allocation7 + $0x4e8] sm:$0xf] }
  0xdf   : > { %1915 = vmatpush.bf16.msrb.mxu0 %v4168_v8  ;;  %v4734_v8 = vld [vmem:[#allocation7 + $0x52c] sm:$0xf]  ;;  %v3380_v26 = vor.u32 %v4572_v15, %v3377_v16  ;;  %v1671_v36 = vpop.f32.mrf.mxu2 }
  0xe0   : > { %1929 = vmatpush.bf16.msrb.mxu1 %v3596_v12  ;;  %v4653_v12 = vld [vmem:[#allocation7 + $0x2a4] sm:$0xf]  ;;  %v4028_v17 = vor.u32 %v4734_v8, %v4025_v10  ;;  %v1659_v32 = vpop.f32.mrf.mxu1  ;;  %v1685_v35 = vpop.f32.mrf.mxu3  ;;  %v3887_v10 = vld [vmem:[#allocation7 + $0x410] sm:$0xf] }
  0xe1   : > { %1943 = vmatpush.bf16.msrb.mxu2 %v3884_v19  ;;  %v4720_v19 = vld [vmem:[#allocation7 + $0x4b8] sm:$0xf0]  ;;  %v3704_v20 = vor.u32 %v4653_v12, %v3701_v13  ;;  %v4139_v12 = vld [vmem:[#allocation7 + $0x608] sm:$0xf] }
  0xe2   : > { %1957 = vmatpush.bf16.msrb.mxu3 %v4172_v28  ;;  %v3952_v23 = vor.u32 %v4720_v19, %v3951_v18  ;;  %v3563_v19 = vld [vmem:[#allocation7 + $0x188] sm:$0xf] }
  0xe3   : > { %1916 = vmatpush.bf16.msrb.mxu0 %v4132_v22  ;;  %v3989_v22 = vld [vmem:[#allocation7 + $0x504] sm:$0xf0] }
  0xe4   : > { %1930 = vmatpush.bf16.msrb.mxu1 %v3560_v25  ;;  %v3665_v25 = vld [vmem:[#allocation7 + $0x27c] sm:$0xf0]  ;;  %v3992_v27 = vor.u32 %v4725_v21, %v3989_v22  ;;  %v3851_v21 = vld [vmem:[#allocation7 + $0x3c8] sm:$0xf] }
  0xe5   : > { %1944 = vmatpush.bf16.msrb.mxu2 %v3848_v31  ;;  %v3668_v28 = vor.u32 %v4644_v24, %v3665_v25  ;;  %v1645_v31 = vpop.f32.mrf.mxu0 }
  0xe6   : > { %1958 = vmatpush.bf16.msrb.mxu3 %v4136_v40 }
  0xe7   : > { %1917 = vmatpush.bf16.msrb.mxu0 %v4096_v34  ;;  %v1658_v34 = vadd.f32 %v1657_v6, %v1643_v1  ;;  %v1673_v45 = vpop.f32.mrf.mxu2  ;;  %v4175_v1 = vld [vmem:[#allocation7 + $0x650] sm:$0xf] }
  0xe8   : > { %1931 = vmatpush.bf16.msrb.mxu1 %v3524_v37  ;;  %v1687_v44 = vpop.f32.mrf.mxu3  ;;  %v3599_v6 = vld [vmem:[#allocation7 + $0x1d0] sm:$0xf] }
  0xe9   : > { %1945 = vmatpush.bf16.msrb.mxu2 %v3812_v43  ;;  %v1672_v38 = vadd.f32 %v1671_v36, %v1658_v34  ;;  %v1660_v43 = vadd.f32 %v1659_v32, %v1645_v31  ;;  %v3527_v31 = vld [vmem:[#allocation7 + $0x140] sm:$0xf]  ;;  %v4613_v32 = vld [vmem:[#allocation7 + $0x160] sm:$0xf0] }
  0xea   : > { %1959 = vmatpush.bf16.msrb.mxu3 %v4100_v52  ;;  %v3528_v36 = vor.u32 %v4613_v32, %v3527_v31 }
  0xeb   : > { %1918 = vmatpush.bf16.msrb.mxu0 %v4060_v46 }
  0xec   : > { %1932 = vmatpush.bf16.msrb.mxu1 %v3488_v49  ;;  %v1674_v49 = vadd.f32 %v1673_v45, %v1660_v43  ;;  %v4604_v43 = vld [vmem:[#allocation7 + $0x118] sm:$0xf0] }
  0xed   : > { %1946 = vmatpush.bf16.msrb.mxu2 %v3776_v55  ;;  %v4784_v55 = vld [vmem:[#allocation7 + $0x6b8] sm:$0xf0] }
  0xee   : > { %1960 = vmatpush.bf16.msrb.mxu3 %v4064_v2  ;;  %v4212_v56 = vor.u32 %v4784_v55, %v4211_v54  ;;  %v4775_v2 = vld [vmem:[#allocation7 + $0x670] sm:$0xf0]  ;;  %v3455_v55 = vld [vmem:[#allocation7 + $0xb0] sm:$0xf] }
  0xef   : > { %1919 = vmatpush.bf16.msrb.mxu0 %v4024_v59  ;;  %v3635_v59 = vld [vmem:[#allocation7 + $0x218] sm:$0xf]  ;;  %v4176_v4 = vor.u32 %v4775_v2, %v4175_v1  ;;  %v4730_v1 = vld [vmem:[#allocation7 + $0x508] sm:$0xf0] }
  0xf0   : > { %1933 = vmatpush.bf16.msrb.mxu1 %v3452_v62  ;;  %v3636_v63 = vor.u32 %v4640_v60, %v3635_v59  ;;  %v3743_v59 = vld [vmem:[#allocation7 + $0x2f0] sm:$0xf] }
  0xf1   : > { %1947 = vmatpush.bf16.msrb.mxu2 %v3740_v7  ;;  %v4631_v7 = vld [vmem:[#allocation7 + $0x1f0] sm:$0xf0] }
  0xf2   : > { %1961 = vmatpush.bf16.msrb.mxu3 %v4028_v17  ;;  %v3600_v8 = vor.u32 %v4631_v7, %v3599_v6 }
  0xf3   : > { %1920 = vmatpush.bf16.msrb.mxu0 %v3988_v11  ;;  %v4703_v11 = vld [vmem:[#allocation7 + $0x430] sm:$0xf0] }
  0xf4   : > { %1934 = vmatpush.bf16.msrb.mxu1 %v3416_v14  ;;  %v3888_v13 = vor.u32 %v4703_v11, %v3887_v10  ;;  %v4766_v14 = vld [vmem:[#allocation7 + $0x628] sm:$0xf0]  ;;  %v3419_v10 = vld [vmem:[#allocation7 + $0x68] sm:$0xf] }
  0xf5   : > { %1948 = vmatpush.bf16.msrb.mxu2 %v3704_v20  ;;  %v4140_v16 = vor.u32 %v4766_v14, %v4139_v12  ;;  %v4622_v20 = vld [vmem:[#allocation7 + $0x1a8] sm:$0xf0]  ;;  %v3707_v12 = vld [vmem:[#allocation7 + $0x2a8] sm:$0xf] }
  0xf6   : > { %1962 = vmatpush.bf16.msrb.mxu3 %v3992_v27  ;;  %v3564_v25 = vor.u32 %v4622_v20, %v3563_v19  ;;  %v4103_v27 = vld [vmem:[#allocation7 + $0x5c0] sm:$0xf]  ;;  %v4586_v11 = vld [vmem:[#allocation7 + $0x88] sm:$0xf0]  ;;  %v4577_v19 = vld [vmem:[#allocation7 + $0x40] sm:$0xf0] }
  0xf7   : > { %1921 = vmatpush.bf16.msrb.mxu0 %v3952_v23  ;;  %v1699_v37 = vpop.f32.mrf.mxu0  ;;  %v4658_v14 = vld [vmem:[#allocation7 + $0x2c8] sm:$0xf0]  ;;  %v3671_v20 = vld [vmem:[#allocation7 + $0x260] sm:$0xf] }
  0xf8   : > { %1935 = vmatpush.bf16.msrb.mxu1 %v3380_v26  ;;  %v1700_v39 = vadd.f32 %v1699_v37, %v1685_v35  ;;  %v1713_v40 = vpop.f32.mrf.mxu1  ;;  %v4694_v26 = vld [vmem:[#allocation7 + $0x3e8] sm:$0xf0]  ;;  %v4685_v37 = vld [vmem:[#allocation7 + $0x3a0] sm:$0xf0] }
  0xf9   : > { %1949 = vmatpush.bf16.msrb.mxu2 %v3668_v28  ;;  %v4757_v28 = vld [vmem:[#allocation7 + $0x5e0] sm:$0xf0]  ;;  %v3852_v29 = vor.u32 %v4694_v26, %v3851_v21 }
  0xfa   : > { %1922 = vmatmul.bf16.vlgmr.msrb.gmra.mxu0 %v5382_v9  ;;  %1963 = vmatpush.bf16.msrb.mxu3 %v3956_v33  ;;  %v1714_v41 = vadd.f32 %v1713_v40, %v1700_v39  ;;  %v4104_v30 = vor.u32 %v4757_v28, %v4103_v27  ;;  %v3815_v33 = vld [vmem:[#allocation7 + $0x380] sm:$0xf]  ;;  %v4748_v39 = vld [vmem:[#allocation7 + $0x598] sm:$0xf0] }
  0xfb   : > { %1936 = vmatmul.bf16.vlgmr.msrb.gmra.mxu1 %v5372_v58  ;;  %1970 = vmatpush.bf16.msra.mxu0 %v3636_v63  ;;  %v3816_v40 = vor.u32 %v4685_v37, %v3815_v33  ;;  %v4667_v63 = vld [vmem:[#allocation7 + $0x310] sm:$0xf0] }
  0xfc   : > { %1950 = vmatmul.bf16.vlgmr.msrb.gmra.mxu2 %v5377_v5  ;;  %v2012_v42 = vpack.c.bf16 %v1714_v41, %v1672_v38  ;;  %1984 = vmatpush.bf16.msra.mxu1 %v3924_v3  ;;  %v4067_v38 = vld [vmem:[#allocation7 + $0x578] sm:$0xf]  ;;  %v3744_v7 = vor.u32 %v4667_v63, %v3743_v59 }
  0xfd   : > { %1964 = vmatmul.bf16.vlgmr.msrb.gmra.mxu3 %v5382_v9  ;;  %1998 = vmatpush.bf16.msra.mxu2 %v4212_v56  ;;  %v4068_v41 = vor.u32 %v4748_v39, %v4067_v38  ;;  %v4595_v56 = vld [vmem:[#allocation7 + $0xd0] sm:$0xf0] }
  0xfe   : > { %2022 = vst [vmem:[#allocation2] sm:$0xff] %v2012_v42  ;;  %v3491_v42 = vld [vmem:[#allocation7 + $0xf8] sm:$0xf]  ;;  %v3456_v6 = vor.u32 %v4595_v56, %v3455_v55 }
  0xff   : > { %v1701_v46 = vpop.f32.mrf.mxu0  ;;  %v1727_v52 = vpop.f32.mrf.mxu2  ;;  %1971 = vmatpush.bf16.msra.mxu0 %v3600_v8  ;;  %v3996_v8 = vor.u32 %v4730_v1, %v3995_v0 }
 0x100   : > { %v1702_v47 = vadd.f32 %v1701_v46, %v1687_v44  ;;  %v1715_v48 = vpop.f32.mrf.mxu1  ;;  %v1741_v53 = vpop.f32.mrf.mxu3  ;;  %1985 = vmatpush.bf16.msra.mxu1 %v3888_v13  ;;  %v3779_v44 = vld [vmem:[#allocation7 + $0x338] sm:$0xf]  ;;  %v4676_v46 = vld [vmem:[#allocation7 + $0x358] sm:$0xf0] }
 0x101   : > { %1999 = vmatpush.bf16.msra.mxu2 %v4176_v4  ;;  %v1742_v22 = vadd.f32 %v1741_v53, %v1727_v52  ;;  %v3780_v53 = vor.u32 %v4676_v46, %v3779_v44 }
 0x102   : > { %v1716_v50 = vadd.f32 %v1715_v48, %v1702_v47  ;;  %v4031_v47 = vld [vmem:[#allocation7 + $0x530] sm:$0xf]  ;;  %v4739_v48 = vld [vmem:[#allocation7 + $0x550] sm:$0xf0] }
 0x103   : > { %1972 = vmatpush.bf16.msra.mxu0 %v3564_v25  ;;  %v4032_v54 = vor.u32 %v4739_v48, %v4031_v47 }
 0x104   : > { %v2017_v51 = vpack.c.bf16 %v1716_v50, %v1674_v49  ;;  %1986 = vmatpush.bf16.msra.mxu1 %v3852_v29  ;;  %v3492_v50 = vor.u32 %v4604_v43, %v3491_v42 }
 0x105   : > { %2000 = vmatpush.bf16.msra.mxu2 %v4140_v16  ;;  %v3708_v16 = vor.u32 %v4658_v14, %v3707_v12  ;;  %v4215_v29 = vld [vmem:[#allocation2] sm:$0xf] }
 0x106   : > { %2027 = vst [vmem:[#allocation2 + $0x24] sm:$0xff] %v2017_v51 }
 0x107   : > { %v5406_v57 = vpop.f32.mrf.mxu2  ;;  %1973 = vmatpush.bf16.msra.mxu0 %v3528_v36 }
 0x108   : > { %v5408_v62 = vpop.f32.mrf.mxu3  ;;  %1987 = vmatpush.bf16.msra.mxu1 %v3816_v40 }
 0x109   : > { %2001 = vmatpush.bf16.msra.mxu2 %v4104_v30  ;;  %v1744_v60 = vadd.f32 %v5408_v62, %v5406_v57  ;;  %v4721_v57 = vld [vmem:[#allocation7 + $0x4c0] sm:$0xf0]  ;;  %v3420_v62 = vor.u32 %v4586_v11, %v3419_v10 }
 0x10b   : > { %1974 = vmatpush.bf16.msra.mxu0 %v3492_v50 }
 0x10c   : > { %1988 = vmatpush.bf16.msra.mxu1 %v3780_v53 }
 0x10d   : > { %2002 = vmatpush.bf16.msra.mxu2 %v4068_v41  ;;  %v4785_v28 = vld [vmem:[#allocation2 + $0x20] sm:$0xf0] }
 0x10e   : > { %v4216_v30 = vor.u32 %v4785_v28, %v4215_v29 }
 0x10f   : > { %1975 = vmatpush.bf16.msra.mxu0 %v3456_v6 }
 0x110   : > { %1989 = vmatpush.bf16.msra.mxu1 %v3744_v7 }
 0x111   : > { %2003 = vmatpush.bf16.msra.mxu2 %v4032_v54 }
 0x113   : > { %1976 = vmatpush.bf16.msra.mxu0 %v3420_v62 }
 0x114   : > { %1990 = vmatpush.bf16.msra.mxu1 %v3708_v16 }
 0x115   : > { %2004 = vmatpush.bf16.msra.mxu2 %v3996_v8 }
 0x117   : > { %v1755_v15 = vpop.f32.mrf.mxu0 }
 0x118   : > { %v1769_v17 = vpop.f32.mrf.mxu1  ;;  %v1756_v34 = vadd.f32 %v1755_v15, %v1742_v22  ;;  %v3959_v15 = vld [vmem:[#allocation7 + $0x4a0] sm:$0xf]  ;;  %v4649_v22 = vld [vmem:[#allocation7 + $0x280] sm:$0xf0] }
 0x119   : > { %v3672_v25 = vor.u32 %v4649_v22, %v3671_v20 }
 0x11b   : > { %1991 = vmatpush.bf16.msra.mxu1 %v3672_v25 }
 0x11e   : > { %1992 = vmatmul.bf16.vlgmr.msra.gmra.mxu1 %v5377_v5 }
 0x11f   : > { %v1783_v18 = vpop.f32.mrf.mxu2  ;;  %v1757_v49 = vpop.f32.mrf.mxu0 }
 0x120   : > { %v1784_v23 = vadd.f32 %v1783_v18, %v1769_v17  ;;  %v1797_v24 = vpop.f32.mrf.mxu3  ;;  %v1771_v51 = vpop.f32.mrf.mxu1  ;;  %v1758_v3 = vadd.f32 %v1757_v49, %v1744_v60  ;;  %v3960_v17 = vor.u32 %v4721_v57, %v3959_v15  ;;  %v3383_v18 = vld [vmem:[#allocation7 + $0x20] sm:$0xf] }
 0x121   : > { %v3384_v21 = vor.u32 %v4577_v19, %v3383_v18 }
 0x122   : > { %v1798_v35 = vadd.f32 %v1797_v24, %v1784_v23  ;;  %2005 = vmatpush.bf16.msra.mxu2 %v3960_v17 }
 0x123   : > { %1977 = vmatpush.bf16.msra.mxu0 %v3384_v21 }
 0x124   : > { %v2013_v45 = vpack.c.bf16 %v1798_v35, %v1756_v34 }
 0x125   : > { %2006 = vmatmul.bf16.vlgmr.msra.gmra.mxu2 %v5382_v9 }
 0x126   : > { %2023 = vst [vmem:[#allocation2 + $0x8] sm:$0xff] %v2013_v45  ;;  %1978 = vmatmul.bf16.vlgmr.msra.gmra.mxu0 %v5372_v58 }
 0x127   : > { %v1785_v52 = vpop.f32.mrf.mxu2 }
 0x128   : > { %v1786_v61 = vadd.f32 %v1785_v52, %v1771_v51  ;;  %v1799_v2 = vpop.f32.mrf.mxu3 }
 0x12a   : > { %v1800_v4 = vadd.f32 %v1799_v2, %v1786_v61 }
 0x12c   : > { %v2018_v13 = vpack.c.bf16 %v1800_v4, %v1758_v3 }
 0x12d   : > { %v4219_v23 = vld [vmem:[#allocation2 + $0xc] sm:$0xf]  ;;  %v4247_v0 = vld [vmem:[#allocation2 + $0x8] sm:$0xf] }
 0x12e   : > { %2028 = vst [vmem:[#allocation2 + $0x2c] sm:$0xff] %v2018_v13 }
 0x135   : > { %v4786_v24 = vld [vmem:[#allocation2 + $0x2c] sm:$0xf0]  ;;  %v4791_v61 = vld [vmem:[#allocation2 + $0x28] sm:$0xf0] }
 0x136   : > { %v4220_v26 = vor.u32 %v4786_v24, %v4219_v23  ;;  %v4248_v1 = vor.u32 %v4791_v61, %v4247_v0 }
 0x137   : > { %v1811_v31 = vpop.f32.mrf.mxu0 }
 0x138   : > { %2120 = vrot.lane.b32.xlu0 %v4220_v26, %s5209_s21  ;;  %v2053_v27 = vsel %vm2048_vm0, %v4220_v26, 0  ;;  %v1825_v9 = vpop.f32.mrf.mxu1 }
 0x139   : > { %2062 = vmatpush.bf16.xpose.msra.mxu3 %v2053_v27  ;;  %v1826_v36 = vadd.f32 %v1825_v9, %v1811_v31 }
 0x13f   : > { %v1813_v32 = vpop.f32.mrf.mxu0  ;;  %v1839_v35 = vpop.f32.mrf.mxu2 }
 0x140   : > { %2118 = vrot.lane.b32.xlu0 %v4216_v30, %s5209_s21  ;;  %4221 = vmatmul.msk.bf16.vlgmr.msra.gmra.mxu3 %vm2048_vm0, %v4216_v30  ;;  %v1827_v33 = vpop.f32.mrf.mxu1  ;;  %v1853_v34 = vpop.f32.mrf.mxu3  ;;  %v1840_v39 = vadd.f32 %v1839_v35, %v1826_v36 }
 0x141   : > { %v1828_v5 = vadd.f32 %v1827_v33, %v1813_v32 }
 0x147   : > { %v1841_v43 = vpop.f32.mrf.mxu2 }
 0x148   : > { %v1855_v42 = vpop.f32.mrf.mxu3  ;;  %v1842_v46 = vadd.f32 %v1841_v43, %v1828_v5 }
 0x157   : > { %v1867_v37 = vpop.f32.mrf.mxu0 }
 0x158   : > { %v1868_v38 = vadd.f32 %v1867_v37, %v1853_v34  ;;  %v1881_v58 = vpop.f32.mrf.mxu1 }
 0x15a   : > { %v1882_v40 = vadd.f32 %v1881_v58, %v1868_v38 }
 0x15c   : > { %v2014_v41 = vpack.c.bf16 %v1882_v40, %v1840_v39 }
 0x15e   : > { %2024 = vst [vmem:[#allocation2 + $0x10] sm:$0xff] %v2014_v41  ;;  %v4788_v41 = vld [vmem:[#allocation2 + $0x24] sm:$0xf0] }
 0x15f   : > { %v1869_v44 = vpop.f32.mrf.mxu0  ;;  %v1895_v50 = vpop.f32.mrf.mxu2 }
 0x160   : > { %v1870_v45 = vadd.f32 %v1869_v44, %v1855_v42  ;;  %v1883_v47 = vpop.f32.mrf.mxu1  ;;  %v1909_v54 = vpop.f32.mrf.mxu3  ;;  %v4231_v44 = vld [vmem:[#allocation2 + $0x4] sm:$0xf] }
 0x161   : > { %v1910_v6 = vadd.f32 %v1909_v54, %v1895_v50 }
 0x162   : > { %v1884_v48 = vadd.f32 %v1883_v47, %v1870_v45  ;;  %v4232_v45 = vor.u32 %v4788_v41, %v4231_v44 }
 0x164   : > { %v2019_v49 = vpack.c.bf16 %v1884_v48, %v1842_v46 }
 0x165   : > { %v4251_v51 = vld [vmem:[#allocation2 + $0x14] sm:$0xf]  ;;  %v4235_v52 = vld [vmem:[#allocation2 + $0x10] sm:$0xf] }
 0x166   : > { %2029 = vst [vmem:[#allocation2 + $0x34] sm:$0xff] %v2019_v49 }
 0x167   : > { %v1897_v63 = vpop.f32.mrf.mxu2 }
 0x168   : > { %v1911_v2 = vpop.f32.mrf.mxu3 }
 0x169   : > { %v1912_v13 = vadd.f32 %v1911_v2, %v1897_v63 }
 0x16d   : > { %v4792_v53 = vld [vmem:[#allocation2 + $0x34] sm:$0xf0]  ;;  %v4789_v55 = vld [vmem:[#allocation2 + $0x30] sm:$0xf0] }
 0x16e   : > { %v4252_v56 = vor.u32 %v4792_v53, %v4251_v51  ;;  %v4236_v59 = vor.u32 %v4789_v55, %v4235_v52 }
 0x170   : > { %2474 = vrot.lane.b32.xlu0 %v4252_v56, %s5209_s21  ;;  %v2408_v60 = vsel %vm2048_vm0, %v4252_v56, 0  ;;  %2297 = vrot.lane.b32.xlu1 %v4236_v59, %s5209_s21  ;;  %v2231_v24 = vsel %vm2048_vm0, %v4236_v59, 0 }
 0x171   : > { %2417 = vmatpush.bf16.xpose.msrb.mxu2 %v2408_v60 }
 0x177   : > { %v1923_v4 = vpop.f32.mrf.mxu0 }
 0x178   : > { %4253 = vmatmul.msk.bf16.vlgmr.msrb.gmra.mxu2 %vm2048_vm0, %v4248_v1  ;;  %2472 = vrot.lane.b32.xlu0 %v4248_v1, %s5209_s21  ;;  %v1937_v3 = vpop.f32.mrf.mxu1  ;;  %v1924_v10 = vadd.f32 %v1923_v4, %v1910_v6 }
 0x17f   : > { %v1951_v7 = vpop.f32.mrf.mxu2  ;;  %v1925_v57 = vpop.f32.mrf.mxu0 }
 0x180   : > { %v1952_v8 = vadd.f32 %v1951_v7, %v1937_v3  ;;  %v1965_v11 = vpop.f32.mrf.mxu3  ;;  %v1939_v15 = vpop.f32.mrf.mxu1  ;;  %v1926_v17 = vadd.f32 %v1925_v57, %v1912_v13 }
 0x182   : > { %v1966_v12 = vadd.f32 %v1965_v11, %v1952_v8 }
 0x184   : > { %v2015_v14 = vpack.c.bf16 %v1966_v12, %v1924_v10 }
 0x186   : > { %2025 = vst [vmem:[#allocation2 + $0x18] sm:$0xff] %v2015_v14 }
 0x187   : > { %v1953_v62 = vpop.f32.mrf.mxu2 }
 0x188   : > { %v1954_v16 = vadd.f32 %v1953_v62, %v1939_v15  ;;  %v1967_v18 = vpop.f32.mrf.mxu3 }
 0x18a   : > { %v1968_v19 = vadd.f32 %v1967_v18, %v1954_v16 }
 0x18c   : > { %v2020_v20 = vpack.c.bf16 %v1968_v19, %v1926_v17 }
 0x18d   : > { %v4224_v21 = vld [vmem:[#allocation2 + $0x18] sm:$0xf]  ;;  %v4240_v42 = vld [vmem:[#allocation2 + $0x1c] sm:$0xf] }
 0x18e   : > { %2030 = vst [vmem:[#allocation2 + $0x3c] sm:$0xff] %v2020_v20 }
 0x195   : > { %v4787_v22 = vld [vmem:[#allocation2 + $0x38] sm:$0xf0]  ;;  %v4790_v43 = vld [vmem:[#allocation2 + $0x3c] sm:$0xf0] }
 0x196   : > { %v4225_v23 = vor.u32 %v4787_v22, %v4224_v21  ;;  %v4241_v46 = vor.u32 %v4790_v43, %v4240_v42 }
 0x198   : > { %2105 = vmatpush.bf16.msrb.mxu3 %v4225_v23 }
 0x19b   : > { %v1993_v29 = vpop.f32.mrf.mxu1 }
 0x19c   : > { %2240 = vmatpush.bf16.xpose.msra.mxu3 %v2231_v24 }
 0x1a3   : > { %v1979_v28 = vpop.f32.mrf.mxu0  ;;  %v1995_v34 = vpop.f32.mrf.mxu1 }
 0x1a4   : > { %v1994_v30 = vadd.f32 %v1993_v29, %v1979_v28 }
 0x1a8   : > { %v2007_v31 = vpop.f32.mrf.mxu2 }
 0x1a9   : > { %v2008_v9 = vadd.f32 %v2007_v31, %v1994_v30 }
 0x1aa   : > { %v2121_v25 = vpop.permute.xlu0 %2120 }
 0x1ab   : > { %v2126_v26 = vsel %vm2048_vm0, %v2121_v25, 0  ;;  %v2016_v32 = vpack.c.bf16 %v2008_v9, %v2008_v9  ;;  %v1981_v33 = vpop.f32.mrf.mxu0 }
 0x1ac   : > { %2135 = vmatpush.bf16.xpose.msrb.mxu0 %v2126_v26  ;;  %v1996_v35 = vadd.f32 %v1995_v34, %v1981_v33 }
 0x1ad   : > { %2026 = vst [vmem:[#allocation2 + $0x20] sm:$0xf] %v2016_v32 }
 0x1b0   : > { %v2009_v36 = vpop.f32.mrf.mxu2 }
 0x1b1   : > { %v2010_v37 = vadd.f32 %v2009_v36, %v1996_v35 }
 0x1b2   : > { %v2119_v27 = vpop.permute.xlu0 %2118 }
 0x1b3   : > { %4227 = vmatmul.msk.bf16.vlgmr.msrb.gmra.mxu0 %vm2048_vm0, %v2119_v27  ;;  %v2021_v58 = vpack.c.bf16 %v2010_v37, %v2010_v37 }
 0x1b4   : > { %v4256_v47 = vld [vmem:[#allocation2 + $0x20] sm:$0xf] }
 0x1b5   : > { %2031 = vst [vmem:[#allocation2 + $0x44] sm:$0xf] %v2021_v58 }
 0x1bc   : > { %v4793_v48 = vld [vmem:[#allocation2 + $0x40] sm:$0xf0] }
 0x1bd   : > { %v4257_v49 = vor.u32 %v4793_v48, %v4256_v47 }
 0x1c3   : > { %v2064_v38 = vpop.f32.mrf.mxu3 }
 0x1c4   : > { %v2070_v39 = vsel %vm2069_vm1, %v2064_v38, -inf }
 0x1c5   : > { %2071 = vmax.xlane.f32.xlu1 %v2070_v39 }
 0x1cb   : > { %v2066_v40 = vpop.f32.mrf.mxu3 }
 0x1cc   : > { %v2073_v5 = vsel %vm2069_vm1, %v2066_v40, -inf }
 0x1cd   : > { %2074 = vmax.xlane.f32.xlu2 %v2073_v5 }
 0x1de   : > { %2161 = vrot.lane.b32.xlu1 %v4225_v23, %s5209_s21 }
 0x1e2   : > { %v2475_v50 = vpop.permute.xlu0 %2474  ;;  %v2298_v52 = vpop.permute.xlu1 %2297 }
 0x1e3   : > { %v2480_v51 = vsel %vm2048_vm0, %v2475_v50, 0  ;;  %v2303_v53 = vsel %vm2048_vm0, %v2298_v52, 0 }
 0x1e4   : > { %2312 = vmatpush.bf16.xpose.msra.mxu0 %v2303_v53 }
 0x1e5   : > { %2295 = vrot.lane.b32.xlu2 %v4232_v45, %s5209_s21 }
 0x1e6   : > { %2338 = vrot.lane.b32.xlu1 %v4241_v46, %s5209_s21 }
 0x1ea   : > { %v2473_v12 = vpop.permute.xlu0 %2472 }
 0x1ec   : > { %2489 = vmatpush.bf16.xpose.msrb.mxu0 %v2480_v51 }
 0x1ee   : > { %2515 = vrot.lane.b32.xlu1 %v4257_v49, %s5209_s21 }
 0x1fb   : > { %v2419_v54 = vpop.f32.mrf.mxu2 }
 0x1fc   : > { %v2424_v55 = vsel %vm2069_vm1, %v2419_v54, -inf }
 0x218   : > { %2425 = vmax.xlane.f32.xlu1 %v2424_v55 }
 0x230   : > { %v2137_v56 = vpop.f32.mrf.mxu0 }
 0x231   : > { %v2142_v59 = vsel %vm2069_vm1, %v2137_v56, -inf }
 0x232   : > { %2143 = vmax.xlane.f32.xlu0 %v2142_v59 }
 0x238   : > { %v2139_v60 = vpop.f32.mrf.mxu0  ;;  %v2072_v61 = vpop.xlane.xlu1 %2071 }
 0x239   : > { %v2145_v63 = vsel %vm2069_vm1, %v2139_v60, -inf  ;;  %v2076_v0 = vsub.f32 %v2064_v38, %v2072_v61  ;;  %v5462_v38 = vpop.f32.mrf.mxu2 }
 0x23a   : > { %2146 = vmax.xlane.f32.xlu2 %v2145_v63  ;;  %v2427_v58 = vsel %vm2069_vm1, %v5462_v38, -inf }
 0x23b   : > { %v2078_v1 = vmul.f32 1.442695, %v2076_v0 }
 0x23d   : > { %4958 = vpow2.f32 %v2078_v1 }
 0x240   : > { %v2075_v2 = vpop.xlane.xlu2 %2074 }
 0x241   : > { %v2077_v3 = vsub.f32 %v2066_v40, %v2075_v2 }
 0x243   : > { %v2080_v4 = vmul.f32 1.442695, %v2077_v3  ;;  %v5439_v7 = vpop.eup %4958 }
 0x245   : > { %4960 = vpow2.f32 %v2080_v4 }
 0x248   : > { %v2296_v6 = vpop.permute.xlu2 %2295 }
 0x249   : > { %4243 = vmatmul.msk.bf16.vlgmr.msra.gmra.mxu0 %vm2048_vm0, %v2296_v6 }
 0x24b   : > { %v5441_v8 = vpop.eup %4960 }
 0x24c   : > { %v2088_v10 = vpack.c.bf16 %v5441_v8, %v5439_v7 }
 0x24e   : > { %4226 = vmatmul.msk.bf16.vlgmr.msrb.gmra.mxu3 %vm2069_vm1, %v2088_v10 }
 0x24f   : > { %2282 = vmatpush.bf16.msrb.mxu3 %v4241_v46 }
 0x250   : > { %v2162_v11 = vpop.permute.xlu1 %2161 }
 0x251   : > { %2174 = vmatpush.bf16.msrb.mxu1 %v2162_v11 }
 0x258   : > { %v2339_v13 = vpop.permute.xlu1 %2338 }
 0x259   : > { %2351 = vmatpush.bf16.msra.mxu1 %v2339_v13  ;;  %4259 = vmatmul.msk.bf16.vlgmr.msrb.gmra.mxu0 %vm2048_vm0, %v2473_v12  ;;  %v2082_v13 = vsel %vm2069_vm1, %v5439_v7, 0.0 }
 0x25e   : > { %4237 = vmatmul.msk.bf16.vlgmr.msra.gmra.mxu3 %vm2048_vm0, %v4232_v45 }
 0x25f   : > { %2459 = vmatpush.bf16.msra.mxu3 %v4257_v49 }
 0x260   : > { %v2516_v14 = vpop.permute.xlu1 %2515 }
 0x28b   : > { %v2426_v15 = vpop.xlane.xlu1 %2425 }
 0x28c   : > { %v2430_v57 = vsub.f32 %v2419_v54, %v2426_v15 }
 0x28e   : > { %v2432_v62 = vmul.f32 1.442695, %v2430_v57 }
 0x290   : > { %4962 = vpow2.f32 %v2432_v62 }
 0x296   : > { %v5448_v16 = vpop.eup %4962 }
 0x297   : > { %v2436_v17 = vsel %vm2069_vm1, %v5448_v16, 0.0 }
 0x298   : > { %2437 = vadd.xlane.f32.xlu1 %v2436_v17 }
 0x2a5   : > { %v2144_v18 = vpop.xlane.xlu0 %2143 }
 0x2a6   : > { %v2148_v19 = vsub.f32 %v2137_v56, %v2144_v18 }
 0x2a8   : > { %v2150_v20 = vmul.f32 1.442695, %v2148_v19 }
 0x2aa   : > { %4964 = vpow2.f32 %v2150_v20  ;;  %v2085_v20 = vsel %vm2069_vm1, %v5441_v8, 0.0 }
 0x2ad   : > { %v2147_v21 = vpop.xlane.xlu2 %2146 }
 0x2ae   : > { %v2149_v22 = vsub.f32 %v2139_v60, %v2147_v21 }
 0x2b0   : > { %v2152_v23 = vmul.f32 1.442695, %v2149_v22  ;;  %v4965_v24 = vpop.eup %4964 }
 0x2b1   : > { %v2154_v5 = vsel %vm2069_vm1, %v4965_v24, 0.0 }
 0x2b2   : > { %4966 = vpow2.f32 %v2152_v23 }
 0x2b8   : > { %v4967_v25 = vpop.eup %4966 }
 0x2b9   : > { %v2160_v26 = vpack.c.bf16 %v4967_v25, %v4965_v24  ;;  %v2157_v41 = vsel %vm2069_vm1, %v4967_v25, 0.0 }
 0x2bb   : > { %4228 = vmatmul.msk.bf16.vlgmr.msrb.gmra.mxu1 %vm2069_vm1, %v2160_v26 }
 0x2bc   : > { %2528 = vmatpush.bf16.msrb.mxu1 %v2516_v14 }
 0x2c6   : > { %v2314_v27 = vpop.f32.mrf.mxu0 }
 0x2c7   : > { %v2319_v28 = vsel %vm2069_vm1, %v2314_v27, -inf }
 0x2c8   : > { %2320 = vmax.xlane.f32.xlu2 %v2319_v28 }
 0x2ce   : > { %v2316_v29 = vpop.f32.mrf.mxu0 }
 0x2cf   : > { %v2322_v30 = vsel %vm2069_vm1, %v2316_v29, -inf }
 0x2d0   : > { %2323 = vmax.xlane.f32.xlu0 %v2322_v30 }
 0x2d1   : > { %v5455_v31 = vpop.f32.mrf.mxu3 }
 0x2d6   : > { %v2491_v9 = vpop.f32.mrf.mxu0 }
 0x2d7   : > { %v2496_v32 = vsel %vm2069_vm1, %v2491_v9, -inf }
 0x2d8   : > { %2497 = vmax.xlane.f32.xlu2 %v2496_v32 }
 0x2d9   : > { %v5458_v33 = vpop.f32.mrf.mxu3 }
 0x2de   : > { %v2493_v34 = vpop.f32.mrf.mxu0 }
 0x2df   : > { %v2499_v35 = vsel %vm2069_vm1, %v2493_v34, -inf }
 0x2e0   : > { %2500 = vmax.xlane.f32.xlu0 %v2499_v35 }
 0x2e1   : > { %v2242_v36 = vpop.f32.mrf.mxu3 }
 0x2e2   : > { %v2247_v37 = vsel %vm2069_vm1, %v2242_v36, -inf }
 0x2e3   : > { %2248 = vmax.xlane.f32.xlu2 %v2247_v37  ;;  %v4359_v37 = vld [vmem:[#allocation9 + $0xa8] sm:$0xf] }
 0x2e9   : > { %v2244_v39 = vpop.f32.mrf.mxu3 }
 0x2ea   : > { %v2250_v40 = vsel %vm2069_vm1, %v2244_v39, -inf }
 0x2eb   : > { %2428 = vmax.xlane.f32.xlu2 %v2427_v58  ;;  %2251 = vmax.xlane.f32.xlu0 %v2250_v40  ;;  %v4361_v40 = vld [vmem:[#allocation9 + $0xb4] sm:$0xf0] }
 0x2f3   : > { %2155 = vadd.xlane.f32.xlu0 %v2154_v5  ;;  %2158 = vadd.xlane.f32.xlu2 %v2157_v41  ;;  %v4347_v41 = vld [vmem:[#allocation9 + $0x90] sm:$0xf] }
 0x338   : > { %v2176_v62 = vpop.f32.mrf.mxu1 }
 0x33b   : > { %v2321_v42 = vpop.xlane.xlu2 %2320 }
 0x33c   : > { %v2325_v43 = vsub.f32 %v2314_v27, %v2321_v42  ;;  %v4816_v42 = vld [vmem:[#allocation9 + $0x98] sm:$0xf0] }
 0x33e   : > { %v2327_v44 = vmul.f32 1.442695, %v2325_v43  ;;  %v4815_v43 = vld [vmem:[#allocation9 + $0x94] sm:$0xf] }
 0x340   : > { %4968 = vpow2.f32 %v2327_v44  ;;  %v2178_v25 = vpop.f32.mrf.mxu1  ;;  %v4348_v44 = vor.u32 %v4816_v42, %v4347_v41 }
 0x343   : > { %v2324_v45 = vpop.xlane.xlu0 %2323 }
 0x344   : > { %v2326_v46 = vsub.f32 %v2316_v29, %v2324_v45  ;;  %v4349_v45 = vld [vmem:[#allocation9 + $0x9c] sm:$0xf0] }
 0x346   : > { %v4969_v47 = vpop.eup %4968  ;;  %v2329_v48 = vmul.f32 1.442695, %v2326_v46  ;;  %v4352_v46 = vor.u32 %v4815_v43, %v4349_v45 }
 0x347   : > { %v2331_v49 = vsel %vm2069_vm1, %v4969_v47, 0.0 }
 0x348   : > { %4970 = vpow2.f32 %v2329_v48  ;;  %2332 = vadd.xlane.f32.xlu0 %v2331_v49  ;;  %v4812_v48 = vld [vmem:[#allocation9 + $0x7c] sm:$0xf] }
 0x34b   : > { %v2498_v50 = vpop.xlane.xlu2 %2497 }
 0x34c   : > { %v2502_v51 = vsub.f32 %v2491_v9, %v2498_v50  ;;  %v4337_v50 = vld [vmem:[#allocation9 + $0x84] sm:$0xf0] }
 0x34e   : > { %v4971_v52 = vpop.eup %4970  ;;  %v2504_v53 = vmul.f32 1.442695, %v2502_v51 }
 0x34f   : > { %v2337_v54 = vpack.c.bf16 %v4971_v52, %v4969_v47  ;;  %v2334_v55 = vsel %vm2069_vm1, %v4971_v52, 0.0  ;;  %v4335_v47 = vld [vmem:[#allocation9 + $0x78] sm:$0xf]  ;;  %v4340_v52 = vor.u32 %v4812_v48, %v4337_v50 }
 0x350   : > { %4972 = vpow2.f32 %v2504_v53  ;;  %2335 = vadd.xlane.f32.xlu2 %v2334_v55  ;;  %v4323_v53 = vld [vmem:[#allocation9 + $0x60] sm:$0xf]  ;;  %v4809_v55 = vld [vmem:[#allocation9 + $0x64] sm:$0xf] }
 0x351   : > { %4244 = vmatmul.msk.bf16.vlgmr.msra.gmra.mxu1 %vm2069_vm1, %v2337_v54  ;;  %v4810_v54 = vld [vmem:[#allocation9 + $0x68] sm:$0xf0] }
 0x353   : > { %v2501_v56 = vpop.xlane.xlu0 %2500 }
 0x354   : > { %v2503_v59 = vsub.f32 %v2493_v34, %v2501_v56  ;;  %v4324_v56 = vor.u32 %v4810_v54, %v4323_v53 }
 0x356   : > { %v4973_v60 = vpop.eup %4972  ;;  %v2506_v61 = vmul.f32 1.442695, %v2503_v59  ;;  %v2249_v63 = vpop.xlane.xlu2 %2248  ;;  %v4325_v59 = vld [vmem:[#allocation9 + $0x6c] sm:$0xf0] }
 0x357   : > { %v2253_v0 = vsub.f32 %v2242_v36, %v2249_v63  ;;  %v2508_v1 = vsel %vm2069_vm1, %v4973_v60, 0.0  ;;  %v4807_v63 = vld [vmem:[#allocation9 + $0x50] sm:$0xf0] }
 0x358   : > { %4974 = vpow2.f32 %v2506_v61  ;;  %2509 = vadd.xlane.f32.xlu0 %v2508_v1  ;;  %v4311_v61 = vld [vmem:[#allocation9 + $0x48] sm:$0xf] }
 0x359   : > { %v2255_v2 = vmul.f32 1.442695, %v2253_v0  ;;  %v4806_v0 = vld [vmem:[#allocation9 + $0x4c] sm:$0xf]  ;;  %v4312_v1 = vor.u32 %v4807_v63, %v4311_v61 }
 0x35b   : > { %4976 = vpow2.f32 %v2255_v2  ;;  %v4313_v2 = vld [vmem:[#allocation9 + $0x54] sm:$0xf0] }
 0x35e   : > { %v4975_v3 = vpop.eup %4974  ;;  %v2252_v4 = vpop.xlane.xlu0 %2251 }
 0x35f   : > { %v2429_v6 = vpop.xlane.xlu2 %2428  ;;  %v2514_v10 = vpack.c.bf16 %v4975_v3, %v4973_v60  ;;  %v2254_v11 = vsub.f32 %v2244_v39, %v2252_v4  ;;  %v2511_v12 = vsel %vm2069_vm1, %v4975_v3, 0.0  ;;  %v4818_v39 = vld [vmem:[#allocation9 + $0xac] sm:$0xf]  ;;  %v4328_v60 = vor.u32 %v4809_v55, %v4325_v59 }
 0x360   : > { %2512 = vadd.xlane.f32.xlu2 %v2511_v12  ;;  %2083 = vadd.xlane.f32.xlu0 %v2082_v13  ;;  %v2431_v17 = vsub.f32 %v5462_v38, %v2429_v6  ;;  %v4819_v38 = vld [vmem:[#allocation9 + $0xb0] sm:$0xf0]  ;;  %v4364_v5 = vor.u32 %v4818_v39, %v4361_v40  ;;  %v4316_v6 = vor.u32 %v4806_v0, %v4313_v2  ;;  %v4455_v0 = vld [vmem:[#allocation9 + $0x168] sm:$0xf]  ;;  %v4842_v2 = vld [vmem:[#allocation9 + $0x16c] sm:$0xf] }
 0x361   : > { %v4977_v14 = vpop.eup %4976  ;;  %v2257_v15 = vmul.f32 1.442695, %v2254_v11  ;;  %4260 = vmatmul.msk.bf16.vlgmr.msrb.gmra.mxu1 %vm2069_vm1, %v2514_v10  ;;  %v4360_v58 = vor.u32 %v4819_v38, %v4359_v37  ;;  %v4299_v10 = vld [vmem:[#allocation9 + $0x30] sm:$0xf]  ;;  %v4804_v11 = vld [vmem:[#allocation9 + $0x38] sm:$0xf0] }
 0x362   : > { %v2259_v57 = vsel %vm2069_vm1, %v4977_v14, 0.0  ;;  %v2434_v22 = vmul.f32 1.442695, %v2431_v17  ;;  %3115 = vmatpush.bf16.msra.mxu1 %v4364_v5  ;;  %v4803_v12 = vld [vmem:[#allocation9 + $0x34] sm:$0xf] }
 0x363   : > { %4978 = vpow2.f32 %v2257_v15  ;;  %2260 = vadd.xlane.f32.xlu1 %v2259_v57  ;;  %3073 = vmatpush.bf16.msra.mxu2 %v4360_v58  ;;  %v4301_v15 = vld [vmem:[#allocation9 + $0x3c] sm:$0xf0]  ;;  %v4801_v17 = vld [vmem:[#allocation9 + $0x20] sm:$0xf0] }
 0x364   : > { %v4304_v57 = vor.u32 %v4803_v12, %v4301_v15  ;;  %v4839_v12 = vld [vmem:[#allocation9 + $0x154] sm:$0xf] }
 0x366   : > { %v2156_v18 = vpop.xlane.xlu0 %2155  ;;  %3116 = vmatpush.bf16.msra.mxu1 %v4352_v46 }
 0x367   : > { %v2159_v19 = vpop.xlane.xlu2 %2158  ;;  %4980 = vrcp.f32 %v2156_v18  ;;  %3074 = vmatpush.bf16.msra.mxu2 %v4348_v44  ;;  %v4800_v18 = vld [vmem:[#allocation9 + $0x1c] sm:$0xf] }
 0x368   : > { %4982 = vrcp.f32 %v2159_v19  ;;  %2086 = vadd.xlane.f32.xlu2 %v2085_v20 }
 0x369   : > { %v4979_v7 = vpop.eup %4978  ;;  %4984 = vpow2.f32 %v2434_v22 }
 0x36a   : > { %v2265_v21 = vpack.c.bf16 %v4979_v7, %v4977_v14  ;;  %v2262_v27 = vsel %vm2069_vm1, %v4979_v7, 0.0  ;;  %3117 = vmatpush.bf16.msra.mxu1 %v4340_v52  ;;  %v4300_v14 = vor.u32 %v4804_v11, %v4299_v10  ;;  %v4289_v7 = vld [vmem:[#allocation9 + $0x24] sm:$0xf0]  ;;  %v4840_v10 = vld [vmem:[#allocation9 + $0x158] sm:$0xf0] }
 0x36c   : > { %4242 = vmatmul.msk.bf16.vlgmr.msrb.gmra.mxu3 %vm2069_vm1, %v2265_v21 }
 0x36d   : > { %v4981_v23 = vpop.eup %4980 }
 0x36e   : > { %v4983_v24 = vpop.eup %4982  ;;  %v2183_v26 = vmul.f32 %v4981_v23, %v2176_v62  ;;  %3118 = vmatpush.bf16.msra.mxu1 %v4328_v60  ;;  %v4287_v62 = vld [vmem:[#allocation9 + $0x18] sm:$0xf] }
 0x36f   : > { %v2184_v28 = vmul.f32 %v4983_v24, %v2178_v25  ;;  %v4985_v32 = vpop.eup %4984  ;;  %v4288_v20 = vor.u32 %v4801_v17, %v4287_v62  ;;  %v4292_v24 = vor.u32 %v4800_v18, %v4289_v7  ;;  %v4275_v25 = vld [vmem:[#allocation9] sm:$0xf]  ;;  %v4837_v62 = vld [vmem:[#allocation9 + $0x140] sm:$0xf0]  ;;  %v4836_v17 = vld [vmem:[#allocation9 + $0x13c] sm:$0xf] }
 0x370   : > { %2263 = vadd.xlane.f32.xlu2 %v2262_v27  ;;  %v2185_v29 = vpack.c.bf16 %v2183_v26, %v2183_v26  ;;  %v2439_v35 = vsel %vm2069_vm1, %v4985_v32, 0.0  ;;  %v2442_v36 = vpack.c.bf16 %v4985_v32, %v5448_v16  ;;  %v4813_v16 = vld [vmem:[#allocation9 + $0x80] sm:$0xf0]  ;;  %v4798_v26 = vld [vmem:[#allocation9 + $0x8] sm:$0xf0] }
 0x371   : > { %v2186_v30 = vpack.c.bf16 %v2184_v28, %v2184_v28  ;;  %v4336_v49 = vor.u32 %v4813_v16, %v4335_v47  ;;  %v4797_v27 = vld [vmem:[#allocation9 + $0x4] sm:$0xf]  ;;  %v4433_v18 = vld [vmem:[#allocation9 + $0x144] sm:$0xf0] }
 0x372   : > { %v2194_v9 = vunpack.c.l.b16 %v2185_v29  ;;  %3119 = vmatpush.bf16.msra.mxu1 %v4316_v6  ;;  %v4443_v6 = vld [vmem:[#allocation9 + $0x150] sm:$0xf] }
 0x373   : > { %v2195_v8 = vunpack.c.l.b16 %v2186_v30  ;;  %3075 = vmatpush.bf16.msra.mxu2 %v4336_v49  ;;  %v4276_v30 = vor.u32 %v4798_v26, %v4275_v25  ;;  %v4436_v25 = vor.u32 %v4836_v17, %v4433_v18  ;;  %v4834_v26 = vld [vmem:[#allocation9 + $0x128] sm:$0xf0]  ;;  %v4832_v18 = vld [vmem:[#allocation9 + $0x118] sm:$0xf0] }
 0x375   : > { %v2196_v34 = vpack.c.b16 %v2195_v8, %v2194_v9  ;;  %v4277_v9 = vld [vmem:[#allocation9 + $0xc] sm:$0xf0] }
 0x376   : > { %3120 = vmatpush.bf16.msra.mxu1 %v4304_v57  ;;  %v4431_v57 = vld [vmem:[#allocation9 + $0x138] sm:$0xf] }
 0x377   : > { %2197 = vrot.lane.b32.xlu0 %v2196_v34, %s5209_s21  ;;  %3076 = vmatpush.bf16.msra.mxu2 %v4324_v56  ;;  %v4280_v34 = vor.u32 %v4797_v27, %v4277_v9  ;;  %v4432_v7 = vor.u32 %v4837_v62, %v4431_v57  ;;  %v4833_v27 = vld [vmem:[#allocation9 + $0x124] sm:$0xf]  ;;  %v4421_v9 = vld [vmem:[#allocation9 + $0x12c] sm:$0xf0]  ;;  %v4553_v57 = vld [vmem:[#allocation9 + $0x234] sm:$0xf0] }
 0x378   : > { %2440 = vadd.xlane.f32.xlu2 %v2439_v35  ;;  %v4415_v62 = vld [vmem:[#allocation9 + $0x110] sm:$0xf] }
 0x37a   : > { %3121 = vmatpush.bf16.msra.mxu1 %v4292_v24  ;;  %v4867_v24 = vld [vmem:[#allocation9 + $0x230] sm:$0xf0] }
 0x37b   : > { %3077 = vmatpush.bf16.msra.mxu2 %v4312_v1  ;;  %v4843_v1 = vld [vmem:[#allocation9 + $0x170] sm:$0xf0] }
 0x37c   : > { %4258 = vmatmul.msk.bf16.vlgmr.msra.gmra.mxu3 %vm2069_vm1, %v2442_v36 }
 0x37e   : > { %3122 = vmatpush.bf16.msra.mxu1 %v4280_v34 }
 0x37f   : > { %3078 = vmatpush.bf16.msra.mxu2 %v4300_v14  ;;  %v4444_v14 = vor.u32 %v4840_v10, %v4443_v6  ;;  %v4371_v6 = vld [vmem:[#allocation9 + $0xc0] sm:$0xf]  ;;  %v4822_v10 = vld [vmem:[#allocation9 + $0xc8] sm:$0xf0] }
 0x383   : > { %3079 = vmatpush.bf16.msra.mxu2 %v4288_v20  ;;  %v4844_v20 = vld [vmem:[#allocation9 + $0x178] sm:$0xf0] }
 0x387   : > { %3080 = vmatpush.bf16.msra.mxu2 %v4276_v30 }
 0x3bb   : > { %v2333_v51 = vpop.xlane.xlu0 %2332 }
 0x3bc   : > { %4986 = vrcp.f32 %v2333_v51 }
 0x3c2   : > { %v4987_v19 = vpop.eup %4986 }
 0x3c3   : > { %v2336_v3 = vpop.xlane.xlu2 %2335 }
 0x3c4   : > { %4988 = vrcp.f32 %v2336_v3  ;;  %v4456_v3 = vor.u32 %v4843_v1, %v4455_v0  ;;  %v4825_v0 = vld [vmem:[#allocation9 + $0xe0] sm:$0xf0]  ;;  %v4824_v1 = vld [vmem:[#allocation9 + $0xdc] sm:$0xf] }
 0x3c6   : > { %3087 = vmatpush.bf16.msrb.mxu3 %v4456_v3 }
 0x3ca   : > { %v4989_v28 = vpop.eup %4988  ;;  %3088 = vmatpush.bf16.msrb.mxu3 %v4444_v14 }
 0x3cb   : > { %v2510_v4 = vpop.xlane.xlu0 %2509 }
 0x3ce   : > { %v2353_v13 = vpop.f32.mrf.mxu1  ;;  %3089 = vmatpush.bf16.msrb.mxu3 %v4432_v7  ;;  %v4416_v7 = vor.u32 %v4832_v18, %v4415_v62  ;;  %v4851_v62 = vld [vmem:[#allocation9 + $0x1b4] sm:$0xf]  ;;  %v4355_v18 = vld [vmem:[#allocation9 + $0x98] sm:$0xf] }
 0x3cf   : > { %v2360_v21 = vmul.f32 %v4987_v19, %v2353_v13  ;;  %v4445_v13 = vld [vmem:[#allocation9 + $0x15c] sm:$0xf0]  ;;  %v4463_v19 = vld [vmem:[#allocation9 + $0x170] sm:$0xf] }
 0x3d0   : > { %v4448_v15 = vor.u32 %v4839_v12, %v4445_v13  ;;  %v4373_v12 = vld [vmem:[#allocation9 + $0xcc] sm:$0xf0]  ;;  %v4372_v13 = vor.u32 %v4822_v10, %v4371_v6  ;;  %v4820_v6 = vld [vmem:[#allocation9 + $0xb8] sm:$0xf0] }
 0x3d1   : > { %v2362_v8 = vpack.c.bf16 %v2360_v21, %v2360_v21  ;;  %v4419_v21 = vld [vmem:[#allocation9 + $0x120] sm:$0xf]  ;;  %v4511_v10 = vld [vmem:[#allocation9 + $0x1d0] sm:$0xf] }
 0x3d3   : > { %v2084_v22 = vpop.xlane.xlu0 %2083  ;;  %v2513_v23 = vpop.xlane.xlu2 %2512  ;;  %v2371_v36 = vunpack.c.l.b16 %v2362_v8  ;;  %v4841_v8 = vld [vmem:[#allocation9 + $0x160] sm:$0xf0] }
 0x3d4   : > { %4990 = vrcp.f32 %v2084_v22  ;;  %v4464_v22 = vor.u32 %v4844_v20, %v4463_v19  ;;  %v4559_v19 = vld [vmem:[#allocation9 + $0x230] sm:$0xf]  ;;  %v4868_v20 = vld [vmem:[#allocation9 + $0x238] sm:$0xf0] }
 0x3d5   : > { %4992 = vrcp.f32 %v2510_v4  ;;  %v4457_v4 = vld [vmem:[#allocation9 + $0x174] sm:$0xf0] }
 0x3d6   : > { %v2355_v29 = vpop.f32.mrf.mxu1  ;;  %v4460_v11 = vor.u32 %v4842_v2, %v4457_v4  ;;  %3171 = vmatpush.bf16.msrb.mxu1 %v4464_v22  ;;  %v4385_v2 = vld [vmem:[#allocation9 + $0xe4] sm:$0xf0] }
 0x3d7   : > { %v2361_v32 = vmul.f32 %v4989_v28, %v2355_v29  ;;  %v4451_v29 = vld [vmem:[#allocation9 + $0x158] sm:$0xf]  ;;  %v4388_v4 = vor.u32 %v4824_v1, %v4385_v2  ;;  %v4854_v1 = vld [vmem:[#allocation9 + $0x1cc] sm:$0xf] }
 0x3d8   : > { %3129 = vmatpush.bf16.msrb.mxu2 %v4460_v11  ;;  %v4452_v34 = vor.u32 %v4841_v8, %v4451_v29  ;;  %v4821_v11 = vld [vmem:[#allocation9 + $0xc4] sm:$0xf]  ;;  %v4403_v29 = vld [vmem:[#allocation9 + $0xf8] sm:$0xf] }
 0x3d9   : > { %v2363_v35 = vpack.c.bf16 %v2361_v32, %v2361_v32  ;;  %v4376_v14 = vor.u32 %v4821_v11, %v4373_v12  ;;  %v4547_v8 = vld [vmem:[#allocation9 + $0x218] sm:$0xf]  ;;  %v4856_v11 = vld [vmem:[#allocation9 + $0x1d8] sm:$0xf0] }
 0x3da   : > { %v4991_v39 = vpop.eup %4990  ;;  %3172 = vmatpush.bf16.msrb.mxu1 %v4452_v34  ;;  %v4505_v2 = vld [vmem:[#allocation9 + $0x1d4] sm:$0xf0] }
 0x3db   : > { %v2372_v37 = vunpack.c.l.b16 %v2363_v35  ;;  %v2087_v38 = vpop.xlane.xlu2 %2086  ;;  %v2114_v5 = vmul.f32 %v4991_v39, %v5455_v31  ;;  %v4993_v41 = vpop.eup %4992  ;;  %v4539_v35 = vld [vmem:[#allocation9 + $0x210] sm:$0xf]  ;;  %v4831_v39 = vld [vmem:[#allocation9 + $0x110] sm:$0xf0] }
 0x3dc   : > { %4994 = vrcp.f32 %v2087_v38  ;;  %3130 = vmatpush.bf16.msrb.mxu2 %v4448_v15  ;;  %v4407_v38 = vld [vmem:[#allocation9 + $0x108] sm:$0xf]  ;;  %v4866_v15 = vld [vmem:[#allocation9 + $0x22c] sm:$0xf] }
 0x3dd   : > { %v2373_v58 = vpack.c.b16 %v2372_v37, %v2371_v36  ;;  %4996 = vrcp.f32 %v2513_v23  ;;  %v2116_v43 = vpack.c.bf16 %v2114_v5, %v2114_v5  ;;  %v4551_v23 = vld [vmem:[#allocation9 + $0x228] sm:$0xf]  ;;  %v4420_v37 = vor.u32 %v4834_v26, %v4419_v21  ;;  %v4830_v5 = vld [vmem:[#allocation9 + $0x10c] sm:$0xf] }
 0x3de   : > { %v2530_v40 = vpop.f32.mrf.mxu1  ;;  %v4552_v28 = vor.u32 %v4867_v24, %v4551_v23  ;;  %v4556_v17 = vor.u32 %v4866_v15, %v4553_v57  ;;  %v4560_v21 = vor.u32 %v4868_v20, %v4559_v19  ;;  %v4503_v23 = vld [vmem:[#allocation9 + $0x1c8] sm:$0xf]  ;;  %v4855_v24 = vld [vmem:[#allocation9 + $0x1d0] sm:$0xf0] }
 0x3df   : > { %2374 = vrot.lane.b32.xlu1 %v2373_v58, %s5209_s21  ;;  %v2537_v45 = vmul.f32 %v4993_v41, %v2530_v40  ;;  %v2189_v50 = vunpack.c.l.b16 %v2116_v43  ;;  %v4864_v58 = vld [vmem:[#allocation9 + $0x218] sm:$0xf0]  ;;  %v4424_v40 = vor.u32 %v4833_v27, %v4421_v9  ;;  %v4838_v43 = vld [vmem:[#allocation9 + $0x148] sm:$0xf0]  ;;  %3090 = vmatpush.bf16.msrb.mxu3 %v4420_v37  ;;  %v4504_v26 = vor.u32 %v4855_v24, %v4503_v23  ;;  %v4863_v27 = vld [vmem:[#allocation9 + $0x214] sm:$0xf] }
 0x3e0   : > { %3101 = vmatpush.bf16.msra.mxu0 %v4552_v28  ;;  %3131 = vmatpush.bf16.msrb.mxu2 %v4436_v25  ;;  %v4540_v41 = vor.u32 %v4864_v58, %v4539_v35  ;;  %v5498_v25 = vpop.xlane.xlu1 %2437  ;;  %v4541_v28 = vld [vmem:[#allocation9 + $0x21c] sm:$0xf0]  ;;  %v4829_v9 = vld [vmem:[#allocation9 + $0x100] sm:$0xf0]  ;;  %v4491_v37 = vld [vmem:[#allocation9 + $0x1b0] sm:$0xf] }
 0x3e1   : > { %v2539_v48 = vpack.c.bf16 %v2537_v45, %v2537_v45  ;;  %v4527_v45 = vld [vmem:[#allocation9 + $0x1f8] sm:$0xf]  ;;  %v4404_v34 = vor.u32 %v4829_v9, %v4403_v29  ;;  %v4860_v58 = vld [vmem:[#allocation9 + $0x1fc] sm:$0xf]  ;;  %v4853_v23 = vld [vmem:[#allocation9 + $0x1c0] sm:$0xf0] }
 0x3e2   : > { %v4995_v42 = vpop.eup %4994  ;;  %v4848_v29 = vld [vmem:[#allocation9 + $0x19c] sm:$0xf]  ;;  %v4343_v9 = vld [vmem:[#allocation9 + $0x80] sm:$0xf] }
 0x3e3   : > { %v2115_v44 = vmul.f32 %v4995_v42, %v5458_v33  ;;  %v4997_v47 = vpop.eup %4996  ;;  %v2548_v31 = vunpack.c.l.b16 %v2539_v48  ;;  %v4439_v42 = vld [vmem:[#allocation9 + $0x140] sm:$0xf]  ;;  %v4408_v48 = vor.u32 %v4831_v39, %v4407_v38  ;;  %v4852_v38 = vld [vmem:[#allocation9 + $0x1b8] sm:$0xf0] }
 0x3e4   : > { %3102 = vmatpush.bf16.msra.mxu0 %v4540_v41  ;;  %3132 = vmatpush.bf16.msrb.mxu2 %v4424_v40  ;;  %v4492_v39 = vor.u32 %v4852_v38, %v4491_v37  ;;  %v4529_v40 = vld [vmem:[#allocation9 + $0x204] sm:$0xf0] }
 0x3e5   : > { %v2117_v46 = vpack.c.bf16 %v2115_v44, %v2115_v44  ;;  %v4409_v44 = vld [vmem:[#allocation9 + $0x114] sm:$0xf0]  ;;  %3091 = vmatpush.bf16.msrb.mxu3 %v4408_v48  ;;  %v4532_v41 = vor.u32 %v4860_v58, %v4529_v40  ;;  %v4849_v48 = vld [vmem:[#allocation9 + $0x1a0] sm:$0xf0]  ;;  %v4469_v40 = vld [vmem:[#allocation9 + $0x18c] sm:$0xf0] }
 0x3e6   : > { %v2532_v16 = vpop.f32.mrf.mxu1  ;;  %v4845_v58 = vld [vmem:[#allocation9 + $0x184] sm:$0xf] }
 0x3e7   : > { %v2538_v49 = vmul.f32 %v4997_v47, %v2532_v16  ;;  %v2190_v51 = vunpack.c.l.b16 %v2117_v46  ;;  %v4861_v46 = vld [vmem:[#allocation9 + $0x200] sm:$0xf0]  ;;  %v4440_v47 = vor.u32 %v4838_v43, %v4439_v42  ;;  %v4826_v42 = vld [vmem:[#allocation9 + $0xe8] sm:$0xf0]  ;;  %v4535_v43 = vld [vmem:[#allocation9 + $0x200] sm:$0xf] }
 0x3e8   : > { %v4528_v16 = vor.u32 %v4861_v46, %v4527_v45  ;;  %v2264_v45 = vpop.xlane.xlu2 %2263 }
 0x3e9   : > { %v2540_v52 = vpack.c.bf16 %v2538_v49, %v2538_v49  ;;  %v2191_v53 = vpack.c.b16 %v2190_v51, %v2189_v50  ;;  %v2198_v54 = vpop.permute.xlu0 %2197  ;;  %v4395_v49 = vld [vmem:[#allocation9 + $0xf0] sm:$0xf]  ;;  %v4427_v50 = vld [vmem:[#allocation9 + $0x128] sm:$0xf]  ;;  %v4835_v51 = vld [vmem:[#allocation9 + $0x130] sm:$0xf0]  ;;  %3173 = vmatpush.bf16.msrb.mxu1 %v4440_v47  ;;  %4998 = vrcp.f32 %v2264_v45  ;;  %v4472_v45 = vor.u32 %v4845_v58, %v4469_v40 }
 0x3ea   : > { %3103 = vmatpush.bf16.msra.mxu0 %v4528_v16  ;;  %v4479_v16 = vld [vmem:[#allocation9 + $0x198] sm:$0xf] }
 0x3eb   : > { %v2549_v55 = vunpack.c.l.b16 %v2540_v52  ;;  %v2201_v56 = vsel %vm2048_vm0, %v2191_v53, %v2198_v54  ;;  %v4412_v52 = vor.u32 %v4830_v5, %v4409_v44  ;;  %v4828_v53 = vld [vmem:[#allocation9 + $0xf8] sm:$0xf0]  ;;  %v4515_v54 = vld [vmem:[#allocation9 + $0x1e0] sm:$0xf]  ;;  %v4862_v44 = vld [vmem:[#allocation9 + $0x208] sm:$0xf0] }
 0x3ec   : > { %v2203_v59 = vunpack.c.l.b16 %v2201_v56  ;;  %v2204_v60 = vunpack.c.h.b16 %v2201_v56  ;;  %v4397_v56 = vld [vmem:[#allocation9 + $0xfc] sm:$0xf0]  ;;  %v4536_v47 = vor.u32 %v4862_v44, %v4535_v43  ;;  %v4847_v43 = vld [vmem:[#allocation9 + $0x190] sm:$0xf0] }
 0x3ed   : > { %v2550_v61 = vpack.c.b16 %v2549_v55, %v2548_v31  ;;  %v4858_v31 = vld [vmem:[#allocation9 + $0x1e8] sm:$0xf0]  ;;  %v4827_v55 = vld [vmem:[#allocation9 + $0xf4] sm:$0xf]  ;;  %3133 = vmatpush.bf16.msrb.mxu2 %v4412_v52  ;;  %v4391_v5 = vld [vmem:[#allocation9 + $0xe0] sm:$0xf] }
 0x3ee   : > { %v2205_v63 = vpack.c.b16 %v2203_v59, %v2203_v59  ;;  %v2206_v33 = vpack.c.b16 %v2204_v60, %v2204_v60  ;;  %v4428_v59 = vor.u32 %v4835_v51, %v4427_v50  ;;  %v4516_v60 = vor.u32 %v4858_v31, %v4515_v54  ;;  %v4517_v51 = vld [vmem:[#allocation9 + $0x1ec] sm:$0xf0]  ;;  %v4379_v52 = vld [vmem:[#allocation9 + $0xc8] sm:$0xf]  ;;  %v2261_v54 = vpop.xlane.xlu1 %2260 }
 0x3ef   : > { %2551 = vrot.lane.b32.xlu0 %v2550_v61, %s5209_s21  ;;  %v4396_v61 = vor.u32 %v4828_v53, %v4395_v49  ;;  %v5496_v22 = vpop.f32.mrf.mxu3  ;;  %v4392_v46 = vor.u32 %v4826_v42, %v4391_v5  ;;  %v4857_v49 = vld [vmem:[#allocation9 + $0x1e4] sm:$0xf]  ;;  %v4480_v50 = vor.u32 %v4849_v48, %v4479_v16  ;;  %v4823_v53 = vld [vmem:[#allocation9 + $0xd0] sm:$0xf0]  ;;  %5000 = vrcp.f32 %v2261_v54  ;;  %v4999_v12 = vpop.eup %4998  ;;  %v4331_v5 = vld [vmem:[#allocation9 + $0x68] sm:$0xf] }
 0x3f0   : > { %2209 = vst [vmem:[#allocation3] sm:$0xf] %v2205_v63  ;;  %v4400_v63 = vor.u32 %v4827_v55, %v4397_v56  ;;  %3174 = vmatpush.bf16.msrb.mxu1 %v4428_v59  ;;  %3104 = vmatpush.bf16.msra.mxu0 %v4516_v60  ;;  %v4520_v31 = vor.u32 %v4857_v49, %v4517_v51  ;;  %v4523_v56 = vld [vmem:[#allocation9 + $0x1e8] sm:$0xf]  ;;  %v4859_v59 = vld [vmem:[#allocation9 + $0x1f0] sm:$0xf0]  ;;  %v2441_v37 = vpop.xlane.xlu2 %2440 }
 0x3f1   : > { %2210 = vst [vmem:[#allocation3 + $0xc] sm:$0xf] %v2206_v33  ;;  %v4383_v33 = vld [vmem:[#allocation9 + $0xd8] sm:$0xf]  ;;  %3092 = vmatpush.bf16.msrb.mxu3 %v4396_v61  ;;  %v4380_v55 = vor.u32 %v4823_v53, %v4379_v52  ;;  %v4467_v60 = vld [vmem:[#allocation9 + $0x180] sm:$0xf]  ;;  %5002 = vrcp.f32 %v2441_v37 }
 0x3f2   : > { %v4384_v3 = vor.u32 %v4825_v0, %v4383_v33  ;;  %3134 = vmatpush.bf16.msrb.mxu2 %v4400_v63  ;;  %v4524_v63 = vor.u32 %v4859_v59, %v4523_v56  ;;  %v4846_v33 = vld [vmem:[#allocation9 + $0x188] sm:$0xf0]  ;;  %v4475_v42 = vld [vmem:[#allocation9 + $0x188] sm:$0xf]  ;;  %5004 = vrcp.f32 %v5498_v25  ;;  %v4319_v51 = vld [vmem:[#allocation9 + $0x50] sm:$0xf] }
 0x3f3   : > { %v4468_v0 = vor.u32 %v4846_v33, %v4467_v60  ;;  %v4808_v52 = vld [vmem:[#allocation9 + $0x58] sm:$0xf0]  ;;  %v4307_v59 = vld [vmem:[#allocation9 + $0x38] sm:$0xf]  ;;  %v4805_v60 = vld [vmem:[#allocation9 + $0x40] sm:$0xf0] }
 0x3f4   : > { %3175 = vmatpush.bf16.msrb.mxu1 %v4416_v7  ;;  %3105 = vmatpush.bf16.msra.mxu0 %v4504_v26  ;;  %v4817_v7 = vld [vmem:[#allocation9 + $0xa0] sm:$0xf0]  ;;  %v4320_v54 = vor.u32 %v4808_v52, %v4319_v51 }
 0x3f5   : > { %3093 = vmatpush.bf16.msrb.mxu3 %v4384_v3  ;;  %v4367_v3 = vld [vmem:[#allocation9 + $0xb0] sm:$0xf]  ;;  %v5001_v57 = vpop.eup %5000  ;;  %v4356_v26 = vor.u32 %v4817_v7, %v4355_v18 }
 0x3f6   : > { %3135 = vmatpush.bf16.msrb.mxu2 %v4388_v4  ;;  %v4508_v4 = vor.u32 %v4854_v1, %v4505_v2  ;;  %v2291_v19 = vmul.f32 %v5001_v57, %v5496_v22 }
 0x3f7   : > { %v4263_v30 = vld [vmem:[#allocation3] sm:$0xf]  ;;  %v2286_v61 = vpop.f32.mrf.mxu3 }
 0x3f8   : > { %v4795_v32 = vld [vmem:[#allocation3 + $0x8] sm:$0xf0]  ;;  %3176 = vmatpush.bf16.msrb.mxu1 %v4404_v34  ;;  %3106 = vmatpush.bf16.msra.mxu0 %v4492_v39  ;;  %v2292_v15 = vmul.f32 %v4999_v12, %v2286_v61  ;;  %v4487_v34 = vld [vmem:[#allocation9 + $0x1a0] sm:$0xf]  ;;  %v2293_v22 = vpack.c.bf16 %v2291_v19, %v2291_v19  ;;  %v4283_v12 = vld [vmem:[#allocation9 + $0x8] sm:$0xf] }
 0x3f9   : > { %v5492_v36 = vor.u32 %v4795_v32, %v4263_v30  ;;  %3094 = vmatpush.bf16.msrb.mxu3 %v4372_v13  ;;  %v4544_v30 = vor.u32 %v4863_v27, %v4541_v28  ;;  %v4865_v32 = vld [vmem:[#allocation9 + $0x220] sm:$0xf0]  ;;  %v4368_v13 = vor.u32 %v4820_v6, %v4367_v3  ;;  %v4295_v3 = vld [vmem:[#allocation9 + $0x20] sm:$0xf] }
 0x3fa   : > { %3136 = vmatpush.bf16.msrb.mxu2 %v4376_v14  ;;  %v4548_v35 = vor.u32 %v4865_v32, %v4547_v8  ;;  %v4512_v14 = vor.u32 %v4856_v11, %v4511_v10  ;;  %v2294_v28 = vpack.c.bf16 %v2292_v15, %v2292_v15  ;;  %v4814_v32 = vld [vmem:[#allocation9 + $0x88] sm:$0xf0]  ;;  %v2366_v16 = vunpack.c.l.b16 %v2293_v22 }
 0x3fb   : > { %3081 = vmatmul.bf16.vlgmr.msra.gmra.mxu2 %v5492_v36  ;;  %3123 = vmatmul.bf16.vlgmr.msra.gmra.mxu1 %v5492_v36  ;;  %v4344_v38 = vor.u32 %v4814_v32, %v4343_v9 }
 0x3fc   : > { %3177 = vmatpush.bf16.msrb.mxu1 %v4392_v46  ;;  %3107 = vmatpush.bf16.msra.mxu0 %v4480_v50  ;;  %v2367_v44 = vunpack.c.l.b16 %v2294_v28 }
 0x3fd   : > { %3143 = vmatpush.bf16.msra.mxu3 %v4556_v17  ;;  %v4493_v17 = vld [vmem:[#allocation9 + $0x1bc] sm:$0xf0] }
 0x3fe   : > { %3185 = vmatpush.bf16.msra.mxu2 %v4560_v21  ;;  %v4496_v20 = vor.u32 %v4851_v62, %v4493_v17  ;;  %v4499_v21 = vld [vmem:[#allocation9 + $0x1b8] sm:$0xf]  ;;  %v2368_v48 = vpack.c.b16 %v2367_v44, %v2366_v16 }
 0x3ff   : > { %v2461_v24 = vpop.f32.mrf.mxu3  ;;  %v4500_v27 = vor.u32 %v4853_v23, %v4499_v21 }
 0x400   : > { %3178 = vmatpush.bf16.msrb.mxu1 %v4380_v55  ;;  %3108 = vmatpush.bf16.msra.mxu0 %v4468_v0  ;;  %v4308_v0 = vor.u32 %v4805_v60, %v4307_v59 }
 0x401   : > { %3144 = vmatpush.bf16.msra.mxu3 %v4544_v30  ;;  %v4481_v30 = vld [vmem:[#allocation9 + $0x1a4] sm:$0xf0] }
 0x402   : > { %3186 = vmatpush.bf16.msra.mxu2 %v4548_v35  ;;  %v4484_v8 = vor.u32 %v4848_v29, %v4481_v30  ;;  %v4850_v35 = vld [vmem:[#allocation9 + $0x1a8] sm:$0xf0] }
 0x403   : > { %v4488_v39 = vor.u32 %v4850_v35, %v4487_v34 }
 0x404   : > { %3157 = vmatpush.bf16.msrb.mxu0 %v4368_v13  ;;  %v4799_v13 = vld [vmem:[#allocation9 + $0x10] sm:$0xf0] }
 0x405   : > { %3145 = vmatpush.bf16.msra.mxu3 %v4532_v41  ;;  %v4811_v41 = vld [vmem:[#allocation9 + $0x70] sm:$0xf0]  ;;  %v4284_v57 = vor.u32 %v4799_v13, %v4283_v12 }
 0x406   : > { %3187 = vmatpush.bf16.msra.mxu2 %v4536_v47  ;;  %v4332_v46 = vor.u32 %v4811_v41, %v4331_v5  ;;  %v4476_v47 = vor.u32 %v4847_v43, %v4475_v42 }
 0x407   : > { %v2463_v49 = vpop.f32.mrf.mxu3 }
 0x408   : > { %3158 = vmatpush.bf16.msrb.mxu0 %v4356_v26 }
 0x409   : > { %3146 = vmatpush.bf16.msra.mxu3 %v4520_v31  ;;  %v5003_v31 = vpop.eup %5002 }
 0x40a   : > { %3188 = vmatpush.bf16.msra.mxu2 %v4524_v63  ;;  %v2469_v61 = vmul.f32 %v5003_v31, %v2463_v49  ;;  %v5005_v63 = vpop.eup %5004 }
 0x40b   : > { %v2468_v1 = vmul.f32 %v5005_v63, %v2461_v24 }
 0x40c   : > { %3159 = vmatpush.bf16.msrb.mxu0 %v4344_v38  ;;  %v2471_v2 = vpack.c.bf16 %v2469_v61, %v2469_v61 }
 0x40d   : > { %3147 = vmatpush.bf16.msra.mxu3 %v4508_v4  ;;  %v4802_v4 = vld [vmem:[#allocation9 + $0x28] sm:$0xf0]  ;;  %v2470_v6 = vpack.c.bf16 %v2468_v1, %v2468_v1 }
 0x40e   : > { %3189 = vmatpush.bf16.msra.mxu2 %v4512_v14  ;;  %v4296_v10 = vor.u32 %v4802_v4, %v4295_v3  ;;  %v2544_v11 = vunpack.c.l.b16 %v2471_v2 }
 0x40f   : > { %v2543_v14 = vunpack.c.l.b16 %v2470_v6 }
 0x410   : > { %3160 = vmatpush.bf16.msrb.mxu0 %v4332_v46 }
 0x411   : > { %3148 = vmatpush.bf16.msra.mxu3 %v4496_v20  ;;  %v2545_v17 = vpack.c.b16 %v2544_v11, %v2543_v14 }
 0x412   : > { %3190 = vmatpush.bf16.msra.mxu2 %v4500_v27 }
 0x414   : > { %3161 = vmatpush.bf16.msrb.mxu0 %v4320_v54 }
 0x415   : > { %3149 = vmatpush.bf16.msra.mxu3 %v4484_v8  ;;  %v2665_v8 = vld [vmem:[#allocation10] sm:$0x7] }
 0x416   : > { %3191 = vmatpush.bf16.msra.mxu2 %v4488_v39  ;;  %v2667_v32 = vperm.slane %v2665_v8, 0  ;;  %v2668_v38 = vperm.slane %v2665_v8, 1 }
 0x418   : > { %3162 = vmatpush.bf16.msrb.mxu0 %v4308_v0 }
 0x419   : > { %3150 = vmatpush.bf16.msra.mxu3 %v4472_v45 }
 0x41a   : > { %3192 = vmatpush.bf16.msra.mxu2 %v4476_v47 }
 0x41c   : > { %3163 = vmatpush.bf16.msrb.mxu0 %v4296_v10 }
 0x420   : > { %3164 = vmatpush.bf16.msrb.mxu0 %v4284_v57 }
 0x451   : > { %v2375_v50 = vpop.permute.xlu1 %2374 }
 0x452   : > { %v2378_v53 = vsel %vm2048_vm0, %v2368_v48, %v2375_v50  ;;  %v2669_v50 = vperm.slane %v2665_v8, 2 }
 0x453   : > { %v2380_v55 = vunpack.c.l.b16 %v2378_v53  ;;  %v2381_v56 = vunpack.c.h.b16 %v2378_v53 }
 0x455   : > { %v2382_v33 = vpack.c.b16 %v2380_v55, %v2380_v55  ;;  %v2383_v25 = vpack.c.b16 %v2381_v56, %v2381_v56 }
 0x457   : > { %2386 = vst [vmem:[#allocation3 + $0x4] sm:$0xf] %v2382_v33 }
 0x458   : > { %2387 = vst [vmem:[#allocation3 + $0x10] sm:$0xf] %v2383_v25 }
 0x45e   : > { %v4794_v15 = vld [vmem:[#allocation3 + $0x4] sm:$0xf] }
 0x45f   : > { %v4265_v62 = vld [vmem:[#allocation3 + $0xc] sm:$0xf0] }
 0x460   : > { %v4268_v18 = vor.u32 %v4794_v15, %v4265_v62 }
 0x461   : > { %v2552_v19 = vpop.permute.xlu0 %2551 }
 0x462   : > { %v2555_v20 = vsel %vm2048_vm0, %v2545_v17, %v2552_v19  ;;  %3095 = vmatmul.bf16.vlgmr.msrb.gmra.mxu3 %v4268_v18  ;;  %3137 = vmatmul.bf16.vlgmr.msrb.gmra.mxu2 %v4268_v18 }
 0x463   : > { %v2557_v7 = vunpack.c.l.b16 %v2555_v20  ;;  %v2558_v21 = vunpack.c.h.b16 %v2555_v20  ;;  %3179 = vmatmul.bf16.vlgmr.msrb.gmra.mxu1 %v4268_v18 }
 0x465   : > { %v2559_v23 = vpack.c.b16 %v2557_v7, %v2557_v7  ;;  %v2560_v24 = vpack.c.b16 %v2558_v21, %v2558_v21 }
 0x467   : > { %2563 = vst [vmem:[#allocation3 + $0x8] sm:$0xf] %v2559_v23 }
 0x468   : > { %2564 = vst [vmem:[#allocation3 + $0x14] sm:$0xf] %v2560_v24 }
 0x46e   : > { %v4271_v26 = vld [vmem:[#allocation3 + $0x8] sm:$0xf] }
 0x46f   : > { %v4796_v27 = vld [vmem:[#allocation3 + $0x10] sm:$0xf0] }
 0x470   : > { %v4272_v28 = vor.u32 %v4796_v27, %v4271_v26 }
 0x472   : > { %3109 = vmatmul.bf16.vlgmr.msra.gmra.mxu0 %v4272_v28  ;;  %3151 = vmatmul.bf16.vlgmr.msra.gmra.mxu3 %v4272_v28 }
 0x473   : > { %3193 = vmatmul.bf16.vlgmr.msra.gmra.mxu2 %v4272_v28 }
 0x478   : > { %v3124_v34 = vpop.f32.mrf.mxu1 }
 0x479   : > { %v3125_v5 = vadd.f32 %v3124_v34, %v2668_v38 }
 0x47e   : > { %v3082_v29 = vpop.f32.mrf.mxu2 }
 0x47f   : > { %v3083_v35 = vadd.f32 %v3082_v29, %v2667_v32 }
 0x480   : > { %v3126_v43 = vpop.f32.mrf.mxu1 }
 0x481   : > { %v3127_v48 = vadd.f32 %v3126_v43, %v2668_v38 }
 0x482   : > { %3165 = vmatmul.bf16.vlgmr.msrb.gmra.mxu0 %v5492_v36 }
 0x486   : > { %v3084_v30 = vpop.f32.mrf.mxu2 }
 0x487   : > { %v3085_v36 = vadd.f32 %v3084_v30, %v2667_v32 }
 0x4e0   : > { %v3180_v53 = vpop.f32.mrf.mxu1 }
 0x4e5   : > { %v3096_v9 = vpop.f32.mrf.mxu3  ;;  %v3138_v37 = vpop.f32.mrf.mxu2 }
 0x4e6   : > { %v3097_v39 = vadd.f32 %v3096_v9, %v3083_v35  ;;  %v3139_v41 = vadd.f32 %v3138_v37, %v3125_v5 }
 0x4e8   : > { %v3182_v63 = vpop.f32.mrf.mxu1 }
 0x4ed   : > { %v3098_v22 = vpop.f32.mrf.mxu3  ;;  %v3140_v46 = vpop.f32.mrf.mxu2 }
 0x4ee   : > { %v3099_v44 = vadd.f32 %v3098_v22, %v3085_v36  ;;  %v3141_v49 = vadd.f32 %v3140_v46, %v3127_v48 }
 0x4ef   : > { %v3110_v58 = vpop.f32.mrf.mxu0 }
 0x4f0   : > { %v3111_v40 = vadd.f32 %v3110_v58, %v3097_v39 }
 0x4f2   : > { %3199 = vst [vmem:[%s5506_s13] sm:$0xff] %v3111_v40 }
 0x4f5   : > { %v3152_v42 = vpop.f32.mrf.mxu3 }
 0x4f6   : > { %v3153_v45 = vadd.f32 %v3152_v42, %v3139_v41  ;;  %v3194_v55 = vpop.f32.mrf.mxu2 }
 0x4f7   : > { %v3112_v47 = vpop.f32.mrf.mxu0 }
 0x4f8   : > { %3200 = vst [vmem:[%s5506_s13 + $0x8] sm:$0xff] %v3153_v45  ;;  %v3113_v16 = vadd.f32 %v3112_v47, %v3099_v44 }
 0x4fa   : > { %3202 = vst [vmem:[%s5506_s13 + $0x18] sm:$0xff] %v3113_v16 }
 0x4fd   : > { %v3154_v51 = vpop.f32.mrf.mxu3 }
 0x4fe   : > { %v3155_v52 = vadd.f32 %v3154_v51, %v3141_v49  ;;  %v3196_v25 = vpop.f32.mrf.mxu2 }
 0x4ff   : > { %v3166_v54 = vpop.f32.mrf.mxu0 }
 0x500   : > { %3203 = vst [vmem:[%s5506_s13 + $0x20] sm:$0xff] %v3155_v52  ;;  %v3167_v31 = vadd.f32 %v3166_v54, %v2669_v50 }
 0x502   : > { %v3181_v56 = vadd.f32 %v3180_v53, %v3167_v31 }
 0x504   : > { %v3195_v59 = vadd.f32 %v3194_v55, %v3181_v56 }
 0x506   : > { %3201 = vst [vmem:[%s5506_s13 + $0x10] sm:$0xff] %v3195_v59 }
 0x507   : > { %v3168_v60 = vpop.f32.mrf.mxu0 }
 0x508   : > { %v3169_v61 = vadd.f32 %v3168_v60, %v2669_v50 }
 0x50a   : > { %v3183_v33 = vadd.f32 %v3182_v63, %v3169_v61 }
 0x50c   : > { %v3197_v0 = vadd.f32 %v3196_v25, %v3183_v33 }
 0x50e   : > { %3204 = vst [vmem:[%s5506_s13 + $0x28] sm:$0xff] %v3197_v0 }
 0x50f   : > { %5153 = shalt.err (!%p5150_p10)
}
 0x510   : > { %s5210_s10 = smov 384   ;;  %s5211_s21 = smov 24  }
 0x511   : > { %4888 = dma.vmem_to_hbm [thread:$0]  (%p5323_p7), %s3220_s28, 768, %s3222_s29, %s3206_s19, %s5210_s10, %s5210_s10, %s5211_s21  }
 0x512 PF: > { %s3236_s26 = sand.u32 1, %s5188_s15   ;;  %p5563_p12 = scmp.ge.s32.totalorder %s5200_s18, 2 }
 0x513   : > { %s3237_s13 = scalar_lea.sflag [#allocation6], %s3236_s26 }
 0x514   : > { %p4905_p13 = pnand %p5563_p12, %p5272_p6 }
 0x516   : > { %p4906_p0 = pneg %p4905_p13 }
 0x518   : > { %5183 = dma.done.wait (%p4906_p0), %s3237_s13, 768  }
 0x519   : > { %5185 = vsyncadd (%p4906_p0), %s3237_s13, 4294966528  ;;  %p19_p3 = scmp.ge.s32.totalorder %s5309_s25, 4   ;;  %s5564_s15 = smov %s5192_s16 }
 0x51a   : > { %s5565_s16 = smov %s5196_s17  ;;  %s5566_s17 = smov %s5319_s30 }
 0x51b   : > { %s5567_s18 = smov %s5309_s25  ;;  %21 = sbr.rel (!%p19_p3) target bundleno = 7 (0x7), region = 93 }
 0x520   :  { %3243 = vsyncpa [#allocation5], 1 }
 0x521   :  { %3245 = vsyncpa [#allocation5 + $0x1], 1 }
 0x522   :  { %3246 = vsyncpa [#allocation8], 1 }
 0x523   :  { %3247 = vsyncpa [#allocation11], 1 }
 0x524   :  { %3248 = vsyncpa [#allocation6], 1 }
 0x525   :  { %3250 = vsyncpa [#allocation6 + $0x1], 1 }

</bundles_post_ra>
